<compile_context>
chip_gen: v7x
topology: tpu7x:2x2x1
jax: 0.10.0
libtpu: 0.0.40
codegen_flags: <defaults>
</compile_context>

<pallas_src>
import functools

import jax
import jax.numpy as jnp
from jax import lax
from jax.experimental import pallas as pl
from jax.experimental.pallas import tpu as pltpu


def _round_up(x, m):
    return ((x + m - 1) // m) * m


# ----------------------------------------------------------------------------
# Pallas kernel 1: fused matmul -> folded-BN affine -> optional ReLU
#   bf16 operands on the MXU, f32 accumulate, f32 epilogue.
#   Used for the 7x7 stem conv (one-shot im2col) and the 1x1 proj head.
# ----------------------------------------------------------------------------
def _matmul_bn_act_kernel(x_ref, w_ref, s_ref, b_ref, o_ref, *, relu):
    acc = jnp.dot(x_ref[...], w_ref[...], preferred_element_type=jnp.float32)
    acc = acc * s_ref[...] + b_ref[...]          # folded BatchNorm (inference affine)
    if relu:
        acc = jnp.maximum(acc, 0.0)
    o_ref[...] = acc.astype(o_ref.dtype)


def fused_matmul(x2d, w2d, scale, bias, relu=True, tm=256):
    """Y[M,N] = act((X[M,K] @ W[K,N]) * scale[N] + bias[N]); bf16 MXU, f32 accumulate."""
    M, K = x2d.shape
    K2, N = w2d.shape
    assert K == K2
    # Align the contraction dim (sublanes of W / lanes of X): pad K to a multiple of 32.
    Kp = _round_up(K, 32)
    if Kp != K:
        x2d = jnp.pad(x2d, ((0, 0), (0, Kp - K)))
        w2d = jnp.pad(w2d, ((0, Kp - K), (0, 0)))
    # Row tile: chosen so it divides M at these shapes (stem M=512 -> 2 tiles, proj M=128 -> 1).
    tm = min(tm, _round_up(M, 8))
    Mp = _round_up(M, tm)
    if Mp != M:
        # TODO(synk): not hit at these shapes; a masked tail tile would avoid this extra copy.
        x2d = jnp.pad(x2d, ((0, Mp - M), (0, 0)))
    # Column tile: 128-lane-dense when possible; also gives a >=2 grid so v7x's 2nd core has work.
    tn = 128 if N % 128 == 0 else N

    x_bf = x2d.astype(jnp.bfloat16)
    w_bf = w2d.astype(jnp.bfloat16)
    s2 = scale.reshape(1, N).astype(jnp.float32)
    b2 = bias.reshape(1, N).astype(jnp.float32)

    out = pl.pallas_call(
        functools.partial(_matmul_bn_act_kernel, relu=relu),
        out_shape=jax.ShapeDtypeStruct((Mp, N), jnp.float32),
        grid=(Mp // tm, N // tn),
        in_specs=[
            pl.BlockSpec((tm, Kp), lambda i, j: (i, 0)),   # activations (bf16), tiled over rows
            pl.BlockSpec((Kp, tn), lambda i, j: (0, j)),   # weights (bf16)
            pl.BlockSpec((1, tn), lambda i, j: (0, j)),    # bn scale (f32)
            pl.BlockSpec((1, tn), lambda i, j: (0, j)),    # bn bias (f32)
        ],
        out_specs=pl.BlockSpec((tm, tn), lambda i, j: (i, j)),
        compiler_params=pltpu.CompilerParams(
            dimension_semantics=("parallel", "parallel")),
    )(x_bf, w_bf, s2, b2)
    return out[:M]


# ----------------------------------------------------------------------------
# Pallas kernel 2: one whole fused ResNet bottleneck block per grid step.
#   conv1(1x1)+BN+ReLU -> conv2(3x3, per-tap matmul accumulation on a zero-padded
#   VMEM scratch; NO im2col in HBM)+BN+ReLU -> conv3(1x1)+BN -> (+optional 1x1
#   downsample+BN) residual add -> ReLU.
#   64-channel intermediates stay in VMEM; only the lane-dense 256-channel block
#   output is written to HBM. Matmuls in bf16, accumulate/epilogue in f32.
# ----------------------------------------------------------------------------
def _bottleneck_kernel(x_ref, w1_ref, s1_ref, b1_ref,
                       w2_ref, s2_ref, b2_ref,
                       w3_ref, s3_ref, b3_ref,
                       *rest, H, W, has_down):
    if has_down:
        wd_ref, sd_ref, bd_ref, o_ref, pad_ref = rest
    else:
        o_ref, pad_ref = rest
    HW = H * W
    width = w2_ref.shape[-1]

    x_f32 = x_ref[0]                              # (HW, Cin) f32
    x_bf = x_f32.astype(jnp.bfloat16)

    # conv1 (1x1) + BN + ReLU -- never leaves VMEM
    t1 = jnp.dot(x_bf, w1_ref[...], preferred_element_type=jnp.float32)
    t1 = jnp.maximum(t1 * s1_ref[...] + b1_ref[...], 0.0)

    # conv2 (3x3, stride 1, pad 1): stage t1 in a zero-padded spatial scratch.
    # Interior placed at sublane offset 8 so every store is tile-aligned.
    pad_ref[...] = jnp.zeros_like(pad_ref)
    for h in range(H):
        pad_ref[1 + h, 8:8 + W, :] = t1[h * W:(h + 1) * W, :]
    acc2 = jnp.zeros((HW, width), jnp.float32)
    for di in range(3):
        for dj in range(3):
            win = pad_ref[di:di + H, 7 + dj:7 + dj + W, :]        # (H, W, width)
            lhs = win.reshape(HW, width).astype(jnp.bfloat16)
            acc2 = acc2 + jnp.dot(lhs, w2_ref[di, dj],
                                  preferred_element_type=jnp.float32)
    t2 = jnp.maximum(acc2 * s2_ref[...] + b2_ref[...], 0.0).astype(jnp.bfloat16)

    # conv3 (1x1) + BN
    y = jnp.dot(t2, w3_ref[...], preferred_element_type=jnp.float32)
    y = y * s3_ref[...] + b3_ref[...]

    # residual path (optional 1x1 downsample + BN), f32 add, then ReLU
    if has_down:
        idn = jnp.dot(x_bf, wd_ref[...], preferred_element_type=jnp.float32)
        idn = idn * sd_ref[...] + bd_ref[...]
    else:
        idn = x_f32
    o_ref[0] = jnp.maximum(y + idn, 0.0).astype(o_ref.dtype)


def bottleneck_block(x, blk):
    """x: NHWC f32 -> NHWC f32; one fused pallas_call per bottleneck block."""
    N, H, W, Cin = x.shape
    width = blk["conv1"].shape[0]
    exp = blk["conv3"].shape[0]
    HW = H * W
    has_down = "down_conv" in blk

    s1, b1 = fold_bn(blk["bn1"])
    s2, b2 = fold_bn(blk["bn2"])
    s3, b3 = fold_bn(blk["bn3"])

    # PyTorch conv weights [Cout, Cin, kh, kw] -> matmul layouts, bf16 for the MXU.
    w1 = jnp.transpose(blk["conv1"][:, :, 0, 0], (1, 0)).astype(jnp.bfloat16)   # (Cin, width)
    w2 = jnp.transpose(blk["conv2"], (2, 3, 1, 0)).astype(jnp.bfloat16)         # (3,3,width,width)
    w3 = jnp.transpose(blk["conv3"][:, :, 0, 0], (1, 0)).astype(jnp.bfloat16)   # (width, exp)

    args = [x.reshape(N, HW, Cin), w1,
            s1.reshape(1, width), b1.reshape(1, width),
            w2, s2.reshape(1, width), b2.reshape(1, width),
            w3, s3.reshape(1, exp), b3.reshape(1, exp)]
    in_specs = [
        pl.BlockSpec((1, HW, Cin), lambda n: (n, 0, 0)),
        pl.BlockSpec((Cin, width), lambda n: (0, 0)),
        pl.BlockSpec((1, width), lambda n: (0, 0)),
        pl.BlockSpec((1, width), lambda n: (0, 0)),
        pl.BlockSpec((3, 3, width, width), lambda n: (0, 0, 0, 0)),
        pl.BlockSpec((1, width), lambda n: (0, 0)),
        pl.BlockSpec((1, width), lambda n: (0, 0)),
        pl.BlockSpec((width, exp), lambda n: (0, 0)),
        pl.BlockSpec((1, exp), lambda n: (0, 0)),
        pl.BlockSpec((1, exp), lambda n: (0, 0)),
    ]
    if has_down:
        sd, bd = fold_bn(blk["down_bn"])
        wd = jnp.transpose(blk["down_conv"][:, :, 0, 0], (1, 0)).astype(jnp.bfloat16)  # (Cin, exp)
        args += [wd, sd.reshape(1, exp), bd.reshape(1, exp)]
        in_specs += [
            pl.BlockSpec((Cin, exp), lambda n: (0, 0)),
            pl.BlockSpec((1, exp), lambda n: (0, 0)),
            pl.BlockSpec((1, exp), lambda n: (0, 0)),
        ]

    out = pl.pallas_call(
        functools.partial(_bottleneck_kernel, H=H, W=W, has_down=has_down),
        out_shape=jax.ShapeDtypeStruct((N, HW, exp), jnp.float32),
        grid=(N,),                              # batch-parallel: 2 steps -> both v7x cores busy
        in_specs=in_specs,
        out_specs=pl.BlockSpec((1, HW, exp), lambda n: (n, 0, 0)),
        scratch_shapes=[pltpu.VMEM((H + 2, W + 16, width), jnp.float32)],
        compiler_params=pltpu.CompilerParams(dimension_semantics=("parallel",)),
    )(*args)
    # TODO(synk): for realistic resolutions, tile this grid over (batch, row-strip) with a
    # 1-row halo and re-budget the tiles against v7x's 64 MiB VMEM.
    return out.reshape(N, H, W, exp)


# ----------------------------------------------------------------------------
# JAX glue: im2col (stem only), maxpool, BN folding, conv wrapper
# ----------------------------------------------------------------------------
def im2col(x, kh, kw, stride, pad):
    # x: NHWC -> patches (N*Ho*Wo, kh*kw*C), (i, j, c)-major to match the weight reshape.
    N, H, W, C = x.shape
    xp = jnp.pad(x, ((0, 0), (pad, pad), (pad, pad), (0, 0)))
    Ho = (H + 2 * pad - kh) // stride + 1
    Wo = (W + 2 * pad - kw) // stride + 1
    cols = []
    for i in range(kh):
        for j in range(kw):
            cols.append(xp[:, i:i + stride * Ho:stride, j:j + stride * Wo:stride, :])
    patches = jnp.stack(cols, axis=3)               # (N, Ho, Wo, kh*kw, C)
    return patches.reshape(N * Ho * Wo, kh * kw * C), (N, Ho, Wo)


def conv_bn_act(x, w, scale, bias, stride=1, pad=0, relu=True):
    # x: NHWC, w: PyTorch conv layout [Cout, Cin, kh, kw]
    Cout, Cin, kh, kw = w.shape
    if kh == 1 and kw == 1 and stride == 1 and pad == 0:
        N, H, W, C = x.shape
        x2d, out_hw = x.reshape(N * H * W, C), (N, H, W)
    else:
        # TODO(synk): the 7x7 stem keeps a one-shot XLA im2col (only 3 input channels, tiny here);
        # in-kernel stride-2 per-tap accumulation would remove it at large resolutions.
        x2d, out_hw = im2col(x, kh, kw, stride, pad)
    w2d = jnp.transpose(w, (2, 3, 1, 0)).reshape(kh * kw * Cin, Cout)
    y = fused_matmul(x2d, w2d, scale, bias, relu=relu)
    N, Ho, Wo = out_hw
    return y.reshape(N, Ho, Wo, Cout)


def max_pool_3x3_s2_p1(x):  # NHWC, matches nn.MaxPool2d(3, 2, 1)
    # TODO(synk): pooling stays as lax.reduce_window glue (no dedicated Pallas kernel).
    return lax.reduce_window(
        x, -jnp.inf, lax.max,
        window_dimensions=(1, 3, 3, 1),
        window_strides=(1, 2, 2, 1),
        padding=((0, 0), (1, 1), (1, 1), (0, 0)))


def fold_bn(bn, eps=1e-5):
    # TODO(synk): SyncBatchNorm training-mode cross-device batch statistics are not reproduced;
    # inference-mode BN folded into a per-channel affine (scale, bias).
    gamma, beta, mean, var = bn
    scale = gamma * lax.rsqrt(var + eps)
    return scale, beta - mean * scale


# ----------------------------------------------------------------------------
# Deterministic parameter init (synthetic, no .pt/.pth loading)
# ----------------------------------------------------------------------------
def _make_conv(key, cout, cin, kh, kw):
    std = (2.0 / (cin * kh * kw)) ** 0.5
    return jax.random.normal(key, (cout, cin, kh, kw), jnp.float32) * std


def _make_bn(key, c):
    k1, k2, k3, k4 = jax.random.split(key, 4)
    gamma = jax.random.uniform(k1, (c,), jnp.float32, 0.8, 1.2)
    beta = jax.random.normal(k2, (c,), jnp.float32) * 0.05
    mean = jax.random.normal(k3, (c,), jnp.float32) * 0.05
    var = jax.random.uniform(k4, (c,), jnp.float32, 0.8, 1.2)
    return gamma, beta, mean, var


def init_params(key, out_ch=256):
    keys = iter(jax.random.split(key, 64))
    params = {
        "stem_conv": _make_conv(next(keys), 64, 3, 7, 7),
        "stem_bn": _make_bn(next(keys), 64),
    }
    blocks, in_ch, width, exp_ch = [], 64, 64, 256
    for b in range(3):  # resnet50 layer1 = 3 bottleneck blocks
        blk = {
            "conv1": _make_conv(next(keys), width, in_ch, 1, 1), "bn1": _make_bn(next(keys), width),
            "conv2": _make_conv(next(keys), width, width, 3, 3), "bn2": _make_bn(next(keys), width),
            "conv3": _make_conv(next(keys), exp_ch, width, 1, 1), "bn3": _make_bn(next(keys), exp_ch),
        }
        if b == 0:
            blk["down_conv"] = _make_conv(next(keys), exp_ch, in_ch, 1, 1)
            blk["down_bn"] = _make_bn(next(keys), exp_ch)
        blocks.append(blk)
        in_ch = exp_ch
    params["layer1"] = blocks
    params["proj_conv"] = _make_conv(next(keys), out_ch, exp_ch, 1, 1)  # 1x1, bias=False
    params["proj_bn"] = _make_bn(next(keys), out_ch)
    return params


# ----------------------------------------------------------------------------
# Forward pass
# ----------------------------------------------------------------------------
def thick_encoder_forward(params, x_nchw):
    x = jnp.transpose(x_nchw, (0, 2, 3, 1))  # NCHW -> NHWC

    # --- backbone stem ---
    s, b = fold_bn(params["stem_bn"])
    x = conv_bn_act(x, params["stem_conv"], s, b, stride=2, pad=3, relu=True)
    x = max_pool_3x3_s2_p1(x)

    # --- backbone layer1 (features_only index 1, stride 4, 256 channels) ---
    # Each block is ONE fused Pallas kernel (intermediates stay in VMEM).
    for blk in params["layer1"]:
        x = bottleneck_block(x, blk)

    # --- proj head: 1x1 conv (no bias) + BN + ReLU, fused ---
    sp, bp = fold_bn(params["proj_bn"])
    x = conv_bn_act(x, params["proj_conv"], sp, bp, relu=True)

    return jnp.transpose(x, (0, 3, 1, 2))  # NHWC -> NCHW


if __name__ == "__main__":
    key = jax.random.PRNGKey(0)
    k_param, k_input = jax.random.split(key)

    out_ch = 256
    params = init_params(k_param, out_ch=out_ch)

    # Small image input (NCHW like PyTorch): batch=2, 3 channels, 32x32 spatial.
    x = jax.random.normal(k_input, (2, 3, 32, 32), jnp.float32)

    fwd = jax.jit(lambda xx: thick_encoder_forward(params, xx))
    out = fwd(x)
    out = jax.block_until_ready(out)

    # stride-4 feature map: 32 -> 16 (stem conv) -> 8 (maxpool); proj keeps spatial.
    assert out.shape == (2, out_ch, 8, 8), out.shape
    assert jnp.all(jnp.isfinite(out))
    print("KERNEL_OK")
</pallas_src>

<mosaic_0001>
module attributes {stable_mosaic.version = 11 : i64} {
  func.func @_matmul_bn_act_kernel(%arg0: i32, %arg1: i32, %arg2: memref<256x160xbf16, #tpu.memory_space<vmem>>, %arg3: memref<160x64xbf16, #tpu.memory_space<vmem>>, %arg4: memref<1x64xf32, #tpu.memory_space<vmem>>, %arg5: memref<1x64xf32, #tpu.memory_space<vmem>>, %arg6: memref<256x64xf32, #tpu.memory_space<vmem>>) attributes {dimension_semantics = [#tpu.dimension_semantics<parallel>, #tpu.dimension_semantics<parallel>], iteration_bounds = array<i64: 2, 1>, scalar_prefetch = 0 : i64, scratch_operands = 0 : i64, tpu.core_type = #tpu.core_type<tc>, window_params = [{transform_indices = @transform_0, window_bounds = array<i64: 256, 160>}, {transform_indices = @transform_1, window_bounds = array<i64: 160, 64>}, {transform_indices = @transform_2, window_bounds = array<i64: 1, 64>}, {transform_indices = @transform_3, window_bounds = array<i64: 1, 64>}, {transform_indices = @transform_4, window_bounds = array<i64: 256, 64>}]} {
    %c0 = arith.constant 0 : index
    %c0_0 = arith.constant 0 : index
    %0 = vector.load %arg2[%c0, %c0_0] : memref<256x160xbf16, #tpu.memory_space<vmem>>, vector<256x160xbf16>
    %c0_1 = arith.constant 0 : index
    %c0_2 = arith.constant 0 : index
    %1 = vector.load %arg3[%c0_1, %c0_2] : memref<160x64xbf16, #tpu.memory_space<vmem>>, vector<160x64xbf16>
    %cst = arith.constant dense<0.000000e+00> : vector<256x64xf32>
    %2 = tpu.matmul %0, %1, %cst {dimension_numbers = #tpu.dot_dimension_numbers<[1], [0], [0], [1], [0, 0, 1, 1], [], []>} : vector<256x160xbf16>, vector<160x64xbf16>, vector<256x64xf32> -> vector<256x64xf32>
    %c0_3 = arith.constant 0 : index
    %c0_4 = arith.constant 0 : index
    %3 = vector.load %arg4[%c0_3, %c0_4] : memref<1x64xf32, #tpu.memory_space<vmem>>, vector<1x64xf32>
    %4 = vector.broadcast %3 : vector<1x64xf32> to vector<256x64xf32>
    %5 = arith.mulf %2, %4 : vector<256x64xf32>
    %c0_5 = arith.constant 0 : index
    %c0_6 = arith.constant 0 : index
    %6 = vector.load %arg5[%c0_5, %c0_6] : memref<1x64xf32, #tpu.memory_space<vmem>>, vector<1x64xf32>
    %7 = vector.broadcast %6 : vector<1x64xf32> to vector<256x64xf32>
    %8 = arith.addf %5, %7 : vector<256x64xf32>
    %cst_7 = arith.constant 0.000000e+00 : f32
    %9 = vector.broadcast %cst_7 : f32 to vector<256x64xf32>
    %10 = arith.maximumf %8, %9 : vector<256x64xf32>
    %c0_8 = arith.constant 0 : index
    %c0_9 = arith.constant 0 : index
    %11 = vector.load %arg6[%c0_8, %c0_9] : memref<256x64xf32, #tpu.memory_space<vmem>>, vector<256x64xf32>
    tpu.vector_store %arg6[%c0_8, %c0_9], %10 {strides = array<i32>} : memref<256x64xf32, #tpu.memory_space<vmem>>, vector<256x64xf32>,
    return
  }
  func.func @transform_0(%arg0: i32, %arg1: i32) -> (i32, i32) {
    %c0_i32 = arith.constant 0 : i32
    %c0_i32_0 = arith.constant 0 : i32
    return %arg0, %c0_i32 : i32, i32
  }
  func.func @transform_1(%arg0: i32, %arg1: i32) -> (i32, i32) {
    %c0_i32 = arith.constant 0 : i32
    %c0_i32_0 = arith.constant 0 : i32
    return %c0_i32, %arg1 : i32, i32
  }
  func.func @transform_2(%arg0: i32, %arg1: i32) -> (i32, i32) {
    %c0_i32 = arith.constant 0 : i32
    %c0_i32_0 = arith.constant 0 : i32
    return %c0_i32, %arg1 : i32, i32
  }
  func.func @transform_3(%arg0: i32, %arg1: i32) -> (i32, i32) {
    %c0_i32 = arith.constant 0 : i32
    %c0_i32_0 = arith.constant 0 : i32
    return %c0_i32, %arg1 : i32, i32
  }
  func.func @transform_4(%arg0: i32, %arg1: i32) -> (i32, i32) {
    %c0_i32 = arith.constant 0 : i32
    return %arg0, %arg1 : i32, i32
  }
}

module attributes {stable_mosaic.version = 11 : i64} {
  func.func @_bottleneck_kernel(%arg0: i32, %arg1: memref<1x64x64xf32, #tpu.memory_space<vmem>>, %arg2: memref<64x64xbf16, #tpu.memory_space<vmem>>, %arg3: memref<1x64xf32, #tpu.memory_space<vmem>>, %arg4: memref<1x64xf32, #tpu.memory_space<vmem>>, %arg5: memref<3x3x64x64xbf16, #tpu.memory_space<vmem>>, %arg6: memref<1x64xf32, #tpu.memory_space<vmem>>, %arg7: memref<1x64xf32, #tpu.memory_space<vmem>>, %arg8: memref<64x256xbf16, #tpu.memory_space<vmem>>, %arg9: memref<1x256xf32, #tpu.memory_space<vmem>>, %arg10: memref<1x256xf32, #tpu.memory_space<vmem>>, %arg11: memref<64x256xbf16, #tpu.memory_space<vmem>>, %arg12: memref<1x256xf32, #tpu.memory_space<vmem>>, %arg13: memref<1x256xf32, #tpu.memory_space<vmem>>, %arg14: memref<1x64x256xf32, #tpu.memory_space<vmem>>, %arg15: memref<10x24x64xf32, #tpu.memory_space<vmem>>) attributes {dimension_semantics = [#tpu.dimension_semantics<parallel>], iteration_bounds = array<i64: 2>, scalar_prefetch = 0 : i64, scratch_operands = 1 : i64, tpu.core_type = #tpu.core_type<tc>, window_params = [{transform_indices = @transform_0, window_bounds = array<i64: 1, 64, 64>}, {pipeline_mode = #tpu.pipeline_mode<synchronous>, transform_indices = @transform_1, window_bounds = array<i64: 64, 64>}, {pipeline_mode = #tpu.pipeline_mode<synchronous>, transform_indices = @transform_2, window_bounds = array<i64: 1, 64>}, {pipeline_mode = #tpu.pipeline_mode<synchronous>, transform_indices = @transform_3, window_bounds = array<i64: 1, 64>}, {pipeline_mode = #tpu.pipeline_mode<synchronous>, transform_indices = @transform_4, window_bounds = array<i64: 3, 3, 64, 64>}, {pipeline_mode = #tpu.pipeline_mode<synchronous>, transform_indices = @transform_5, window_bounds = array<i64: 1, 64>}, {pipeline_mode = #tpu.pipeline_mode<synchronous>, transform_indices = @transform_6, window_bounds = array<i64: 1, 64>}, {pipeline_mode = #tpu.pipeline_mode<synchronous>, transform_indices = @transform_7, window_bounds = array<i64: 64, 256>}, {pipeline_mode = #tpu.pipeline_mode<synchronous>, transform_indices = @transform_8, window_bounds = array<i64: 1, 256>}, {pipeline_mode = #tpu.pipeline_mode<synchronous>, transform_indices = @transform_9, window_bounds = array<i64: 1, 256>}, {pipeline_mode = #tpu.pipeline_mode<synchronous>, transform_indices = @transform_10, window_bounds = array<i64: 64, 256>}, {pipeline_mode = #tpu.pipeline_mode<synchronous>, transform_indices = @transform_11, window_bounds = array<i64: 1, 256>}, {pipeline_mode = #tpu.pipeline_mode<synchronous>, transform_indices = @transform_12, window_bounds = array<i64: 1, 256>}, {transform_indices = @transform_13, window_bounds = array<i64: 1, 64, 256>}]} {
    %c0 = arith.constant 0 : index
    %c0_0 = arith.constant 0 : index
    %c0_1 = arith.constant 0 : index
    %0 = vector.load %arg1[%c0, %c0_0, %c0_1] : memref<1x64x64xf32, #tpu.memory_space<vmem>>, vector<1x64x64xf32>
    %1 = vector.shape_cast %0 : vector<1x64x64xf32> to vector<64x64xf32>
    %2 = arith.truncf %1 : vector<64x64xf32> to vector<64x64xbf16>
    %c0_2 = arith.constant 0 : index
    %c0_3 = arith.constant 0 : index
    %3 = vector.load %arg2[%c0_2, %c0_3] : memref<64x64xbf16, #tpu.memory_space<vmem>>, vector<64x64xbf16>
    %cst = arith.constant dense<0.000000e+00> : vector<64x64xf32>
    %4 = tpu.matmul %2, %3, %cst {dimension_numbers = #tpu.dot_dimension_numbers<[1], [0], [0], [1], [0, 0, 1, 1], [], []>} : vector<64x64xbf16>, vector<64x64xbf16>, vector<64x64xf32> -> vector<64x64xf32>
    %c0_4 = arith.constant 0 : index
    %c0_5 = arith.constant 0 : index
    %5 = vector.load %arg3[%c0_4, %c0_5] : memref<1x64xf32, #tpu.memory_space<vmem>>, vector<1x64xf32>
    %6 = vector.broadcast %5 : vector<1x64xf32> to vector<64x64xf32>
    %7 = arith.mulf %4, %6 : vector<64x64xf32>
    %c0_6 = arith.constant 0 : index
    %c0_7 = arith.constant 0 : index
    %8 = vector.load %arg4[%c0_6, %c0_7] : memref<1x64xf32, #tpu.memory_space<vmem>>, vector<1x64xf32>
    %9 = vector.broadcast %8 : vector<1x64xf32> to vector<64x64xf32>
    %10 = arith.addf %7, %9 : vector<64x64xf32>
    %cst_8 = arith.constant 0.000000e+00 : f32
    %11 = vector.broadcast %cst_8 : f32 to vector<64x64xf32>
    %12 = arith.maximumf %10, %11 : vector<64x64xf32>
    %cst_9 = arith.constant 0.000000e+00 : f32
    %13 = vector.broadcast %cst_9 : f32 to vector<10x24x64xf32>
    %c0_10 = arith.constant 0 : index
    %c0_11 = arith.constant 0 : index
    %c0_12 = arith.constant 0 : index
    %14 = vector.load %arg15[%c0_10, %c0_11, %c0_12] : memref<10x24x64xf32, #tpu.memory_space<vmem>>, vector<10x24x64xf32>
    tpu.vector_store %arg15[%c0_10, %c0_11, %c0_12], %13 {strides = array<i32>} : memref<10x24x64xf32, #tpu.memory_space<vmem>>, vector<10x24x64xf32>,
    %15 = vector.extract_strided_slice %12 {offsets = [0, 0], sizes = [8, 64], strides = [1, 1]} : vector<64x64xf32> to vector<8x64xf32>
    %c1 = arith.constant 1 : index
    %c8 = arith.constant 8 : index
    %c0_13 = arith.constant 0 : index
    %16 = vector.load %arg15[%c1, %c8, %c0_13] : memref<10x24x64xf32, #tpu.memory_space<vmem>>, vector<1x8x64xf32>
    %17 = vector.shape_cast %16 : vector<1x8x64xf32> to vector<8x64xf32>
    %18 = vector.shape_cast %15 : vector<8x64xf32> to vector<1x8x64xf32>
    tpu.vector_store %arg15[%c1, %c8, %c0_13], %18 {strides = array<i32>} : memref<10x24x64xf32, #tpu.memory_space<vmem>>, vector<1x8x64xf32>,
    %19 = vector.extract_strided_slice %12 {offsets = [8, 0], sizes = [8, 64], strides = [1, 1]} : vector<64x64xf32> to vector<8x64xf32>
    %c2 = arith.constant 2 : index
    %c8_14 = arith.constant 8 : index
    %c0_15 = arith.constant 0 : index
    %20 = vector.load %arg15[%c2, %c8_14, %c0_15] : memref<10x24x64xf32, #tpu.memory_space<vmem>>, vector<1x8x64xf32>
    %21 = vector.shape_cast %20 : vector<1x8x64xf32> to vector<8x64xf32>
    %22 = vector.shape_cast %19 : vector<8x64xf32> to vector<1x8x64xf32>
    tpu.vector_store %arg15[%c2, %c8_14, %c0_15], %22 {strides = array<i32>} : memref<10x24x64xf32, #tpu.memory_space<vmem>>, vector<1x8x64xf32>,
    %23 = vector.extract_strided_slice %12 {offsets = [16, 0], sizes = [8, 64], strides = [1, 1]} : vector<64x64xf32> to vector<8x64xf32>
    %c3 = arith.constant 3 : index
    %c8_16 = arith.constant 8 : index
    %c0_17 = arith.constant 0 : index
    %24 = vector.load %arg15[%c3, %c8_16, %c0_17] : memref<10x24x64xf32, #tpu.memory_space<vmem>>, vector<1x8x64xf32>
    %25 = vector.shape_cast %24 : vector<1x8x64xf32> to vector<8x64xf32>
    %26 = vector.shape_cast %23 : vector<8x64xf32> to vector<1x8x64xf32>
    tpu.vector_store %arg15[%c3, %c8_16, %c0_17], %26 {strides = array<i32>} : memref<10x24x64xf32, #tpu.memory_space<vmem>>, vector<1x8x64xf32>,
    %27 = vector.extract_strided_slice %12 {offsets = [24, 0], sizes = [8, 64], strides = [1, 1]} : vector<64x64xf32> to vector<8x64xf32>
    %c4 = arith.constant 4 : index
    %c8_18 = arith.constant 8 : index
    %c0_19 = arith.constant 0 : index
    %28 = vector.load %arg15[%c4, %c8_18, %c0_19] : memref<10x24x64xf32, #tpu.memory_space<vmem>>, vector<1x8x64xf32>
    %29 = vector.shape_cast %28 : vector<1x8x64xf32> to vector<8x64xf32>
    %30 = vector.shape_cast %27 : vector<8x64xf32> to vector<1x8x64xf32>
    tpu.vector_store %arg15[%c4, %c8_18, %c0_19], %30 {strides = array<i32>} : memref<10x24x64xf32, #tpu.memory_space<vmem>>, vector<1x8x64xf32>,
    %31 = vector.extract_strided_slice %12 {offsets = [32, 0], sizes = [8, 64], strides = [1, 1]} : vector<64x64xf32> to vector<8x64xf32>
    %c5 = arith.constant 5 : index
    %c8_20 = arith.constant 8 : index
    %c0_21 = arith.constant 0 : index
    %32 = vector.load %arg15[%c5, %c8_20, %c0_21] : memref<10x24x64xf32, #tpu.memory_space<vmem>>, vector<1x8x64xf32>
    %33 = vector.shape_cast %32 : vector<1x8x64xf32> to vector<8x64xf32>
    %34 = vector.shape_cast %31 : vector<8x64xf32> to vector<1x8x64xf32>
    tpu.vector_store %arg15[%c5, %c8_20, %c0_21], %34 {strides = array<i32>} : memref<10x24x64xf32, #tpu.memory_space<vmem>>, vector<1x8x64xf32>,
    %35 = vector.extract_strided_slice %12 {offsets = [40, 0], sizes = [8, 64], strides = [1, 1]} : vector<64x64xf32> to vector<8x64xf32>
    %c6 = arith.constant 6 : index
    %c8_22 = arith.constant 8 : index
    %c0_23 = arith.constant 0 : index
    %36 = vector.load %arg15[%c6, %c8_22, %c0_23] : memref<10x24x64xf32, #tpu.memory_space<vmem>>, vector<1x8x64xf32>
    %37 = vector.shape_cast %36 : vector<1x8x64xf32> to vector<8x64xf32>
    %38 = vector.shape_cast %35 : vector<8x64xf32> to vector<1x8x64xf32>
    tpu.vector_store %arg15[%c6, %c8_22, %c0_23], %38 {strides = array<i32>} : memref<10x24x64xf32, #tpu.memory_space<vmem>>, vector<1x8x64xf32>,
    %39 = vector.extract_strided_slice %12 {offsets = [48, 0], sizes = [8, 64], strides = [1, 1]} : vector<64x64xf32> to vector<8x64xf32>
    %c7 = arith.constant 7 : index
    %c8_24 = arith.constant 8 : index
    %c0_25 = arith.constant 0 : index
    %40 = vector.load %arg15[%c7, %c8_24, %c0_25] : memref<10x24x64xf32, #tpu.memory_space<vmem>>, vector<1x8x64xf32>
    %41 = vector.shape_cast %40 : vector<1x8x64xf32> to vector<8x64xf32>
    %42 = vector.shape_cast %39 : vector<8x64xf32> to vector<1x8x64xf32>
    tpu.vector_store %arg15[%c7, %c8_24, %c0_25], %42 {strides = array<i32>} : memref<10x24x64xf32, #tpu.memory_space<vmem>>, vector<1x8x64xf32>,
    %43 = vector.extract_strided_slice %12 {offsets = [56, 0], sizes = [8, 64], strides = [1, 1]} : vector<64x64xf32> to vector<8x64xf32>
    %c8_26 = arith.constant 8 : index
    %c8_27 = arith.constant 8 : index
    %c0_28 = arith.constant 0 : index
    %44 = vector.load %arg15[%c8_26, %c8_27, %c0_28] : memref<10x24x64xf32, #tpu.memory_space<vmem>>, vector<1x8x64xf32>
    %45 = vector.shape_cast %44 : vector<1x8x64xf32> to vector<8x64xf32>
    %46 = vector.shape_cast %43 : vector<8x64xf32> to vector<1x8x64xf32>
    tpu.vector_store %arg15[%c8_26, %c8_27, %c0_28], %46 {strides = array<i32>} : memref<10x24x64xf32, #tpu.memory_space<vmem>>, vector<1x8x64xf32>,
    %cst_29 = arith.constant 0.000000e+00 : f32
    %47 = vector.broadcast %cst_29 : f32 to vector<64x64xf32>
    %c0_30 = arith.constant 0 : index
    %c7_31 = arith.constant 7 : index
    %c0_32 = arith.constant 0 : index
    %48 = vector.load %arg15[%c0_30, %c7_31, %c0_32] : memref<10x24x64xf32, #tpu.memory_space<vmem>>, vector<8x8x64xf32>
    %49 = vector.shape_cast %48 : vector<8x8x64xf32> to vector<64x64xf32>
    %50 = arith.truncf %49 : vector<64x64xf32> to vector<64x64xbf16>
    %c0_33 = arith.constant 0 : index
    %c0_34 = arith.constant 0 : index
    %c0_35 = arith.constant 0 : index
    %c0_36 = arith.constant 0 : index
    %51 = vector.load %arg5[%c0_33, %c0_34, %c0_35, %c0_36] : memref<3x3x64x64xbf16, #tpu.memory_space<vmem>>, vector<1x1x64x64xbf16>
    %52 = vector.shape_cast %51 : vector<1x1x64x64xbf16> to vector<64x64xbf16>
    %cst_37 = arith.constant dense<0.000000e+00> : vector<64x64xf32>
    %53 = tpu.matmul %50, %52, %cst_37 {dimension_numbers = #tpu.dot_dimension_numbers<[1], [0], [0], [1], [0, 0, 1, 1], [], []>} : vector<64x64xbf16>, vector<64x64xbf16>, vector<64x64xf32> -> vector<64x64xf32>
    %54 = arith.addf %47, %53 : vector<64x64xf32>
    %c0_38 = arith.constant 0 : index
    %c8_39 = arith.constant 8 : index
    %c0_40 = arith.constant 0 : index
    %55 = vector.load %arg15[%c0_38, %c8_39, %c0_40] : memref<10x24x64xf32, #tpu.memory_space<vmem>>, vector<8x8x64xf32>
    %56 = vector.shape_cast %55 : vector<8x8x64xf32> to vector<64x64xf32>
    %57 = arith.truncf %56 : vector<64x64xf32> to vector<64x64xbf16>
    %c0_41 = arith.constant 0 : index
    %c1_42 = arith.constant 1 : index
    %c0_43 = arith.constant 0 : index
    %c0_44 = arith.constant 0 : index
    %58 = vector.load %arg5[%c0_41, %c1_42, %c0_43, %c0_44] : memref<3x3x64x64xbf16, #tpu.memory_space<vmem>>, vector<1x1x64x64xbf16>
    %59 = vector.shape_cast %58 : vector<1x1x64x64xbf16> to vector<64x64xbf16>
    %cst_45 = arith.constant dense<0.000000e+00> : vector<64x64xf32>
    %60 = tpu.matmul %57, %59, %cst_45 {dimension_numbers = #tpu.dot_dimension_numbers<[1], [0], [0], [1], [0, 0, 1, 1], [], []>} : vector<64x64xbf16>, vector<64x64xbf16>, vector<64x64xf32> -> vector<64x64xf32>
    %61 = arith.addf %54, %60 : vector<64x64xf32>
    %c0_46 = arith.constant 0 : index
    %c9 = arith.constant 9 : index
    %c0_47 = arith.constant 0 : index
    %62 = vector.load %arg15[%c0_46, %c9, %c0_47] : memref<10x24x64xf32, #tpu.memory_space<vmem>>, vector<8x8x64xf32>
    %63 = vector.shape_cast %62 : vector<8x8x64xf32> to vector<64x64xf32>
    %64 = arith.truncf %63 : vector<64x64xf32> to vector<64x64xbf16>
    %c0_48 = arith.constant 0 : index
    %c2_49 = arith.constant 2 : index
    %c0_50 = arith.constant 0 : index
    %c0_51 = arith.constant 0 : index
    %65 = vector.load %arg5[%c0_48, %c2_49, %c0_50, %c0_51] : memref<3x3x64x64xbf16, #tpu.memory_space<vmem>>, vector<1x1x64x64xbf16>
    %66 = vector.shape_cast %65 : vector<1x1x64x64xbf16> to vector<64x64xbf16>
    %cst_52 = arith.constant dense<0.000000e+00> : vector<64x64xf32>
    %67 = tpu.matmul %64, %66, %cst_52 {dimension_numbers = #tpu.dot_dimension_numbers<[1], [0], [0], [1], [0, 0, 1, 1], [], []>} : vector<64x64xbf16>, vector<64x64xbf16>, vector<64x64xf32> -> vector<64x64xf32>
    %68 = arith.addf %61, %67 : vector<64x64xf32>
    %c1_53 = arith.constant 1 : index
    %c7_54 = arith.constant 7 : index
    %c0_55 = arith.constant 0 : index
    %69 = vector.load %arg15[%c1_53, %c7_54, %c0_55] : memref<10x24x64xf32, #tpu.memory_space<vmem>>, vector<8x8x64xf32>
    %70 = vector.shape_cast %69 : vector<8x8x64xf32> to vector<64x64xf32>
    %71 = arith.truncf %70 : vector<64x64xf32> to vector<64x64xbf16>
    %c1_56 = arith.constant 1 : index
    %c0_57 = arith.constant 0 : index
    %c0_58 = arith.constant 0 : index
    %c0_59 = arith.constant 0 : index
    %72 = vector.load %arg5[%c1_56, %c0_57, %c0_58, %c0_59] : memref<3x3x64x64xbf16, #tpu.memory_space<vmem>>, vector<1x1x64x64xbf16>
    %73 = vector.shape_cast %72 : vector<1x1x64x64xbf16> to vector<64x64xbf16>
    %cst_60 = arith.constant dense<0.000000e+00> : vector<64x64xf32>
    %74 = tpu.matmul %71, %73, %cst_60 {dimension_numbers = #tpu.dot_dimension_numbers<[1], [0], [0], [1], [0, 0, 1, 1], [], []>} : vector<64x64xbf16>, vector<64x64xbf16>, vector<64x64xf32> -> vector<64x64xf32>
    %75 = arith.addf %68, %74 : vector<64x64xf32>
    %c1_61 = arith.constant 1 : index
    %c8_62 = arith.constant 8 : index
    %c0_63 = arith.constant 0 : index
    %76 = vector.load %arg15[%c1_61, %c8_62, %c0_63] : memref<10x24x64xf32, #tpu.memory_space<vmem>>, vector<8x8x64xf32>
    %77 = vector.shape_cast %76 : vector<8x8x64xf32> to vector<64x64xf32>
    %78 = arith.truncf %77 : vector<64x64xf32> to vector<64x64xbf16>
    %c1_64 = arith.constant 1 : index
    %c1_65 = arith.constant 1 : index
    %c0_66 = arith.constant 0 : index
    %c0_67 = arith.constant 0 : index
    %79 = vector.load %arg5[%c1_64, %c1_65, %c0_66, %c0_67] : memref<3x3x64x64xbf16, #tpu.memory_space<vmem>>, vector<1x1x64x64xbf16>
    %80 = vector.shape_cast %79 : vector<1x1x64x64xbf16> to vector<64x64xbf16>
    %cst_68 = arith.constant dense<0.000000e+00> : vector<64x64xf32>
    %81 = tpu.matmul %78, %80, %cst_68 {dimension_numbers = #tpu.dot_dimension_numbers<[1], [0], [0], [1], [0, 0, 1, 1], [], []>} : vector<64x64xbf16>, vector<64x64xbf16>, vector<64x64xf32> -> vector<64x64xf32>
    %82 = arith.addf %75, %81 : vector<64x64xf32>
    %c1_69 = arith.constant 1 : index
    %c9_70 = arith.constant 9 : index
    %c0_71 = arith.constant 0 : index
    %83 = vector.load %arg15[%c1_69, %c9_70, %c0_71] : memref<10x24x64xf32, #tpu.memory_space<vmem>>, vector<8x8x64xf32>
    %84 = vector.shape_cast %83 : vector<8x8x64xf32> to vector<64x64xf32>
    %85 = arith.truncf %84 : vector<64x64xf32> to vector<64x64xbf16>
    %c1_72 = arith.constant 1 : index
    %c2_73 = arith.constant 2 : index
    %c0_74 = arith.constant 0 : index
    %c0_75 = arith.constant 0 : index
    %86 = vector.load %arg5[%c1_72, %c2_73, %c0_74, %c0_75] : memref<3x3x64x64xbf16, #tpu.memory_space<vmem>>, vector<1x1x64x64xbf16>
    %87 = vector.shape_cast %86 : vector<1x1x64x64xbf16> to vector<64x64xbf16>
    %cst_76 = arith.constant dense<0.000000e+00> : vector<64x64xf32>
    %88 = tpu.matmul %85, %87, %cst_76 {dimension_numbers = #tpu.dot_dimension_numbers<[1], [0], [0], [1], [0, 0, 1, 1], [], []>} : vector<64x64xbf16>, vector<64x64xbf16>, vector<64x64xf32> -> vector<64x64xf32>
    %89 = arith.addf %82, %88 : vector<64x64xf32>
    %c2_77 = arith.constant 2 : index
    %c7_78 = arith.constant 7 : index
    %c0_79 = arith.constant 0 : index
    %90 = vector.load %arg15[%c2_77, %c7_78, %c0_79] : memref<10x24x64xf32, #tpu.memory_space<vmem>>, vector<8x8x64xf32>
    %91 = vector.shape_cast %90 : vector<8x8x64xf32> to vector<64x64xf32>
    %92 = arith.truncf %91 : vector<64x64xf32> to vector<64x64xbf16>
    %c2_80 = arith.constant 2 : index
    %c0_81 = arith.constant 0 : index
    %c0_82 = arith.constant 0 : index
    %c0_83 = arith.constant 0 : index
    %93 = vector.load %arg5[%c2_80, %c0_81, %c0_82, %c0_83] : memref<3x3x64x64xbf16, #tpu.memory_space<vmem>>, vector<1x1x64x64xbf16>
    %94 = vector.shape_cast %93 : vector<1x1x64x64xbf16> to vector<64x64xbf16>
    %cst_84 = arith.constant dense<0.000000e+00> : vector<64x64xf32>
    %95 = tpu.matmul %92, %94, %cst_84 {dimension_numbers = #tpu.dot_dimension_numbers<[1], [0], [0], [1], [0, 0, 1, 1], [], []>} : vector<64x64xbf16>, vector<64x64xbf16>, vector<64x64xf32> -> vector<64x64xf32>
    %96 = arith.addf %89, %95 : vector<64x64xf32>
    %c2_85 = arith.constant 2 : index
    %c8_86 = arith.constant 8 : index
    %c0_87 = arith.constant 0 : index
    %97 = vector.load %arg15[%c2_85, %c8_86, %c0_87] : memref<10x24x64xf32, #tpu.memory_space<vmem>>, vector<8x8x64xf32>
    %98 = vector.shape_cast %97 : vector<8x8x64xf32> to vector<64x64xf32>
    %99 = arith.truncf %98 : vector<64x64xf32> to vector<64x64xbf16>
    %c2_88 = arith.constant 2 : index
    %c1_89 = arith.constant 1 : index
    %c0_90 = arith.constant 0 : index
    %c0_91 = arith.constant 0 : index
    %100 = vector.load %arg5[%c2_88, %c1_89, %c0_90, %c0_91] : memref<3x3x64x64xbf16, #tpu.memory_space<vmem>>, vector<1x1x64x64xbf16>
    %101 = vector.shape_cast %100 : vector<1x1x64x64xbf16> to vector<64x64xbf16>
    %cst_92 = arith.constant dense<0.000000e+00> : vector<64x64xf32>
    %102 = tpu.matmul %99, %101, %cst_92 {dimension_numbers = #tpu.dot_dimension_numbers<[1], [0], [0], [1], [0, 0, 1, 1], [], []>} : vector<64x64xbf16>, vector<64x64xbf16>, vector<64x64xf32> -> vector<64x64xf32>
    %103 = arith.addf %96, %102 : vector<64x64xf32>
    %c2_93 = arith.constant 2 : index
    %c9_94 = arith.constant 9 : index
    %c0_95 = arith.constant 0 : index
    %104 = vector.load %arg15[%c2_93, %c9_94, %c0_95] : memref<10x24x64xf32, #tpu.memory_space<vmem>>, vector<8x8x64xf32>
    %105 = vector.shape_cast %104 : vector<8x8x64xf32> to vector<64x64xf32>
    %106 = arith.truncf %105 : vector<64x64xf32> to vector<64x64xbf16>
    %c2_96 = arith.constant 2 : index
    %c2_97 = arith.constant 2 : index
    %c0_98 = arith.constant 0 : index
    %c0_99 = arith.constant 0 : index
    %107 = vector.load %arg5[%c2_96, %c2_97, %c0_98, %c0_99] : memref<3x3x64x64xbf16, #tpu.memory_space<vmem>>, vector<1x1x64x64xbf16>
    %108 = vector.shape_cast %107 : vector<1x1x64x64xbf16> to vector<64x64xbf16>
    %cst_100 = arith.constant dense<0.000000e+00> : vector<64x64xf32>
    %109 = tpu.matmul %106, %108, %cst_100 {dimension_numbers = #tpu.dot_dimension_numbers<[1], [0], [0], [1], [0, 0, 1, 1], [], []>} : vector<64x64xbf16>, vector<64x64xbf16>, vector<64x64xf32> -> vector<64x64xf32>
    %110 = arith.addf %103, %109 : vector<64x64xf32>
    %c0_101 = arith.constant 0 : index
    %c0_102 = arith.constant 0 : index
    %111 = vector.load %arg6[%c0_101, %c0_102] : memref<1x64xf32, #tpu.memory_space<vmem>>, vector<1x64xf32>
    %112 = vector.broadcast %111 : vector<1x64xf32> to vector<64x64xf32>
    %113 = arith.mulf %110, %112 : vector<64x64xf32>
    %c0_103 = arith.constant 0 : index
    %c0_104 = arith.constant 0 : index
    %114 = vector.load %arg7[%c0_103, %c0_104] : memref<1x64xf32, #tpu.memory_space<vmem>>, vector<1x64xf32>
    %115 = vector.broadcast %114 : vector<1x64xf32> to vector<64x64xf32>
    %116 = arith.addf %113, %115 : vector<64x64xf32>
    %cst_105 = arith.constant 0.000000e+00 : f32
    %117 = vector.broadcast %cst_105 : f32 to vector<64x64xf32>
    %118 = arith.maximumf %116, %117 : vector<64x64xf32>
    %119 = arith.truncf %118 : vector<64x64xf32> to vector<64x64xbf16>
    %c0_106 = arith.constant 0 : index
    %c0_107 = arith.constant 0 : index
    %120 = vector.load %arg8[%c0_106, %c0_107] : memref<64x256xbf16, #tpu.memory_space<vmem>>, vector<64x256xbf16>
    %cst_108 = arith.constant dense<0.000000e+00> : vector<64x256xf32>
    %121 = tpu.matmul %119, %120, %cst_108 {dimension_numbers = #tpu.dot_dimension_numbers<[1], [0], [0], [1], [0, 0, 1, 1], [], []>} : vector<64x64xbf16>, vector<64x256xbf16>, vector<64x256xf32> -> vector<64x256xf32>
    %c0_109 = arith.constant 0 : index
    %c0_110 = arith.constant 0 : index
    %122 = vector.load %arg9[%c0_109, %c0_110] : memref<1x256xf32, #tpu.memory_space<vmem>>, vector<1x256xf32>
    %123 = vector.broadcast %122 : vector<1x256xf32> to vector<64x256xf32>
    %124 = arith.mulf %121, %123 : vector<64x256xf32>
    %c0_111 = arith.constant 0 : index
    %c0_112 = arith.constant 0 : index
    %125 = vector.load %arg10[%c0_111, %c0_112] : memref<1x256xf32, #tpu.memory_space<vmem>>, vector<1x256xf32>
    %126 = vector.broadcast %125 : vector<1x256xf32> to vector<64x256xf32>
    %127 = arith.addf %124, %126 : vector<64x256xf32>
    %c0_113 = arith.constant 0 : index
    %c0_114 = arith.constant 0 : index
    %128 = vector.load %arg11[%c0_113, %c0_114] : memref<64x256xbf16, #tpu.memory_space<vmem>>, vector<64x256xbf16>
    %cst_115 = arith.constant dense<0.000000e+00> : vector<64x256xf32>
    %129 = tpu.matmul %2, %128, %cst_115 {dimension_numbers = #tpu.dot_dimension_numbers<[1], [0], [0], [1], [0, 0, 1, 1], [], []>} : vector<64x64xbf16>, vector<64x256xbf16>, vector<64x256xf32> -> vector<64x256xf32>
    %c0_116 = arith.constant 0 : index
    %c0_117 = arith.constant 0 : index
    %130 = vector.load %arg12[%c0_116, %c0_117] : memref<1x256xf32, #tpu.memory_space<vmem>>, vector<1x256xf32>
    %131 = vector.broadcast %130 : vector<1x256xf32> to vector<64x256xf32>
    %132 = arith.mulf %129, %131 : vector<64x256xf32>
    %c0_118 = arith.constant 0 : index
    %c0_119 = arith.constant 0 : index
    %133 = vector.load %arg13[%c0_118, %c0_119] : memref<1x256xf32, #tpu.memory_space<vmem>>, vector<1x256xf32>
    %134 = vector.broadcast %133 : vector<1x256xf32> to vector<64x256xf32>
    %135 = arith.addf %132, %134 : vector<64x256xf32>
    %136 = arith.addf %127, %135 : vector<64x256xf32>
    %cst_120 = arith.constant 0.000000e+00 : f32
    %137 = vector.broadcast %cst_120 : f32 to vector<64x256xf32>
    %138 = arith.maximumf %136, %137 : vector<64x256xf32>
    %c0_121 = arith.constant 0 : index
    %c0_122 = arith.constant 0 : index
    %c0_123 = arith.constant 0 : index
    %139 = vector.load %arg14[%c0_121, %c0_122, %c0_123] : memref<1x64x256xf32, #tpu.memory_space<vmem>>, vector<1x64x256xf32>
    %140 = vector.shape_cast %139 : vector<1x64x256xf32> to vector<64x256xf32>
    %141 = vector.shape_cast %138 : vector<64x256xf32> to vector<1x64x256xf32>
    tpu.vector_store %arg14[%c0_121, %c0_122, %c0_123], %141 {strides = array<i32>} : memref<1x64x256xf32, #tpu.memory_space<vmem>>, vector<1x64x256xf32>,
    return
  }
  func.func @transform_0(%arg0: i32) -> (i32, i32, i32) {
    %c0_i32 = arith.constant 0 : i32
    %c0_i32_0 = arith.constant 0 : i32
    %c0_i32_1 = arith.constant 0 : i32
    return %arg0, %c0_i32, %c0_i32_0 : i32, i32, i32
  }
  func.func @transform_1(%arg0: i32) -> (i32, i32) {
    %c0_i32 = arith.constant 0 : i32
    %c0_i32_0 = arith.constant 0 : i32
    %c0_i32_1 = arith.constant 0 : i32
    return %c0_i32, %c0_i32_0 : i32, i32
  }
  func.func @transform_2(%arg0: i32) -> (i32, i32) {
    %c0_i32 = arith.constant 0 : i32
    %c0_i32_0 = arith.constant 0 : i32
    %c0_i32_1 = arith.constant 0 : i32
    return %c0_i32, %c0_i32_0 : i32, i32
  }
  func.func @transform_3(%arg0: i32) -> (i32, i32) {
    %c0_i32 = arith.constant 0 : i32
    %c0_i32_0 = arith.constant 0 : i32
    %c0_i32_1 = arith.constant 0 : i32
    return %c0_i32, %c0_i32_0 : i32, i32
  }
  func.func @transform_4(%arg0: i32) -> (i32, i32, i32, i32) {
    %c0_i32 = arith.constant 0 : i32
    %c0_i32_0 = arith.constant 0 : i32
    %c0_i32_1 = arith.constant 0 : i32
    %c0_i32_2 = arith.constant 0 : i32
    %c0_i32_3 = arith.constant 0 : i32
    return %c0_i32, %c0_i32_0, %c0_i32_1, %c0_i32_2 : i32, i32, i32, i32
  }
  func.func @transform_5(%arg0: i32) -> (i32, i32) {
    %c0_i32 = arith.constant 0 : i32
    %c0_i32_0 = arith.constant 0 : i32
    %c0_i32_1 = arith.constant 0 : i32
    return %c0_i32, %c0_i32_0 : i32, i32
  }
  func.func @transform_6(%arg0: i32) -> (i32, i32) {
    %c0_i32 = arith.constant 0 : i32
    %c0_i32_0 = arith.constant 0 : i32
    %c0_i32_1 = arith.constant 0 : i32
    return %c0_i32, %c0_i32_0 : i32, i32
  }
  func.func @transform_7(%arg0: i32) -> (i32, i32) {
    %c0_i32 = arith.constant 0 : i32
    %c0_i32_0 = arith.constant 0 : i32
    %c0_i32_1 = arith.constant 0 : i32
    return %c0_i32, %c0_i32_0 : i32, i32
  }
  func.func @transform_8(%arg0: i32) -> (i32, i32) {
    %c0_i32 = arith.constant 0 : i32
    %c0_i32_0 = arith.constant 0 : i32
    %c0_i32_1 = arith.constant 0 : i32
    return %c0_i32, %c0_i32_0 : i32, i32
  }
  func.func @transform_9(%arg0: i32) -> (i32, i32) {
    %c0_i32 = arith.constant 0 : i32
    %c0_i32_0 = arith.constant 0 : i32
    %c0_i32_1 = arith.constant 0 : i32
    return %c0_i32, %c0_i32_0 : i32, i32
  }
  func.func @transform_10(%arg0: i32) -> (i32, i32) {
    %c0_i32 = arith.constant 0 : i32
    %c0_i32_0 = arith.constant 0 : i32
    %c0_i32_1 = arith.constant 0 : i32
    return %c0_i32, %c0_i32_0 : i32, i32
  }
  func.func @transform_11(%arg0: i32) -> (i32, i32) {
    %c0_i32 = arith.constant 0 : i32
    %c0_i32_0 = arith.constant 0 : i32
    %c0_i32_1 = arith.constant 0 : i32
    return %c0_i32, %c0_i32_0 : i32, i32
  }
  func.func @transform_12(%arg0: i32) -> (i32, i32) {
    %c0_i32 = arith.constant 0 : i32
    %c0_i32_0 = arith.constant 0 : i32
    %c0_i32_1 = arith.constant 0 : i32
    return %c0_i32, %c0_i32_0 : i32, i32
  }
  func.func @transform_13(%arg0: i32) -> (i32, i32, i32) {
    %c0_i32 = arith.constant 0 : i32
    %c0_i32_0 = arith.constant 0 : i32
    %c0_i32_1 = arith.constant 0 : i32
    return %arg0, %c0_i32, %c0_i32_0 : i32, i32, i32
  }
}

module attributes {stable_mosaic.version = 11 : i64} {
  func.func @_bottleneck_kernel(%arg0: i32, %arg1: memref<1x64x256xf32, #tpu.memory_space<vmem>>, %arg2: memref<256x64xbf16, #tpu.memory_space<vmem>>, %arg3: memref<1x64xf32, #tpu.memory_space<vmem>>, %arg4: memref<1x64xf32, #tpu.memory_space<vmem>>, %arg5: memref<3x3x64x64xbf16, #tpu.memory_space<vmem>>, %arg6: memref<1x64xf32, #tpu.memory_space<vmem>>, %arg7: memref<1x64xf32, #tpu.memory_space<vmem>>, %arg8: memref<64x256xbf16, #tpu.memory_space<vmem>>, %arg9: memref<1x256xf32, #tpu.memory_space<vmem>>, %arg10: memref<1x256xf32, #tpu.memory_space<vmem>>, %arg11: memref<1x64x256xf32, #tpu.memory_space<vmem>>, %arg12: memref<10x24x64xf32, #tpu.memory_space<vmem>>) attributes {dimension_semantics = [#tpu.dimension_semantics<parallel>], iteration_bounds = array<i64: 2>, scalar_prefetch = 0 : i64, scratch_operands = 1 : i64, tpu.core_type = #tpu.core_type<tc>, window_params = [{transform_indices = @transform_0, window_bounds = array<i64: 1, 64, 256>}, {pipeline_mode = #tpu.pipeline_mode<synchronous>, transform_indices = @transform_1, window_bounds = array<i64: 256, 64>}, {pipeline_mode = #tpu.pipeline_mode<synchronous>, transform_indices = @transform_2, window_bounds = array<i64: 1, 64>}, {pipeline_mode = #tpu.pipeline_mode<synchronous>, transform_indices = @transform_3, window_bounds = array<i64: 1, 64>}, {pipeline_mode = #tpu.pipeline_mode<synchronous>, transform_indices = @transform_4, window_bounds = array<i64: 3, 3, 64, 64>}, {pipeline_mode = #tpu.pipeline_mode<synchronous>, transform_indices = @transform_5, window_bounds = array<i64: 1, 64>}, {pipeline_mode = #tpu.pipeline_mode<synchronous>, transform_indices = @transform_6, window_bounds = array<i64: 1, 64>}, {pipeline_mode = #tpu.pipeline_mode<synchronous>, transform_indices = @transform_7, window_bounds = array<i64: 64, 256>}, {pipeline_mode = #tpu.pipeline_mode<synchronous>, transform_indices = @transform_8, window_bounds = array<i64: 1, 256>}, {pipeline_mode = #tpu.pipeline_mode<synchronous>, transform_indices = @transform_9, window_bounds = array<i64: 1, 256>}, {transform_indices = @transform_10, window_bounds = array<i64: 1, 64, 256>}]} {
    %c0 = arith.constant 0 : index
    %c0_0 = arith.constant 0 : index
    %c0_1 = arith.constant 0 : index
    %0 = vector.load %arg1[%c0, %c0_0, %c0_1] : memref<1x64x256xf32, #tpu.memory_space<vmem>>, vector<1x64x256xf32>
    %1 = vector.shape_cast %0 : vector<1x64x256xf32> to vector<64x256xf32>
    %2 = arith.truncf %1 : vector<64x256xf32> to vector<64x256xbf16>
    %c0_2 = arith.constant 0 : index
    %c0_3 = arith.constant 0 : index
    %3 = vector.load %arg2[%c0_2, %c0_3] : memref<256x64xbf16, #tpu.memory_space<vmem>>, vector<256x64xbf16>
    %cst = arith.constant dense<0.000000e+00> : vector<64x64xf32>
    %4 = tpu.matmul %2, %3, %cst {dimension_numbers = #tpu.dot_dimension_numbers<[1], [0], [0], [1], [0, 0, 1, 1], [], []>} : vector<64x256xbf16>, vector<256x64xbf16>, vector<64x64xf32> -> vector<64x64xf32>
    %c0_4 = arith.constant 0 : index
    %c0_5 = arith.constant 0 : index
    %5 = vector.load %arg3[%c0_4, %c0_5] : memref<1x64xf32, #tpu.memory_space<vmem>>, vector<1x64xf32>
    %6 = vector.broadcast %5 : vector<1x64xf32> to vector<64x64xf32>
    %7 = arith.mulf %4, %6 : vector<64x64xf32>
    %c0_6 = arith.constant 0 : index
    %c0_7 = arith.constant 0 : index
    %8 = vector.load %arg4[%c0_6, %c0_7] : memref<1x64xf32, #tpu.memory_space<vmem>>, vector<1x64xf32>
    %9 = vector.broadcast %8 : vector<1x64xf32> to vector<64x64xf32>
    %10 = arith.addf %7, %9 : vector<64x64xf32>
    %cst_8 = arith.constant 0.000000e+00 : f32
    %11 = vector.broadcast %cst_8 : f32 to vector<64x64xf32>
    %12 = arith.maximumf %10, %11 : vector<64x64xf32>
    %cst_9 = arith.constant 0.000000e+00 : f32
    %13 = vector.broadcast %cst_9 : f32 to vector<10x24x64xf32>
    %c0_10 = arith.constant 0 : index
    %c0_11 = arith.constant 0 : index
    %c0_12 = arith.constant 0 : index
    %14 = vector.load %arg12[%c0_10, %c0_11, %c0_12] : memref<10x24x64xf32, #tpu.memory_space<vmem>>, vector<10x24x64xf32>
    tpu.vector_store %arg12[%c0_10, %c0_11, %c0_12], %13 {strides = array<i32>} : memref<10x24x64xf32, #tpu.memory_space<vmem>>, vector<10x24x64xf32>,
    %15 = vector.extract_strided_slice %12 {offsets = [0, 0], sizes = [8, 64], strides = [1, 1]} : vector<64x64xf32> to vector<8x64xf32>
    %c1 = arith.constant 1 : index
    %c8 = arith.constant 8 : index
    %c0_13 = arith.constant 0 : index
    %16 = vector.load %arg12[%c1, %c8, %c0_13] : memref<10x24x64xf32, #tpu.memory_space<vmem>>, vector<1x8x64xf32>
    %17 = vector.shape_cast %16 : vector<1x8x64xf32> to vector<8x64xf32>
    %18 = vector.shape_cast %15 : vector<8x64xf32> to vector<1x8x64xf32>
    tpu.vector_store %arg12[%c1, %c8, %c0_13], %18 {strides = array<i32>} : memref<10x24x64xf32, #tpu.memory_space<vmem>>, vector<1x8x64xf32>,
    %19 = vector.extract_strided_slice %12 {offsets = [8, 0], sizes = [8, 64], strides = [1, 1]} : vector<64x64xf32> to vector<8x64xf32>
    %c2 = arith.constant 2 : index
    %c8_14 = arith.constant 8 : index
    %c0_15 = arith.constant 0 : index
    %20 = vector.load %arg12[%c2, %c8_14, %c0_15] : memref<10x24x64xf32, #tpu.memory_space<vmem>>, vector<1x8x64xf32>
    %21 = vector.shape_cast %20 : vector<1x8x64xf32> to vector<8x64xf32>
    %22 = vector.shape_cast %19 : vector<8x64xf32> to vector<1x8x64xf32>
    tpu.vector_store %arg12[%c2, %c8_14, %c0_15], %22 {strides = array<i32>} : memref<10x24x64xf32, #tpu.memory_space<vmem>>, vector<1x8x64xf32>,
    %23 = vector.extract_strided_slice %12 {offsets = [16, 0], sizes = [8, 64], strides = [1, 1]} : vector<64x64xf32> to vector<8x64xf32>
    %c3 = arith.constant 3 : index
    %c8_16 = arith.constant 8 : index
    %c0_17 = arith.constant 0 : index
    %24 = vector.load %arg12[%c3, %c8_16, %c0_17] : memref<10x24x64xf32, #tpu.memory_space<vmem>>, vector<1x8x64xf32>
    %25 = vector.shape_cast %24 : vector<1x8x64xf32> to vector<8x64xf32>
    %26 = vector.shape_cast %23 : vector<8x64xf32> to vector<1x8x64xf32>
    tpu.vector_store %arg12[%c3, %c8_16, %c0_17], %26 {strides = array<i32>} : memref<10x24x64xf32, #tpu.memory_space<vmem>>, vector<1x8x64xf32>,
    %27 = vector.extract_strided_slice %12 {offsets = [24, 0], sizes = [8, 64], strides = [1, 1]} : vector<64x64xf32> to vector<8x64xf32>
    %c4 = arith.constant 4 : index
    %c8_18 = arith.constant 8 : index
    %c0_19 = arith.constant 0 : index
    %28 = vector.load %arg12[%c4, %c8_18, %c0_19] : memref<10x24x64xf32, #tpu.memory_space<vmem>>, vector<1x8x64xf32>
    %29 = vector.shape_cast %28 : vector<1x8x64xf32> to vector<8x64xf32>
    %30 = vector.shape_cast %27 : vector<8x64xf32> to vector<1x8x64xf32>
    tpu.vector_store %arg12[%c4, %c8_18, %c0_19], %30 {strides = array<i32>} : memref<10x24x64xf32, #tpu.memory_space<vmem>>, vector<1x8x64xf32>,
    %31 = vector.extract_strided_slice %12 {offsets = [32, 0], sizes = [8, 64], strides = [1, 1]} : vector<64x64xf32> to vector<8x64xf32>
    %c5 = arith.constant 5 : index
    %c8_20 = arith.constant 8 : index
    %c0_21 = arith.constant 0 : index
    %32 = vector.load %arg12[%c5, %c8_20, %c0_21] : memref<10x24x64xf32, #tpu.memory_space<vmem>>, vector<1x8x64xf32>
    %33 = vector.shape_cast %32 : vector<1x8x64xf32> to vector<8x64xf32>
    %34 = vector.shape_cast %31 : vector<8x64xf32> to vector<1x8x64xf32>
    tpu.vector_store %arg12[%c5, %c8_20, %c0_21], %34 {strides = array<i32>} : memref<10x24x64xf32, #tpu.memory_space<vmem>>, vector<1x8x64xf32>,
    %35 = vector.extract_strided_slice %12 {offsets = [40, 0], sizes = [8, 64], strides = [1, 1]} : vector<64x64xf32> to vector<8x64xf32>
    %c6 = arith.constant 6 : index
    %c8_22 = arith.constant 8 : index
    %c0_23 = arith.constant 0 : index
    %36 = vector.load %arg12[%c6, %c8_22, %c0_23] : memref<10x24x64xf32, #tpu.memory_space<vmem>>, vector<1x8x64xf32>
    %37 = vector.shape_cast %36 : vector<1x8x64xf32> to vector<8x64xf32>
    %38 = vector.shape_cast %35 : vector<8x64xf32> to vector<1x8x64xf32>
    tpu.vector_store %arg12[%c6, %c8_22, %c0_23], %38 {strides = array<i32>} : memref<10x24x64xf32, #tpu.memory_space<vmem>>, vector<1x8x64xf32>,
    %39 = vector.extract_strided_slice %12 {offsets = [48, 0], sizes = [8, 64], strides = [1, 1]} : vector<64x64xf32> to vector<8x64xf32>
    %c7 = arith.constant 7 : index
    %c8_24 = arith.constant 8 : index
    %c0_25 = arith.constant 0 : index
    %40 = vector.load %arg12[%c7, %c8_24, %c0_25] : memref<10x24x64xf32, #tpu.memory_space<vmem>>, vector<1x8x64xf32>
    %41 = vector.shape_cast %40 : vector<1x8x64xf32> to vector<8x64xf32>
    %42 = vector.shape_cast %39 : vector<8x64xf32> to vector<1x8x64xf32>
    tpu.vector_store %arg12[%c7, %c8_24, %c0_25], %42 {strides = array<i32>} : memref<10x24x64xf32, #tpu.memory_space<vmem>>, vector<1x8x64xf32>,
    %43 = vector.extract_strided_slice %12 {offsets = [56, 0], sizes = [8, 64], strides = [1, 1]} : vector<64x64xf32> to vector<8x64xf32>
    %c8_26 = arith.constant 8 : index
    %c8_27 = arith.constant 8 : index
    %c0_28 = arith.constant 0 : index
    %44 = vector.load %arg12[%c8_26, %c8_27, %c0_28] : memref<10x24x64xf32, #tpu.memory_space<vmem>>, vector<1x8x64xf32>
    %45 = vector.shape_cast %44 : vector<1x8x64xf32> to vector<8x64xf32>
    %46 = vector.shape_cast %43 : vector<8x64xf32> to vector<1x8x64xf32>
    tpu.vector_store %arg12[%c8_26, %c8_27, %c0_28], %46 {strides = array<i32>} : memref<10x24x64xf32, #tpu.memory_space<vmem>>, vector<1x8x64xf32>,
    %cst_29 = arith.constant 0.000000e+00 : f32
    %47 = vector.broadcast %cst_29 : f32 to vector<64x64xf32>
    %c0_30 = arith.constant 0 : index
    %c7_31 = arith.constant 7 : index
    %c0_32 = arith.constant 0 : index
    %48 = vector.load %arg12[%c0_30, %c7_31, %c0_32] : memref<10x24x64xf32, #tpu.memory_space<vmem>>, vector<8x8x64xf32>
    %49 = vector.shape_cast %48 : vector<8x8x64xf32> to vector<64x64xf32>
    %50 = arith.truncf %49 : vector<64x64xf32> to vector<64x64xbf16>
    %c0_33 = arith.constant 0 : index
    %c0_34 = arith.constant 0 : index
    %c0_35 = arith.constant 0 : index
    %c0_36 = arith.constant 0 : index
    %51 = vector.load %arg5[%c0_33, %c0_34, %c0_35, %c0_36] : memref<3x3x64x64xbf16, #tpu.memory_space<vmem>>, vector<1x1x64x64xbf16>
    %52 = vector.shape_cast %51 : vector<1x1x64x64xbf16> to vector<64x64xbf16>
    %cst_37 = arith.constant dense<0.000000e+00> : vector<64x64xf32>
    %53 = tpu.matmul %50, %52, %cst_37 {dimension_numbers = #tpu.dot_dimension_numbers<[1], [0], [0], [1], [0, 0, 1, 1], [], []>} : vector<64x64xbf16>, vector<64x64xbf16>, vector<64x64xf32> -> vector<64x64xf32>
    %54 = arith.addf %47, %53 : vector<64x64xf32>
    %c0_38 = arith.constant 0 : index
    %c8_39 = arith.constant 8 : index
    %c0_40 = arith.constant 0 : index
    %55 = vector.load %arg12[%c0_38, %c8_39, %c0_40] : memref<10x24x64xf32, #tpu.memory_space<vmem>>, vector<8x8x64xf32>
    %56 = vector.shape_cast %55 : vector<8x8x64xf32> to vector<64x64xf32>
    %57 = arith.truncf %56 : vector<64x64xf32> to vector<64x64xbf16>
    %c0_41 = arith.constant 0 : index
    %c1_42 = arith.constant 1 : index
    %c0_43 = arith.constant 0 : index
    %c0_44 = arith.constant 0 : index
    %58 = vector.load %arg5[%c0_41, %c1_42, %c0_43, %c0_44] : memref<3x3x64x64xbf16, #tpu.memory_space<vmem>>, vector<1x1x64x64xbf16>
    %59 = vector.shape_cast %58 : vector<1x1x64x64xbf16> to vector<64x64xbf16>
    %cst_45 = arith.constant dense<0.000000e+00> : vector<64x64xf32>
    %60 = tpu.matmul %57, %59, %cst_45 {dimension_numbers = #tpu.dot_dimension_numbers<[1], [0], [0], [1], [0, 0, 1, 1], [], []>} : vector<64x64xbf16>, vector<64x64xbf16>, vector<64x64xf32> -> vector<64x64xf32>
    %61 = arith.addf %54, %60 : vector<64x64xf32>
    %c0_46 = arith.constant 0 : index
    %c9 = arith.constant 9 : index
    %c0_47 = arith.constant 0 : index
    %62 = vector.load %arg12[%c0_46, %c9, %c0_47] : memref<10x24x64xf32, #tpu.memory_space<vmem>>, vector<8x8x64xf32>
    %63 = vector.shape_cast %62 : vector<8x8x64xf32> to vector<64x64xf32>
    %64 = arith.truncf %63 : vector<64x64xf32> to vector<64x64xbf16>
    %c0_48 = arith.constant 0 : index
    %c2_49 = arith.constant 2 : index
    %c0_50 = arith.constant 0 : index
    %c0_51 = arith.constant 0 : index
    %65 = vector.load %arg5[%c0_48, %c2_49, %c0_50, %c0_51] : memref<3x3x64x64xbf16, #tpu.memory_space<vmem>>, vector<1x1x64x64xbf16>
    %66 = vector.shape_cast %65 : vector<1x1x64x64xbf16> to vector<64x64xbf16>
    %cst_52 = arith.constant dense<0.000000e+00> : vector<64x64xf32>
    %67 = tpu.matmul %64, %66, %cst_52 {dimension_numbers = #tpu.dot_dimension_numbers<[1], [0], [0], [1], [0, 0, 1, 1], [], []>} : vector<64x64xbf16>, vector<64x64xbf16>, vector<64x64xf32> -> vector<64x64xf32>
    %68 = arith.addf %61, %67 : vector<64x64xf32>
    %c1_53 = arith.constant 1 : index
    %c7_54 = arith.constant 7 : index
    %c0_55 = arith.constant 0 : index
    %69 = vector.load %arg12[%c1_53, %c7_54, %c0_55] : memref<10x24x64xf32, #tpu.memory_space<vmem>>, vector<8x8x64xf32>
    %70 = vector.shape_cast %69 : vector<8x8x64xf32> to vector<64x64xf32>
    %71 = arith.truncf %70 : vector<64x64xf32> to vector<64x64xbf16>
    %c1_56 = arith.constant 1 : index
    %c0_57 = arith.constant 0 : index
    %c0_58 = arith.constant 0 : index
    %c0_59 = arith.constant 0 : index
    %72 = vector.load %arg5[%c1_56, %c0_57, %c0_58, %c0_59] : memref<3x3x64x64xbf16, #tpu.memory_space<vmem>>, vector<1x1x64x64xbf16>
    %73 = vector.shape_cast %72 : vector<1x1x64x64xbf16> to vector<64x64xbf16>
    %cst_60 = arith.constant dense<0.000000e+00> : vector<64x64xf32>
    %74 = tpu.matmul %71, %73, %cst_60 {dimension_numbers = #tpu.dot_dimension_numbers<[1], [0], [0], [1], [0, 0, 1, 1], [], []>} : vector<64x64xbf16>, vector<64x64xbf16>, vector<64x64xf32> -> vector<64x64xf32>
    %75 = arith.addf %68, %74 : vector<64x64xf32>
    %c1_61 = arith.constant 1 : index
    %c8_62 = arith.constant 8 : index
    %c0_63 = arith.constant 0 : index
    %76 = vector.load %arg12[%c1_61, %c8_62, %c0_63] : memref<10x24x64xf32, #tpu.memory_space<vmem>>, vector<8x8x64xf32>
    %77 = vector.shape_cast %76 : vector<8x8x64xf32> to vector<64x64xf32>
    %78 = arith.truncf %77 : vector<64x64xf32> to vector<64x64xbf16>
    %c1_64 = arith.constant 1 : index
    %c1_65 = arith.constant 1 : index
    %c0_66 = arith.constant 0 : index
    %c0_67 = arith.constant 0 : index
    %79 = vector.load %arg5[%c1_64, %c1_65, %c0_66, %c0_67] : memref<3x3x64x64xbf16, #tpu.memory_space<vmem>>, vector<1x1x64x64xbf16>
    %80 = vector.shape_cast %79 : vector<1x1x64x64xbf16> to vector<64x64xbf16>
    %cst_68 = arith.constant dense<0.000000e+00> : vector<64x64xf32>
    %81 = tpu.matmul %78, %80, %cst_68 {dimension_numbers = #tpu.dot_dimension_numbers<[1], [0], [0], [1], [0, 0, 1, 1], [], []>} : vector<64x64xbf16>, vector<64x64xbf16>, vector<64x64xf32> -> vector<64x64xf32>
    %82 = arith.addf %75, %81 : vector<64x64xf32>
    %c1_69 = arith.constant 1 : index
    %c9_70 = arith.constant 9 : index
    %c0_71 = arith.constant 0 : index
    %83 = vector.load %arg12[%c1_69, %c9_70, %c0_71] : memref<10x24x64xf32, #tpu.memory_space<vmem>>, vector<8x8x64xf32>
    %84 = vector.shape_cast %83 : vector<8x8x64xf32> to vector<64x64xf32>
    %85 = arith.truncf %84 : vector<64x64xf32> to vector<64x64xbf16>
    %c1_72 = arith.constant 1 : index
    %c2_73 = arith.constant 2 : index
    %c0_74 = arith.constant 0 : index
    %c0_75 = arith.constant 0 : index
    %86 = vector.load %arg5[%c1_72, %c2_73, %c0_74, %c0_75] : memref<3x3x64x64xbf16, #tpu.memory_space<vmem>>, vector<1x1x64x64xbf16>
    %87 = vector.shape_cast %86 : vector<1x1x64x64xbf16> to vector<64x64xbf16>
    %cst_76 = arith.constant dense<0.000000e+00> : vector<64x64xf32>
    %88 = tpu.matmul %85, %87, %cst_76 {dimension_numbers = #tpu.dot_dimension_numbers<[1], [0], [0], [1], [0, 0, 1, 1], [], []>} : vector<64x64xbf16>, vector<64x64xbf16>, vector<64x64xf32> -> vector<64x64xf32>
    %89 = arith.addf %82, %88 : vector<64x64xf32>
    %c2_77 = arith.constant 2 : index
    %c7_78 = arith.constant 7 : index
    %c0_79 = arith.constant 0 : index
    %90 = vector.load %arg12[%c2_77, %c7_78, %c0_79] : memref<10x24x64xf32, #tpu.memory_space<vmem>>, vector<8x8x64xf32>
    %91 = vector.shape_cast %90 : vector<8x8x64xf32> to vector<64x64xf32>
    %92 = arith.truncf %91 : vector<64x64xf32> to vector<64x64xbf16>
    %c2_80 = arith.constant 2 : index
    %c0_81 = arith.constant 0 : index
    %c0_82 = arith.constant 0 : index
    %c0_83 = arith.constant 0 : index
    %93 = vector.load %arg5[%c2_80, %c0_81, %c0_82, %c0_83] : memref<3x3x64x64xbf16, #tpu.memory_space<vmem>>, vector<1x1x64x64xbf16>
    %94 = vector.shape_cast %93 : vector<1x1x64x64xbf16> to vector<64x64xbf16>
    %cst_84 = arith.constant dense<0.000000e+00> : vector<64x64xf32>
    %95 = tpu.matmul %92, %94, %cst_84 {dimension_numbers = #tpu.dot_dimension_numbers<[1], [0], [0], [1], [0, 0, 1, 1], [], []>} : vector<64x64xbf16>, vector<64x64xbf16>, vector<64x64xf32> -> vector<64x64xf32>
    %96 = arith.addf %89, %95 : vector<64x64xf32>
    %c2_85 = arith.constant 2 : index
    %c8_86 = arith.constant 8 : index
    %c0_87 = arith.constant 0 : index
    %97 = vector.load %arg12[%c2_85, %c8_86, %c0_87] : memref<10x24x64xf32, #tpu.memory_space<vmem>>, vector<8x8x64xf32>
    %98 = vector.shape_cast %97 : vector<8x8x64xf32> to vector<64x64xf32>
    %99 = arith.truncf %98 : vector<64x64xf32> to vector<64x64xbf16>
    %c2_88 = arith.constant 2 : index
    %c1_89 = arith.constant 1 : index
    %c0_90 = arith.constant 0 : index
    %c0_91 = arith.constant 0 : index
    %100 = vector.load %arg5[%c2_88, %c1_89, %c0_90, %c0_91] : memref<3x3x64x64xbf16, #tpu.memory_space<vmem>>, vector<1x1x64x64xbf16>
    %101 = vector.shape_cast %100 : vector<1x1x64x64xbf16> to vector<64x64xbf16>
    %cst_92 = arith.constant dense<0.000000e+00> : vector<64x64xf32>
    %102 = tpu.matmul %99, %101, %cst_92 {dimension_numbers = #tpu.dot_dimension_numbers<[1], [0], [0], [1], [0, 0, 1, 1], [], []>} : vector<64x64xbf16>, vector<64x64xbf16>, vector<64x64xf32> -> vector<64x64xf32>
    %103 = arith.addf %96, %102 : vector<64x64xf32>
    %c2_93 = arith.constant 2 : index
    %c9_94 = arith.constant 9 : index
    %c0_95 = arith.constant 0 : index
    %104 = vector.load %arg12[%c2_93, %c9_94, %c0_95] : memref<10x24x64xf32, #tpu.memory_space<vmem>>, vector<8x8x64xf32>
    %105 = vector.shape_cast %104 : vector<8x8x64xf32> to vector<64x64xf32>
    %106 = arith.truncf %105 : vector<64x64xf32> to vector<64x64xbf16>
    %c2_96 = arith.constant 2 : index
    %c2_97 = arith.constant 2 : index
    %c0_98 = arith.constant 0 : index
    %c0_99 = arith.constant 0 : index
    %107 = vector.load %arg5[%c2_96, %c2_97, %c0_98, %c0_99] : memref<3x3x64x64xbf16, #tpu.memory_space<vmem>>, vector<1x1x64x64xbf16>
    %108 = vector.shape_cast %107 : vector<1x1x64x64xbf16> to vector<64x64xbf16>
    %cst_100 = arith.constant dense<0.000000e+00> : vector<64x64xf32>
    %109 = tpu.matmul %106, %108, %cst_100 {dimension_numbers = #tpu.dot_dimension_numbers<[1], [0], [0], [1], [0, 0, 1, 1], [], []>} : vector<64x64xbf16>, vector<64x64xbf16>, vector<64x64xf32> -> vector<64x64xf32>
    %110 = arith.addf %103, %109 : vector<64x64xf32>
    %c0_101 = arith.constant 0 : index
    %c0_102 = arith.constant 0 : index
    %111 = vector.load %arg6[%c0_101, %c0_102] : memref<1x64xf32, #tpu.memory_space<vmem>>, vector<1x64xf32>
    %112 = vector.broadcast %111 : vector<1x64xf32> to vector<64x64xf32>
    %113 = arith.mulf %110, %112 : vector<64x64xf32>
    %c0_103 = arith.constant 0 : index
    %c0_104 = arith.constant 0 : index
    %114 = vector.load %arg7[%c0_103, %c0_104] : memref<1x64xf32, #tpu.memory_space<vmem>>, vector<1x64xf32>
    %115 = vector.broadcast %114 : vector<1x64xf32> to vector<64x64xf32>
    %116 = arith.addf %113, %115 : vector<64x64xf32>
    %cst_105 = arith.constant 0.000000e+00 : f32
    %117 = vector.broadcast %cst_105 : f32 to vector<64x64xf32>
    %118 = arith.maximumf %116, %117 : vector<64x64xf32>
    %119 = arith.truncf %118 : vector<64x64xf32> to vector<64x64xbf16>
    %c0_106 = arith.constant 0 : index
    %c0_107 = arith.constant 0 : index
    %120 = vector.load %arg8[%c0_106, %c0_107] : memref<64x256xbf16, #tpu.memory_space<vmem>>, vector<64x256xbf16>
    %cst_108 = arith.constant dense<0.000000e+00> : vector<64x256xf32>
    %121 = tpu.matmul %119, %120, %cst_108 {dimension_numbers = #tpu.dot_dimension_numbers<[1], [0], [0], [1], [0, 0, 1, 1], [], []>} : vector<64x64xbf16>, vector<64x256xbf16>, vector<64x256xf32> -> vector<64x256xf32>
    %c0_109 = arith.constant 0 : index
    %c0_110 = arith.constant 0 : index
    %122 = vector.load %arg9[%c0_109, %c0_110] : memref<1x256xf32, #tpu.memory_space<vmem>>, vector<1x256xf32>
    %123 = vector.broadcast %122 : vector<1x256xf32> to vector<64x256xf32>
    %124 = arith.mulf %121, %123 : vector<64x256xf32>
    %c0_111 = arith.constant 0 : index
    %c0_112 = arith.constant 0 : index
    %125 = vector.load %arg10[%c0_111, %c0_112] : memref<1x256xf32, #tpu.memory_space<vmem>>, vector<1x256xf32>
    %126 = vector.broadcast %125 : vector<1x256xf32> to vector<64x256xf32>
    %127 = arith.addf %124, %126 : vector<64x256xf32>
    %128 = arith.addf %127, %1 : vector<64x256xf32>
    %cst_113 = arith.constant 0.000000e+00 : f32
    %129 = vector.broadcast %cst_113 : f32 to vector<64x256xf32>
    %130 = arith.maximumf %128, %129 : vector<64x256xf32>
    %c0_114 = arith.constant 0 : index
    %c0_115 = arith.constant 0 : index
    %c0_116 = arith.constant 0 : index
    %131 = vector.load %arg11[%c0_114, %c0_115, %c0_116] : memref<1x64x256xf32, #tpu.memory_space<vmem>>, vector<1x64x256xf32>
    %132 = vector.shape_cast %131 : vector<1x64x256xf32> to vector<64x256xf32>
    %133 = vector.shape_cast %130 : vector<64x256xf32> to vector<1x64x256xf32>
    tpu.vector_store %arg11[%c0_114, %c0_115, %c0_116], %133 {strides = array<i32>} : memref<1x64x256xf32, #tpu.memory_space<vmem>>, vector<1x64x256xf32>,
    return
  }
  func.func @transform_0(%arg0: i32) -> (i32, i32, i32) {
    %c0_i32 = arith.constant 0 : i32
    %c0_i32_0 = arith.constant 0 : i32
    %c0_i32_1 = arith.constant 0 : i32
    return %arg0, %c0_i32, %c0_i32_0 : i32, i32, i32
  }
  func.func @transform_1(%arg0: i32) -> (i32, i32) {
    %c0_i32 = arith.constant 0 : i32
    %c0_i32_0 = arith.constant 0 : i32
    %c0_i32_1 = arith.constant 0 : i32
    return %c0_i32, %c0_i32_0 : i32, i32
  }
  func.func @transform_2(%arg0: i32) -> (i32, i32) {
    %c0_i32 = arith.constant 0 : i32
    %c0_i32_0 = arith.constant 0 : i32
    %c0_i32_1 = arith.constant 0 : i32
    return %c0_i32, %c0_i32_0 : i32, i32
  }
  func.func @transform_3(%arg0: i32) -> (i32, i32) {
    %c0_i32 = arith.constant 0 : i32
    %c0_i32_0 = arith.constant 0 : i32
    %c0_i32_1 = arith.constant 0 : i32
    return %c0_i32, %c0_i32_0 : i32, i32
  }
  func.func @transform_4(%arg0: i32) -> (i32, i32, i32, i32) {
    %c0_i32 = arith.constant 0 : i32
    %c0_i32_0 = arith.constant 0 : i32
    %c0_i32_1 = arith.constant 0 : i32
    %c0_i32_2 = arith.constant 0 : i32
    %c0_i32_3 = arith.constant 0 : i32
    return %c0_i32, %c0_i32_0, %c0_i32_1, %c0_i32_2 : i32, i32, i32, i32
  }
  func.func @transform_5(%arg0: i32) -> (i32, i32) {
    %c0_i32 = arith.constant 0 : i32
    %c0_i32_0 = arith.constant 0 : i32
    %c0_i32_1 = arith.constant 0 : i32
    return %c0_i32, %c0_i32_0 : i32, i32
  }
  func.func @transform_6(%arg0: i32) -> (i32, i32) {
    %c0_i32 = arith.constant 0 : i32
    %c0_i32_0 = arith.constant 0 : i32
    %c0_i32_1 = arith.constant 0 : i32
    return %c0_i32, %c0_i32_0 : i32, i32
  }
  func.func @transform_7(%arg0: i32) -> (i32, i32) {
    %c0_i32 = arith.constant 0 : i32
    %c0_i32_0 = arith.constant 0 : i32
    %c0_i32_1 = arith.constant 0 : i32
    return %c0_i32, %c0_i32_0 : i32, i32
  }
  func.func @transform_8(%arg0: i32) -> (i32, i32) {
    %c0_i32 = arith.constant 0 : i32
    %c0_i32_0 = arith.constant 0 : i32
    %c0_i32_1 = arith.constant 0 : i32
    return %c0_i32, %c0_i32_0 : i32, i32
  }
  func.func @transform_9(%arg0: i32) -> (i32, i32) {
    %c0_i32 = arith.constant 0 : i32
    %c0_i32_0 = arith.constant 0 : i32
    %c0_i32_1 = arith.constant 0 : i32
    return %c0_i32, %c0_i32_0 : i32, i32
  }
  func.func @transform_10(%arg0: i32) -> (i32, i32, i32) {
    %c0_i32 = arith.constant 0 : i32
    %c0_i32_0 = arith.constant 0 : i32
    %c0_i32_1 = arith.constant 0 : i32
    return %arg0, %c0_i32, %c0_i32_0 : i32, i32, i32
  }
}

module attributes {stable_mosaic.version = 11 : i64} {
  func.func @_matmul_bn_act_kernel(%arg0: i32, %arg1: i32, %arg2: memref<128x256xbf16, #tpu.memory_space<vmem>>, %arg3: memref<256x128xbf16, #tpu.memory_space<vmem>>, %arg4: memref<1x128xf32, #tpu.memory_space<vmem>>, %arg5: memref<1x128xf32, #tpu.memory_space<vmem>>, %arg6: memref<128x128xf32, #tpu.memory_space<vmem>>) attributes {dimension_semantics = [#tpu.dimension_semantics<parallel>, #tpu.dimension_semantics<parallel>], iteration_bounds = array<i64: 1, 2>, scalar_prefetch = 0 : i64, scratch_operands = 0 : i64, tpu.core_type = #tpu.core_type<tc>, window_params = [{transform_indices = @transform_0, window_bounds = array<i64: 128, 256>}, {transform_indices = @transform_1, window_bounds = array<i64: 256, 128>}, {transform_indices = @transform_2, window_bounds = array<i64: 1, 128>}, {transform_indices = @transform_3, window_bounds = array<i64: 1, 128>}, {transform_indices = @transform_4, window_bounds = array<i64: 128, 128>}]} {
    %c0 = arith.constant 0 : index
    %c0_0 = arith.constant 0 : index
    %0 = vector.load %arg2[%c0, %c0_0] : memref<128x256xbf16, #tpu.memory_space<vmem>>, vector<128x256xbf16>
    %c0_1 = arith.constant 0 : index
    %c0_2 = arith.constant 0 : index
    %1 = vector.load %arg3[%c0_1, %c0_2] : memref<256x128xbf16, #tpu.memory_space<vmem>>, vector<256x128xbf16>
    %cst = arith.constant dense<0.000000e+00> : vector<128x128xf32>
    %2 = tpu.matmul %0, %1, %cst {dimension_numbers = #tpu.dot_dimension_numbers<[1], [0], [0], [1], [0, 0, 1, 1], [], []>} : vector<128x256xbf16>, vector<256x128xbf16>, vector<128x128xf32> -> vector<128x128xf32>
    %c0_3 = arith.constant 0 : index
    %c0_4 = arith.constant 0 : index
    %3 = vector.load %arg4[%c0_3, %c0_4] : memref<1x128xf32, #tpu.memory_space<vmem>>, vector<1x128xf32>
    %4 = vector.broadcast %3 : vector<1x128xf32> to vector<128x128xf32>
    %5 = arith.mulf %2, %4 : vector<128x128xf32>
    %c0_5 = arith.constant 0 : index
    %c0_6 = arith.constant 0 : index
    %6 = vector.load %arg5[%c0_5, %c0_6] : memref<1x128xf32, #tpu.memory_space<vmem>>, vector<1x128xf32>
    %7 = vector.broadcast %6 : vector<1x128xf32> to vector<128x128xf32>
    %8 = arith.addf %5, %7 : vector<128x128xf32>
    %cst_7 = arith.constant 0.000000e+00 : f32
    %9 = vector.broadcast %cst_7 : f32 to vector<128x128xf32>
    %10 = arith.maximumf %8, %9 : vector<128x128xf32>
    %c0_8 = arith.constant 0 : index
    %c0_9 = arith.constant 0 : index
    %11 = vector.load %arg6[%c0_8, %c0_9] : memref<128x128xf32, #tpu.memory_space<vmem>>, vector<128x128xf32>
    tpu.vector_store %arg6[%c0_8, %c0_9], %10 {strides = array<i32>} : memref<128x128xf32, #tpu.memory_space<vmem>>, vector<128x128xf32>,
    return
  }
  func.func @transform_0(%arg0: i32, %arg1: i32) -> (i32, i32) {
    %c0_i32 = arith.constant 0 : i32
    %c0_i32_0 = arith.constant 0 : i32
    return %arg0, %c0_i32 : i32, i32
  }
  func.func @transform_1(%arg0: i32, %arg1: i32) -> (i32, i32) {
    %c0_i32 = arith.constant 0 : i32
    %c0_i32_0 = arith.constant 0 : i32
    return %c0_i32, %arg1 : i32, i32
  }
  func.func @transform_2(%arg0: i32, %arg1: i32) -> (i32, i32) {
    %c0_i32 = arith.constant 0 : i32
    %c0_i32_0 = arith.constant 0 : i32
    return %c0_i32, %arg1 : i32, i32
  }
  func.func @transform_3(%arg0: i32, %arg1: i32) -> (i32, i32) {
    %c0_i32 = arith.constant 0 : i32
    %c0_i32_0 = arith.constant 0 : i32
    return %c0_i32, %arg1 : i32, i32
  }
  func.func @transform_4(%arg0: i32, %arg1: i32) -> (i32, i32) {
    %c0_i32 = arith.constant 0 : i32
    return %arg0, %arg1 : i32, i32
  }
}

</mosaic_0001>

<bundles_post_ra>
// kernel: _lambda_.5
= control target key start
LH: loop header
LB: loop body
LE: loop exit
PB: predicated region body
PF: predicated region fallthrough
CT: control target
= control target key end

     0   :  { %s1222_s15 = smov 0   ;;  %s1224_s16 = smov 0   ;;  %s1482_s0 = inlined_call_operand.vmem [shape: bf16[512,160], index: 0, kind: input, shape index: {}]   ;;  %s1483_s1 = inlined_call_operand.vmem [shape: bf16[160,64], index: 1, kind: input, shape index: {}]   ;;  %s1484_s2 = inlined_call_operand.vmem [shape: f32[1,64], index: 2, kind: input, shape index: {}]   ;;  %s1485_s3 = inlined_call_operand.vmem [shape: f32[1,64], index: 3, kind: input, shape index: {}]   ;;  %s1486_s4 = inlined_call_operand.vmem [shape: f32[512,64], index: 4, kind: output, shape index: {}]  }
   0x1   :  { %s1226_s17 = smov 0  }
   0x2 LB: > { %s26_s18 = sadd.s32 1, %s1190_s16  ;;  %p1000_p0 = scmp.ge.s32.totalorder %s1194_s17, 1  ;;  %s1194_s17 = sphi %s1226_s17, %s14_s17   ;;  %s1190_s16 = sphi %s1224_s16, %s1488_s16   ;;  %s1186_s15 = sphi %s1222_s15, %s1487_s15  }
   0x3   : > { %p28_p1 = scmp.ge.s32.totalorder %s26_s18, 2  ;;  %p203_p2 = scmp.lt.s32.totalorder %s1194_s17, 3 }
   0x5   : > { %s1490_s18 = smov (%p28_p1, %s26_s18), 0  ;;  %p204_p3 = pnand %p1000_p0, %p203_p2 }
   0x6   : > { %v1114_v0 = vld [vmem:[%s1483_s1] sm:$0xff] (!%p204_p3)   ;;  %v1196_v1 = vmov (!%p204_p3), 0   ;;  %s1001_s21 = sshll.u32 (!%p204_p3), %s1186_s15, 5  ;;  %v1115_v2 = vld [vmem:[%s1483_s1 + $0x8] sm:$0xff] (!%p204_p3)   ;;  %v1116_v3 = vld [vmem:[%s1483_s1 + $0x10] sm:$0xff] (!%p204_p3)   ;;  %vm526_vm0 = vcmask (!%p204_p3), 261120  }
   0x7   : > { %207 = sbr.rel (%p204_p3) target bundleno = 324 (0x144), region = 36  ;;  %575 = vmatprep.subr.bf16.mxu0 (!%p204_p3), %v1196_v1  ;;  %1069 = vmatprep.subr.bf16.mxu1 (!%p204_p3), %v1196_v1  ;;  %p244_p4 = scmp.lt.s32.totalorder (!%p204_p3), %s1001_s21, 63  ;;  %v1117_v4 = vld [vmem:[%s1483_s1 + $0x18] sm:$0xff] (!%p204_p3)   ;;  %v1118_v7 = vld [vmem:[%s1483_s1 + $0x20] sm:$0xff] (!%p204_p3)   ;;  %v1119_v8 = vld [vmem:[%s1483_s1 + $0x28] sm:$0xff] (!%p204_p3)   ;;  %vm846_vm1 = vcmask (!%p204_p3), 523264  }
   0x8   : > { %576 = vmatpush1.bf16.msra.mxu0 (!%p204_p3), %v1114_v0  ;;  %1079 = vmatpush1.bf16.msra.mxu1 (!%p204_p3), %v1114_v0  ;;  %v1120_v9 = vld [vmem:[%s1483_s1 + $0x30] sm:$0xff] (!%p204_p3)   ;;  %v1121_v10 = vld [vmem:[%s1483_s1 + $0x38] sm:$0xff] (!%p204_p3)   ;;  %v1122_v11 = vld [vmem:[%s1483_s1 + $0x40] sm:$0xff] (!%p204_p3)  }
   0x9   : > { %577 = vmatprep.subr.bf16.mxu0 (!%p204_p3), %v1196_v1  ;;  %1070 = vmatprep.subr.bf16.mxu1 (!%p204_p3), %v1196_v1  ;;  %v1123_v12 = vld [vmem:[%s1483_s1 + $0x48] sm:$0xff] (!%p204_p3)   ;;  %v1331_v43 = vld [vmem:[%s1484_s2] ss:$0 sm:$0xff] (!%p204_p3) }
   0xa   : > { %v1336_v45 = vld [vmem:[%s1485_s3] ss:$0 sm:$0xff] (!%p204_p3) }
   0xc   : > { %578 = vmatpush1.bf16.msra.mxu0 (!%p204_p3), %v1115_v2  ;;  %1080 = vmatpush1.bf16.msra.mxu1 (!%p204_p3), %v1115_v2 }
   0xd   : > { %579 = vmatprep.subr.bf16.mxu0 (!%p204_p3), %v1196_v1  ;;  %1071 = vmatprep.subr.bf16.mxu1 (!%p204_p3), %v1196_v1 }
   0xe   : > { %s1492_s21 = smov (!%p244_p4, %s1001_s21), 63 }
   0xf   : > { %s1068_s26 = sshll.u32 %s1492_s21, 3 }
  0x10   : > { %s1257_s29 = scalar_lea.vmem %s1482_s0, %s1068_s26  ;;  %580 = vmatpush1.bf16.msra.mxu0 %v1116_v3  ;;  %1081 = vmatpush1.bf16.msra.mxu1 %v1116_v3 }
  0x11   : > { %581 = vmatprep.subr.bf16.mxu0 %v1196_v1  ;;  %1072 = vmatprep.subr.bf16.mxu1 %v1196_v1  ;;  %v1126_v5 = vld [vmem:[%s1257_s29 + $0x4] ss:$8 sps:$4 sm:$0xff]   ;;  %v1124_v13 = vld [vmem:[%s1257_s29] ss:$8 sps:$4 sm:$0xff]   ;;  %v1130_v15 = vld [vmem:[%s1257_s29 + $0x14] ss:$8 sps:$4 sm:$0xff]  }
  0x12   : > { %v1129_v6 = vld [vmem:[%s1257_s29 + $0x84] ss:$8 sps:$4 sm:$0xff]   ;;  %1048 = vmatprep.mubr.msk.bf16.mxu0 %vm526_vm0, %v1126_v5  ;;  %v1127_v14 = vld [vmem:[%s1257_s29 + $0x80] ss:$8 sps:$4 sm:$0xff]   ;;  %v1132_v16 = vld [vmem:[%s1257_s29 + $0x94] ss:$8 sps:$4 sm:$0xff]  }
  0x13   : > { %1056 = vmatprep.mubr.msk.bf16.mxu1 %vm526_vm0, %v1129_v6  ;;  %v1134_v17 = vld [vmem:[%s1257_s29 + $0x10] ss:$8 sps:$4 sm:$0xff]   ;;  %v1136_v19 = vld [vmem:[%s1257_s29 + $0x24] ss:$8 sps:$4 sm:$0xff]   ;;  %v1140_v21 = vld [vmem:[%s1257_s29 + $0x20] ss:$8 sps:$4 sm:$0xff]  }
  0x14   : > { %582 = vmatpush1.bf16.msra.mxu0 %v1117_v4  ;;  %1082 = vmatpush1.bf16.msra.mxu1 %v1117_v4  ;;  %v1135_v18 = vld [vmem:[%s1257_s29 + $0x90] ss:$8 sps:$4 sm:$0xff]   ;;  %v1138_v20 = vld [vmem:[%s1257_s29 + $0xa4] ss:$8 sps:$4 sm:$0xff]   ;;  %v1141_v22 = vld [vmem:[%s1257_s29 + $0xa0] ss:$8 sps:$4 sm:$0xff]  }
  0x15   : > { %583 = vmatprep.subr.bf16.mxu0 %v1196_v1  ;;  %1073 = vmatprep.subr.bf16.mxu1 %v1196_v1  ;;  %v1142_v23 = vld [vmem:[%s1257_s29 + $0x34] ss:$8 sps:$4 sm:$0xff]   ;;  %v1146_v25 = vld [vmem:[%s1257_s29 + $0x30] ss:$8 sps:$4 sm:$0xff]   ;;  %v1148_v27 = vld [vmem:[%s1257_s29 + $0x44] ss:$8 sps:$4 sm:$0xff]  }
  0x16   : > { %v1144_v24 = vld [vmem:[%s1257_s29 + $0xb4] ss:$8 sps:$4 sm:$0xff]   ;;  %v1147_v26 = vld [vmem:[%s1257_s29 + $0xb0] ss:$8 sps:$4 sm:$0xff]   ;;  %v1150_v28 = vld [vmem:[%s1257_s29 + $0xc4] ss:$8 sps:$4 sm:$0xff]  }
  0x17   : > { %v1152_v29 = vld [vmem:[%s1257_s29 + $0x40] ss:$8 sps:$4 sm:$0xff]   ;;  %v1154_v31 = vld [vmem:[%s1257_s29 + $0x54] ss:$8 sps:$4 sm:$0xff]   ;;  %v1158_v33 = vld [vmem:[%s1257_s29 + $0x50] ss:$8 sps:$4 sm:$0xff]  }
  0x18   : > { %584 = vmatpush1.bf16.msra.mxu0 %v1118_v7  ;;  %1083 = vmatpush1.bf16.msra.mxu1 %v1118_v7  ;;  %v1153_v30 = vld [vmem:[%s1257_s29 + $0xc0] ss:$8 sps:$4 sm:$0xff]   ;;  %v1156_v32 = vld [vmem:[%s1257_s29 + $0xd4] ss:$8 sps:$4 sm:$0xff]   ;;  %v1159_v34 = vld [vmem:[%s1257_s29 + $0xd0] ss:$8 sps:$4 sm:$0xff]  }
  0x19   : > { %585 = vmatprep.subr.bf16.mxu0 %v1196_v1  ;;  %1074 = vmatprep.subr.bf16.mxu1 %v1196_v1  ;;  %v1160_v35 = vld [vmem:[%s1257_s29 + $0x64] ss:$8 sps:$4 sm:$0xff]   ;;  %v1164_v37 = vld [vmem:[%s1257_s29 + $0x60] ss:$8 sps:$4 sm:$0xff]   ;;  %v1166_v39 = vld [vmem:[%s1257_s29 + $0x74] ss:$8 sps:$4 sm:$0xff]  }
  0x1a   : > { %v1162_v36 = vld [vmem:[%s1257_s29 + $0xe4] ss:$8 sps:$4 sm:$0xff]   ;;  %v1165_v38 = vld [vmem:[%s1257_s29 + $0xe0] ss:$8 sps:$4 sm:$0xff]   ;;  %v1168_v40 = vld [vmem:[%s1257_s29 + $0xf4] ss:$8 sps:$4 sm:$0xff]  }
  0x1b   : > { %v1170_v41 = vld [vmem:[%s1257_s29 + $0x70] ss:$8 sps:$4 sm:$0xff]  }
  0x1c   : > { %586 = vmatpush1.bf16.msra.mxu0 %v1119_v8  ;;  %1084 = vmatpush1.bf16.msra.mxu1 %v1119_v8  ;;  %v1171_v42 = vld [vmem:[%s1257_s29 + $0xf0] ss:$8 sps:$4 sm:$0xff]   ;;  %s1349_s29 = scalar_lea.vmem %s1486_s4, %s1068_s26 }
  0x1d   : > { %587 = vmatprep.subr.bf16.mxu0 %v1196_v1  ;;  %1075 = vmatprep.subr.bf16.mxu1 %v1196_v1 }
  0x20   : > { %588 = vmatpush1.bf16.msra.mxu0 %v1120_v9  ;;  %1085 = vmatpush1.bf16.msra.mxu1 %v1120_v9 }
  0x21   : > { %589 = vmatprep.subr.bf16.mxu0 %v1196_v1  ;;  %1076 = vmatprep.subr.bf16.mxu1 %v1196_v1 }
  0x24   : > { %590 = vmatpush1.bf16.msra.mxu0 %v1121_v10  ;;  %1086 = vmatpush1.bf16.msra.mxu1 %v1121_v10 }
  0x25   : > { %591 = vmatprep.subr.bf16.mxu0 %v1196_v1  ;;  %1077 = vmatprep.subr.bf16.mxu1 %v1196_v1 }
  0x28   : > { %592 = vmatpush1.bf16.msra.mxu0 %v1122_v11  ;;  %1087 = vmatpush1.bf16.msra.mxu1 %v1122_v11 }
  0x29   : > { %593 = vmatprep.subr.bf16.mxu0 %v1196_v1  ;;  %1078 = vmatprep.subr.bf16.mxu1 %v1196_v1 }
  0x2c   : > { %594 = vmatpush1.bf16.msra.mxu0 %v1123_v12  ;;  %1088 = vmatpush1.bf16.msra.mxu1 %v1123_v12 }
  0x2f   : > { %608 = vmatmul.mubr.bf16.vlgmr.msra.gmra.mrb[0].mxu0 %v1124_v13  ;;  %672 = vmatmul.mubr.bf16.vlgmr.msra.gmra.mrb[0].mxu1 %v1127_v14 }
  0x30   : > { %1049 = vmatprep.mubr.msk.bf16.mxu0 %vm526_vm0, %v1130_v15  ;;  %1057 = vmatprep.mubr.msk.bf16.mxu1 %vm526_vm0, %v1132_v16 }
  0x37   : > { %616 = vmatmul.mubr.bf16.gmra.mrb[4].mxu0 %v1134_v17  ;;  %680 = vmatmul.mubr.bf16.gmra.mrb[4].mxu1 %v1135_v18 }
  0x38   : > { %1050 = vmatprep.mubr.msk.bf16.mxu0 %vm526_vm0, %v1136_v19  ;;  %1058 = vmatprep.mubr.msk.bf16.mxu1 %vm526_vm0, %v1138_v20 }
  0x3f   : > { %624 = vmatmul.mubr.bf16.gmra.mrb[8].mxu0 %v1140_v21  ;;  %688 = vmatmul.mubr.bf16.gmra.mrb[8].mxu1 %v1141_v22 }
  0x40   : > { %1051 = vmatprep.mubr.msk.bf16.mxu0 %vm526_vm0, %v1142_v23  ;;  %1059 = vmatprep.mubr.msk.bf16.mxu1 %vm526_vm0, %v1144_v24 }
  0x47   : > { %632 = vmatmul.mubr.bf16.gmra.mrb[12].mxu0 %v1146_v25  ;;  %696 = vmatmul.mubr.bf16.gmra.mrb[12].mxu1 %v1147_v26 }
  0x48   : > { %1052 = vmatprep.mubr.msk.bf16.mxu0 %vm526_vm0, %v1148_v27  ;;  %1060 = vmatprep.mubr.msk.bf16.mxu1 %vm526_vm0, %v1150_v28 }
  0x4f   : > { %640 = vmatmul.mubr.bf16.gmra.mrb[16].mxu0 %v1152_v29  ;;  %704 = vmatmul.mubr.bf16.gmra.mrb[16].mxu1 %v1153_v30 }
  0x50   : > { %1053 = vmatprep.mubr.msk.bf16.mxu0 %vm526_vm0, %v1154_v31  ;;  %1061 = vmatprep.mubr.msk.bf16.mxu1 %vm526_vm0, %v1156_v32 }
  0x57   : > { %648 = vmatmul.mubr.bf16.gmra.mrb[20].mxu0 %v1158_v33  ;;  %712 = vmatmul.mubr.bf16.gmra.mrb[20].mxu1 %v1159_v34 }
  0x58   : > { %1054 = vmatprep.mubr.msk.bf16.mxu0 %vm526_vm0, %v1160_v35  ;;  %1062 = vmatprep.mubr.msk.bf16.mxu1 %vm526_vm0, %v1162_v36 }
  0x5f   : > { %656 = vmatmul.mubr.bf16.gmra.mrb[24].mxu0 %v1164_v37  ;;  %720 = vmatmul.mubr.bf16.gmra.mrb[24].mxu1 %v1165_v38 }
  0x60   : > { %1055 = vmatprep.mubr.msk.bf16.mxu0 %vm526_vm0, %v1166_v39  ;;  %1063 = vmatprep.mubr.msk.bf16.mxu1 %vm526_vm0, %v1168_v40 }
  0x67   : > { %664 = vmatmul.mubr.bf16.gmra.mrb[28].mxu0 %v1170_v41  ;;  %728 = vmatmul.mubr.bf16.gmra.mrb[28].mxu1 %v1171_v42 }
 0x102   : > { %v609_v44 = vpop.f32.mrb[0].mxu0  ;;  %v673_v46 = vpop.f32.mrb[0].mxu1 }
 0x103   : > { %v743_v47 = vmul.f32 %v1331_v43, %v609_v44  ;;  %v759_v48 = vmul.f32 %v1331_v43, %v673_v46  ;;  %v611_v49 = vpop.f32.mrb[1].mxu0  ;;  %v675_v50 = vpop.f32.mrb[1].mxu1 }
 0x104   : > { %v612_v51 = vpop.f32.mrb[2].mxu0  ;;  %v676_v52 = vpop.f32.mrb[2].mxu1 }
 0x105   : > { %v782_v53 = vadd.f32 %v1336_v45, %v743_v47  ;;  %v798_v54 = vadd.f32 %v1336_v45, %v759_v48  ;;  %v744_v55 = vmul.f32 %v1331_v43, %v612_v51  ;;  %v760_v56 = vmul.f32 %v1331_v43, %v676_v52  ;;  %v614_v57 = vpop.f32.mrb[3].mxu0  ;;  %v678_v58 = vpop.f32.mrb[3].mxu1 }
 0x107   : > { %v814_v59 = vmax.f32 %v782_v53, 0.0  ;;  %v830_v60 = vmax.f32 %v798_v54, 0.0  ;;  %v783_v61 = vadd.f32 %v1336_v45, %v744_v55  ;;  %v799_v62 = vadd.f32 %v1336_v45, %v760_v56 }
 0x109   : > { %847 = vst.msk [vmem:[%s1349_s29] sm:$0xff] %vm846_vm1, %v814_v59  ;;  %863 = vst.msk [vmem:[%s1349_s29 + $0x80] sm:$0xff] %vm846_vm1, %v830_v60  ;;  %v815_v63 = vmax.f32 %v783_v61, 0.0  ;;  %v831_v0 = vmax.f32 %v799_v62, 0.0 }
 0x10a   : > { %v617_v1 = vpop.f32.mrb[4].mxu0  ;;  %v681_v2 = vpop.f32.mrb[4].mxu1 }
 0x10b   : > { %848 = vst.msk [vmem:[%s1349_s29 + $0x8] sm:$0xff] %vm846_vm1, %v815_v63  ;;  %864 = vst.msk [vmem:[%s1349_s29 + $0x88] sm:$0xff] %vm846_vm1, %v831_v0  ;;  %v745_v3 = vmul.f32 %v1331_v43, %v617_v1  ;;  %v761_v4 = vmul.f32 %v1331_v43, %v681_v2  ;;  %v619_v5 = vpop.f32.mrb[5].mxu0  ;;  %v683_v6 = vpop.f32.mrb[5].mxu1 }
 0x10c   : > { %v620_v7 = vpop.f32.mrb[6].mxu0  ;;  %v684_v8 = vpop.f32.mrb[6].mxu1 }
 0x10d   : > { %v784_v9 = vadd.f32 %v1336_v45, %v745_v3  ;;  %v800_v10 = vadd.f32 %v1336_v45, %v761_v4  ;;  %v746_v11 = vmul.f32 %v1331_v43, %v620_v7  ;;  %v762_v12 = vmul.f32 %v1331_v43, %v684_v8  ;;  %v622_v13 = vpop.f32.mrb[7].mxu0  ;;  %v686_v14 = vpop.f32.mrb[7].mxu1 }
 0x10f   : > { %v816_v15 = vmax.f32 %v784_v9, 0.0  ;;  %v832_v16 = vmax.f32 %v800_v10, 0.0  ;;  %v785_v17 = vadd.f32 %v1336_v45, %v746_v11  ;;  %v801_v18 = vadd.f32 %v1336_v45, %v762_v12 }
 0x111   : > { %849 = vst.msk [vmem:[%s1349_s29 + $0x10] sm:$0xff] %vm846_vm1, %v816_v15  ;;  %865 = vst.msk [vmem:[%s1349_s29 + $0x90] sm:$0xff] %vm846_vm1, %v832_v16  ;;  %v817_v19 = vmax.f32 %v785_v17, 0.0  ;;  %v833_v20 = vmax.f32 %v801_v18, 0.0 }
 0x112   : > { %v625_v21 = vpop.f32.mrb[8].mxu0  ;;  %v689_v22 = vpop.f32.mrb[8].mxu1 }
 0x113   : > { %850 = vst.msk [vmem:[%s1349_s29 + $0x18] sm:$0xff] %vm846_vm1, %v817_v19  ;;  %866 = vst.msk [vmem:[%s1349_s29 + $0x98] sm:$0xff] %vm846_vm1, %v833_v20  ;;  %v747_v23 = vmul.f32 %v1331_v43, %v625_v21  ;;  %v763_v24 = vmul.f32 %v1331_v43, %v689_v22  ;;  %v627_v25 = vpop.f32.mrb[9].mxu0  ;;  %v691_v26 = vpop.f32.mrb[9].mxu1 }
 0x114   : > { %v628_v27 = vpop.f32.mrb[10].mxu0  ;;  %v692_v28 = vpop.f32.mrb[10].mxu1 }
 0x115   : > { %v786_v29 = vadd.f32 %v1336_v45, %v747_v23  ;;  %v802_v30 = vadd.f32 %v1336_v45, %v763_v24  ;;  %v748_v31 = vmul.f32 %v1331_v43, %v628_v27  ;;  %v764_v32 = vmul.f32 %v1331_v43, %v692_v28  ;;  %v630_v33 = vpop.f32.mrb[11].mxu0  ;;  %v694_v34 = vpop.f32.mrb[11].mxu1 }
 0x117   : > { %v818_v35 = vmax.f32 %v786_v29, 0.0  ;;  %v834_v36 = vmax.f32 %v802_v30, 0.0  ;;  %v787_v37 = vadd.f32 %v1336_v45, %v748_v31  ;;  %v803_v38 = vadd.f32 %v1336_v45, %v764_v32 }
 0x119   : > { %851 = vst.msk [vmem:[%s1349_s29 + $0x20] sm:$0xff] %vm846_vm1, %v818_v35  ;;  %867 = vst.msk [vmem:[%s1349_s29 + $0xa0] sm:$0xff] %vm846_vm1, %v834_v36  ;;  %v819_v39 = vmax.f32 %v787_v37, 0.0  ;;  %v835_v40 = vmax.f32 %v803_v38, 0.0 }
 0x11a   : > { %v633_v41 = vpop.f32.mrb[12].mxu0  ;;  %v697_v42 = vpop.f32.mrb[12].mxu1 }
 0x11b   : > { %852 = vst.msk [vmem:[%s1349_s29 + $0x28] sm:$0xff] %vm846_vm1, %v819_v39  ;;  %868 = vst.msk [vmem:[%s1349_s29 + $0xa8] sm:$0xff] %vm846_vm1, %v835_v40  ;;  %v749_v44 = vmul.f32 %v1331_v43, %v633_v41  ;;  %v765_v46 = vmul.f32 %v1331_v43, %v697_v42  ;;  %v635_v47 = vpop.f32.mrb[13].mxu0  ;;  %v699_v48 = vpop.f32.mrb[13].mxu1 }
 0x11c   : > { %v636_v49 = vpop.f32.mrb[14].mxu0  ;;  %v700_v50 = vpop.f32.mrb[14].mxu1 }
 0x11d   : > { %v788_v51 = vadd.f32 %v1336_v45, %v749_v44  ;;  %v804_v52 = vadd.f32 %v1336_v45, %v765_v46  ;;  %v750_v53 = vmul.f32 %v1331_v43, %v636_v49  ;;  %v766_v54 = vmul.f32 %v1331_v43, %v700_v50  ;;  %v638_v55 = vpop.f32.mrb[15].mxu0  ;;  %v702_v56 = vpop.f32.mrb[15].mxu1 }
 0x11f   : > { %v820_v57 = vmax.f32 %v788_v51, 0.0  ;;  %v836_v58 = vmax.f32 %v804_v52, 0.0  ;;  %v789_v59 = vadd.f32 %v1336_v45, %v750_v53  ;;  %v805_v60 = vadd.f32 %v1336_v45, %v766_v54 }
 0x121   : > { %853 = vst.msk [vmem:[%s1349_s29 + $0x30] sm:$0xff] %vm846_vm1, %v820_v57  ;;  %869 = vst.msk [vmem:[%s1349_s29 + $0xb0] sm:$0xff] %vm846_vm1, %v836_v58  ;;  %v821_v61 = vmax.f32 %v789_v59, 0.0  ;;  %v837_v62 = vmax.f32 %v805_v60, 0.0 }
 0x122   : > { %v641_v63 = vpop.f32.mrb[16].mxu0  ;;  %v705_v0 = vpop.f32.mrb[16].mxu1 }
 0x123   : > { %854 = vst.msk [vmem:[%s1349_s29 + $0x38] sm:$0xff] %vm846_vm1, %v821_v61  ;;  %870 = vst.msk [vmem:[%s1349_s29 + $0xb8] sm:$0xff] %vm846_vm1, %v837_v62  ;;  %v751_v1 = vmul.f32 %v1331_v43, %v641_v63  ;;  %v767_v2 = vmul.f32 %v1331_v43, %v705_v0  ;;  %v643_v3 = vpop.f32.mrb[17].mxu0  ;;  %v707_v4 = vpop.f32.mrb[17].mxu1 }
 0x124   : > { %v644_v5 = vpop.f32.mrb[18].mxu0  ;;  %v708_v6 = vpop.f32.mrb[18].mxu1 }
 0x125   : > { %v790_v7 = vadd.f32 %v1336_v45, %v751_v1  ;;  %v806_v8 = vadd.f32 %v1336_v45, %v767_v2  ;;  %v752_v9 = vmul.f32 %v1331_v43, %v644_v5  ;;  %v768_v10 = vmul.f32 %v1331_v43, %v708_v6  ;;  %v646_v11 = vpop.f32.mrb[19].mxu0  ;;  %v710_v12 = vpop.f32.mrb[19].mxu1 }
 0x127   : > { %v822_v13 = vmax.f32 %v790_v7, 0.0  ;;  %v838_v14 = vmax.f32 %v806_v8, 0.0  ;;  %v791_v15 = vadd.f32 %v1336_v45, %v752_v9  ;;  %v807_v16 = vadd.f32 %v1336_v45, %v768_v10 }
 0x129   : > { %855 = vst.msk [vmem:[%s1349_s29 + $0x40] sm:$0xff] %vm846_vm1, %v822_v13  ;;  %871 = vst.msk [vmem:[%s1349_s29 + $0xc0] sm:$0xff] %vm846_vm1, %v838_v14  ;;  %v823_v17 = vmax.f32 %v791_v15, 0.0  ;;  %v839_v18 = vmax.f32 %v807_v16, 0.0 }
 0x12a   : > { %v649_v19 = vpop.f32.mrb[20].mxu0  ;;  %v713_v20 = vpop.f32.mrb[20].mxu1 }
 0x12b   : > { %856 = vst.msk [vmem:[%s1349_s29 + $0x48] sm:$0xff] %vm846_vm1, %v823_v17  ;;  %872 = vst.msk [vmem:[%s1349_s29 + $0xc8] sm:$0xff] %vm846_vm1, %v839_v18  ;;  %v753_v21 = vmul.f32 %v1331_v43, %v649_v19  ;;  %v769_v22 = vmul.f32 %v1331_v43, %v713_v20  ;;  %v651_v23 = vpop.f32.mrb[21].mxu0  ;;  %v715_v24 = vpop.f32.mrb[21].mxu1 }
 0x12c   : > { %v652_v25 = vpop.f32.mrb[22].mxu0  ;;  %v716_v26 = vpop.f32.mrb[22].mxu1 }
 0x12d   : > { %v792_v27 = vadd.f32 %v1336_v45, %v753_v21  ;;  %v808_v28 = vadd.f32 %v1336_v45, %v769_v22  ;;  %v754_v29 = vmul.f32 %v1331_v43, %v652_v25  ;;  %v770_v30 = vmul.f32 %v1331_v43, %v716_v26  ;;  %v654_v31 = vpop.f32.mrb[23].mxu0  ;;  %v718_v32 = vpop.f32.mrb[23].mxu1 }
 0x12f   : > { %v824_v33 = vmax.f32 %v792_v27, 0.0  ;;  %v840_v34 = vmax.f32 %v808_v28, 0.0  ;;  %v793_v35 = vadd.f32 %v1336_v45, %v754_v29  ;;  %v809_v36 = vadd.f32 %v1336_v45, %v770_v30 }
 0x131   : > { %857 = vst.msk [vmem:[%s1349_s29 + $0x50] sm:$0xff] %vm846_vm1, %v824_v33  ;;  %873 = vst.msk [vmem:[%s1349_s29 + $0xd0] sm:$0xff] %vm846_vm1, %v840_v34  ;;  %v825_v37 = vmax.f32 %v793_v35, 0.0  ;;  %v841_v38 = vmax.f32 %v809_v36, 0.0 }
 0x132   : > { %v657_v39 = vpop.f32.mrb[24].mxu0  ;;  %v721_v40 = vpop.f32.mrb[24].mxu1 }
 0x133   : > { %858 = vst.msk [vmem:[%s1349_s29 + $0x58] sm:$0xff] %vm846_vm1, %v825_v37  ;;  %874 = vst.msk [vmem:[%s1349_s29 + $0xd8] sm:$0xff] %vm846_vm1, %v841_v38  ;;  %v755_v41 = vmul.f32 %v1331_v43, %v657_v39  ;;  %v771_v42 = vmul.f32 %v1331_v43, %v721_v40  ;;  %v659_v44 = vpop.f32.mrb[25].mxu0  ;;  %v723_v46 = vpop.f32.mrb[25].mxu1 }
 0x134   : > { %v660_v47 = vpop.f32.mrb[26].mxu0  ;;  %v724_v48 = vpop.f32.mrb[26].mxu1 }
 0x135   : > { %v794_v49 = vadd.f32 %v1336_v45, %v755_v41  ;;  %v810_v50 = vadd.f32 %v1336_v45, %v771_v42  ;;  %v756_v51 = vmul.f32 %v1331_v43, %v660_v47  ;;  %v772_v52 = vmul.f32 %v1331_v43, %v724_v48  ;;  %v662_v53 = vpop.f32.mrb[27].mxu0  ;;  %v726_v54 = vpop.f32.mrb[27].mxu1 }
 0x137   : > { %v826_v55 = vmax.f32 %v794_v49, 0.0  ;;  %v842_v56 = vmax.f32 %v810_v50, 0.0  ;;  %v795_v57 = vadd.f32 %v1336_v45, %v756_v51  ;;  %v811_v58 = vadd.f32 %v1336_v45, %v772_v52 }
 0x139   : > { %859 = vst.msk [vmem:[%s1349_s29 + $0x60] sm:$0xff] %vm846_vm1, %v826_v55  ;;  %875 = vst.msk [vmem:[%s1349_s29 + $0xe0] sm:$0xff] %vm846_vm1, %v842_v56  ;;  %v827_v59 = vmax.f32 %v795_v57, 0.0  ;;  %v843_v60 = vmax.f32 %v811_v58, 0.0 }
 0x13a   : > { %v665_v61 = vpop.f32.mrb[28].mxu0  ;;  %v729_v62 = vpop.f32.mrb[28].mxu1 }
 0x13b   : > { %860 = vst.msk [vmem:[%s1349_s29 + $0x68] sm:$0xff] %vm846_vm1, %v827_v59  ;;  %876 = vst.msk [vmem:[%s1349_s29 + $0xe8] sm:$0xff] %vm846_vm1, %v843_v60  ;;  %v757_v63 = vmul.f32 %v1331_v43, %v665_v61  ;;  %v773_v0 = vmul.f32 %v1331_v43, %v729_v62  ;;  %v667_v1 = vpop.f32.mrb[29].mxu0  ;;  %v731_v2 = vpop.f32.mrb[29].mxu1 }
 0x13c   : > { %v668_v3 = vpop.f32.mrb[30].mxu0  ;;  %v732_v4 = vpop.f32.mrb[30].mxu1 }
 0x13d   : > { %v796_v5 = vadd.f32 %v1336_v45, %v757_v63  ;;  %v812_v6 = vadd.f32 %v1336_v45, %v773_v0  ;;  %v758_v7 = vmul.f32 %v1331_v43, %v668_v3  ;;  %v774_v8 = vmul.f32 %v1331_v43, %v732_v4  ;;  %v670_v9 = vpop.f32.mrb[31].mxu0  ;;  %v734_v10 = vpop.f32.mrb[31].mxu1 }
 0x13f   : > { %v828_v11 = vmax.f32 %v796_v5, 0.0  ;;  %v844_v12 = vmax.f32 %v812_v6, 0.0  ;;  %v797_v13 = vadd.f32 %v1336_v45, %v758_v7  ;;  %v813_v14 = vadd.f32 %v1336_v45, %v774_v8 }
 0x141   : > { %861 = vst.msk [vmem:[%s1349_s29 + $0x70] sm:$0xff] %vm846_vm1, %v828_v11  ;;  %877 = vst.msk [vmem:[%s1349_s29 + $0xf0] sm:$0xff] %vm846_vm1, %v844_v12  ;;  %v829_v15 = vmax.f32 %v797_v13, 0.0  ;;  %v845_v16 = vmax.f32 %v813_v14, 0.0 }
 0x143   : > { %862 = vst.msk [vmem:[%s1349_s29 + $0x78] sm:$0xff] %vm846_vm1, %v829_v15  ;;  %878 = vst.msk [vmem:[%s1349_s29 + $0xf8] sm:$0xff] %vm846_vm1, %v845_v16 }
 0x144 PF: > { %s14_s17 = sadd.s32 1, %s1194_s17   ;;  %s1487_s15 = smov %s1190_s16 }
 0x145   : > { %p11_p5 = scmp.ge.s32.totalorder %s14_s17, 4   ;;  %s1488_s16 = smov %s1490_s18 }
 0x147   :  { %13 = sbr.rel (!%p11_p5) target bundleno = 2 (0x2), region = 75 }

// kernel: _lambda_.6
= control target key start
LH: loop header
LB: loop body
LE: loop exit
PB: predicated region body
PF: predicated region fallthrough
CT: control target
= control target key end

     0   :  { %s2955_s25 = smov 0   ;;  %s3504_s0 = inlined_call_operand.vmem [shape: f32[2,64,64], index: 0, kind: input, shape index: {}]   ;;  %s3505_s1 = inlined_call_operand.vmem [shape: bf16[64,64], index: 1, kind: input, shape index: {}]   ;;  %s3506_s2 = inlined_call_operand.vmem [shape: f32[1,64], index: 2, kind: input, shape index: {}]   ;;  %s3507_s3 = inlined_call_operand.vmem [shape: f32[1,64], index: 3, kind: input, shape index: {}]   ;;  %s3508_s4 = inlined_call_operand.vmem [shape: bf16[3,3,64,64], index: 4, kind: input, shape index: {}]   ;;  %s3509_s5 = inlined_call_operand.vmem [shape: f32[1,64], index: 5, kind: input, shape index: {}]   ;;  %s3510_s6 = inlined_call_operand.vmem [shape: f32[1,64], index: 6, kind: input, shape index: {}]   ;;  %s3511_s7 = inlined_call_operand.vmem [shape: bf16[64,256], index: 7, kind: input, shape index: {}]   ;;  %s3512_s8 = inlined_call_operand.vmem [shape: f32[1,256], index: 8, kind: input, shape index: {}]   ;;  %s3513_s9 = inlined_call_operand.vmem [shape: f32[1,256], index: 9, kind: input, shape index: {}]   ;;  %s3514_s10 = inlined_call_operand.vmem [shape: bf16[64,256], index: 10, kind: input, shape index: {}]   ;;  %s3515_s11 = inlined_call_operand.vmem [shape: f32[1,256], index: 11, kind: input, shape index: {}]   ;;  %s3516_s12 = inlined_call_operand.vmem [shape: f32[1,256], index: 12, kind: input, shape index: {}]   ;;  %s3517_s13 = inlined_call_operand.vmem [shape: f32[2,64,256], index: 13, kind: output, shape index: {}]  }
   0x1 LB: > { %s2312_s26 = sadd.s32 4294967295, %s2881_s25   ;;  %p2316_p0 = scmp.ge.s32.totalorder %s2881_s25, 1  ;;  %s2881_s25 = sphi %s2955_s25, %s23_s25  }
   0x2   : > { %p387_p1 = scmp.lt.s32.totalorder %s2881_s25, 3 }
   0x4   : > { %p388_p2 = pnand %p2316_p0, %p387_p1 }
   0x5   : > { %v2811_v0 = vld [vmem:[%s3505_s1] sm:$0xff] (!%p388_p2)   ;;  %p431_p3 = scmp.lt.s32.totalorder (!%p388_p2), %s2312_s26, 1  ;;  %v2812_v1 = vld [vmem:[%s3505_s1 + $0x8] sm:$0xff] (!%p388_p2)   ;;  %v2813_v2 = vld [vmem:[%s3505_s1 + $0x10] sm:$0xff] (!%p388_p2)   ;;  %vm486_vm0 = vcmask (!%p388_p2), 523264   ;;  %v2883_v18 = vmov (!%p388_p2), 0.0  }
   0x6   : > { %391 = sbr.rel (%p388_p2) target bundleno = 855 (0x357), region = 72  ;;  %2577 = vmatprep.subr.bf16.mxu0 (!%p388_p2), %v2811_v0  ;;  %v2814_v6 = vld [vmem:[%s3505_s1 + $0x18] sm:$0xff] (!%p388_p2)   ;;  %v2815_v16 = vld [vmem:[%s3508_s4 + $0x40] sm:$0xff] (!%p388_p2)   ;;  %612 = vst.msk [vmem:[#allocation2 + $0x50] sm:$0xff] (!%p388_p2), %vm486_vm0, %v2883_v18  ;;  %602 = vst.msk [vmem:[#allocation2] sm:$0xff] (!%p388_p2), %vm486_vm0, %v2883_v18 }
   0x7   : > { %2578 = vmatpush3.bf16.msra.mxu0 (!%p388_p2), %v2811_v0  ;;  %v2816_v17 = vld [vmem:[%s3508_s4 + $0x20] sm:$0xff] (!%p388_p2)   ;;  %2625 = vmatprep.subr.bf16.mxu1 (!%p388_p2), %v2815_v16  ;;  %603 = vst.msk [vmem:[#allocation2 + $0x8] sm:$0xff] (!%p388_p2), %vm486_vm0, %v2883_v18  ;;  %604 = vst.msk [vmem:[#allocation2 + $0x10] sm:$0xff] (!%p388_p2), %vm486_vm0, %v2883_v18  ;;  %v2817_v19 = vld [vmem:[%s3508_s4 + $0x48] sm:$0xff] (!%p388_p2)  }
   0x8   : > { %2579 = vmatprep.subr.bf16.mxu0 (!%p388_p2), %v2812_v1  ;;  %2626 = vmatpush3.bf16.msra.mxu1 (!%p388_p2), %v2815_v16  ;;  %605 = vst.msk [vmem:[#allocation2 + $0x18] sm:$0xff] (!%p388_p2), %vm486_vm0, %v2883_v18  ;;  %606 = vst.msk [vmem:[#allocation2 + $0x20] sm:$0xff] (!%p388_p2), %vm486_vm0, %v2883_v18  ;;  %v2818_v20 = vld [vmem:[%s3508_s4 + $0x28] sm:$0xff] (!%p388_p2)   ;;  %v2819_v21 = vld [vmem:[%s3508_s4 + $0x50] sm:$0xff] (!%p388_p2)  }
   0x9   : > { %607 = vst.msk [vmem:[#allocation2 + $0x28] sm:$0xff] (!%p388_p2), %vm486_vm0, %v2883_v18  ;;  %608 = vst.msk [vmem:[#allocation2 + $0x30] sm:$0xff] (!%p388_p2), %vm486_vm0, %v2883_v18  ;;  %2627 = vmatprep.subr.bf16.mxu1 (!%p388_p2), %v2817_v19  ;;  %v2820_v22 = vld [vmem:[%s3508_s4 + $0x30] sm:$0xff] (!%p388_p2)   ;;  %v2821_v23 = vld [vmem:[%s3508_s4 + $0x58] sm:$0xff] (!%p388_p2)  }
   0xa   : > { %609 = vst.msk [vmem:[#allocation2 + $0x38] sm:$0xff] (!%p388_p2), %vm486_vm0, %v2883_v18  ;;  %610 = vst.msk [vmem:[#allocation2 + $0x40] sm:$0xff] (!%p388_p2), %vm486_vm0, %v2883_v18  ;;  %v2822_v24 = vld [vmem:[%s3508_s4 + $0x38] sm:$0xff] (!%p388_p2)   ;;  %v3054_v25 = vld [vmem:[%s3508_s4 + $0x60] sm:$0xff] (!%p388_p2)  }
   0xb   : > { %2580 = vmatpush3.bf16.msra.mxu0 (!%p388_p2), %v2812_v1  ;;  %611 = vst.msk [vmem:[#allocation2 + $0x48] sm:$0xff] (!%p388_p2), %vm486_vm0, %v2883_v18  ;;  %613 = vst.msk [vmem:[#allocation2 + $0x58] sm:$0xff] (!%p388_p2), %vm486_vm0, %v2883_v18  ;;  %v3059_v26 = vld [vmem:[%s3508_s4] sm:$0xff] (!%p388_p2)   ;;  %v2827_v16 = vld [vmem:[%s3508_s4 + $0x70] sm:$0xff] (!%p388_p2)  }
   0xc   : > { %2581 = vmatprep.subr.bf16.mxu0 (!%p388_p2), %v2813_v2  ;;  %614 = vst.msk [vmem:[#allocation2 + $0x60] sm:$0xff] (!%p388_p2), %vm486_vm0, %v2883_v18  ;;  %615 = vst.msk [vmem:[#allocation2 + $0x68] sm:$0xff] (!%p388_p2), %vm486_vm0, %v2883_v18  ;;  %2628 = vmatpush3.bf16.msra.mxu1 (!%p388_p2), %v2817_v19  ;;  %v2329_v27 = vld [vmem:[%s3506_s2] ss:$0 sm:$0xff] (!%p388_p2) }
   0xd   : > { %s3519_s26 = smov (!%p431_p3, %s2312_s26), 1  ;;  %616 = vst.msk [vmem:[#allocation2 + $0x70] sm:$0xff] %vm486_vm0, %v2883_v18  ;;  %617 = vst.msk [vmem:[#allocation2 + $0x78] sm:$0xff] %vm486_vm0, %v2883_v18  ;;  %2629 = vmatprep.subr.bf16.mxu1 %v2819_v21  ;;  %v2330_v29 = vld [vmem:[%s3507_s3] ss:$0 sm:$0xff] }
   0xe   : > { %s2495_s16 = sshll.u32 %s3519_s26, 6  ;;  %618 = vst.msk [vmem:[#allocation2 + $0x80] sm:$0xff] %vm486_vm0, %v2883_v18  ;;  %619 = vst.msk [vmem:[#allocation2 + $0x88] sm:$0xff] %vm486_vm0, %v2883_v18  ;;  %v668_v57 = vld [vmem:[#allocation2 + $0x8] sm:$0xff]  ;;  %s2496_s22 = sshll.u32 %s3519_s26, 7 }
   0xf   : > { %s435_s19 = scalar_lea.vmem %s3504_s0, %s2495_s16  ;;  %2582 = vmatpush3.bf16.msra.mxu0 %v2813_v2  ;;  %620 = vst.msk [vmem:[#allocation2 + $0x90] sm:$0xff] %vm486_vm0, %v2883_v18  ;;  %621 = vst.msk [vmem:[#allocation2 + $0x98] sm:$0xff] %vm486_vm0, %v2883_v18  ;;  %v891_v58 = vld [vmem:[#allocation2 + $0x9] sm:$0xff]  ;;  %s3425_s24 = scalar_lea.vmem %s3517_s13, %s2496_s22 }
  0x10   : > { %v442_v3 = vld [vmem:[%s435_s19] sm:$0xff]  ;;  %v443_v4 = vld [vmem:[%s435_s19 + $0x8] sm:$0xff]  ;;  %v444_v7 = vld [vmem:[%s435_s19 + $0x10] sm:$0xff]  ;;  %2583 = vmatprep.subr.bf16.mxu0 %v2814_v6  ;;  %622 = vst.msk [vmem:[#allocation2 + $0xa0] sm:$0xff] %vm486_vm0, %v2883_v18  ;;  %2630 = vmatpush3.bf16.msra.mxu1 %v2819_v21 }
  0x11   : > { %v2978_v5 = vpack.c.bf16 %v443_v4, %v442_v3  ;;  %v445_v8 = vld [vmem:[%s435_s19 + $0x18] sm:$0xff]  ;;  %v446_v9 = vld [vmem:[%s435_s19 + $0x20] sm:$0xff]  ;;  %v447_v10 = vld [vmem:[%s435_s19 + $0x28] sm:$0xff]  ;;  %623 = vst.msk [vmem:[#allocation2 + $0xa8] sm:$0xff] %vm486_vm0, %v2883_v18  ;;  %2631 = vmatprep.subr.bf16.mxu1 %v2821_v23 }
  0x12   : > { %v2985_v11 = vpack.c.bf16 %v445_v8, %v444_v7  ;;  %v2987_v12 = vpack.c.bf16 %v447_v10, %v446_v9  ;;  %v448_v13 = vld [vmem:[%s435_s19 + $0x30] sm:$0xff]  ;;  %v449_v14 = vld [vmem:[%s435_s19 + $0x38] sm:$0xff]  ;;  %624 = vst.msk [vmem:[#allocation2 + $0xb0] sm:$0xff] %vm486_vm0, %v2883_v18  ;;  %625 = vst.msk [vmem:[#allocation2 + $0xb8] sm:$0xff] %vm486_vm0, %v2883_v18 }
  0x13   : > { %2585 = vmatprep.mubr.msk.bf16.mxu0 %vm486_vm0, %v2978_v5  ;;  %2584 = vmatpush3.bf16.msra.mxu0 %v2814_v6  ;;  %v2993_v15 = vpack.c.bf16 %v449_v14, %v448_v13  ;;  %626 = vst.msk [vmem:[#allocation2 + $0xc0] sm:$0xff] %vm486_vm0, %v2883_v18  ;;  %627 = vst.msk [vmem:[#allocation2 + $0xc8] sm:$0xff] %vm486_vm0, %v2883_v18  ;;  %v2825_v10 = vld [vmem:[%s3508_s4 + $0x68] sm:$0xff]  }
  0x14   : > { %2593 = vmatprep.subr.bf16.mxu0 %v2816_v17  ;;  %628 = vst.msk [vmem:[#allocation2 + $0xd0] sm:$0xff] %vm486_vm0, %v2883_v18  ;;  %629 = vst.msk [vmem:[#allocation2 + $0xd8] sm:$0xff] %vm486_vm0, %v2883_v18  ;;  %2632 = vmatpush3.bf16.msra.mxu1 %v2821_v23  ;;  %v2826_v13 = vld [vmem:[%s3508_s4 + $0x8] sm:$0xff]  }
  0x15   : > { %630 = vst.msk [vmem:[#allocation2 + $0xe0] sm:$0xff] %vm486_vm0, %v2883_v18  ;;  %631 = vst.msk [vmem:[#allocation2 + $0xe8] sm:$0xff] %vm486_vm0, %v2883_v18  ;;  %2641 = vmatprep.subr.bf16.mxu1 %v3054_v25  ;;  %v648_v21 = vld [vmem:[#allocation2 + $0x7] sm:$0xff] }
  0x16   : > { %2586 = vmatmul.mubr.msk.bf16.vlgmr.msra.gmra.mrb[0].mxu0 %vm486_vm0, %v2985_v11 }
  0x17   : > { %2589 = vmatprep.mubr.msk.bf16.mxu0 %vm486_vm0, %v2987_v12  ;;  %2594 = vmatpush3.bf16.msra.mxu0 %v2816_v17  ;;  %v2828_v17 = vld [vmem:[%s3508_s4 + $0x10] sm:$0xff]  }
  0x18   : > { %2595 = vmatprep.subr.bf16.mxu0 %v2818_v20 }
  0x1b   : > { %2596 = vmatpush3.bf16.msra.mxu0 %v2818_v20 }
  0x1c   : > { %2597 = vmatprep.subr.bf16.mxu0 %v2820_v22 }
  0x1e   : > { %2590 = vmatmul.mubr.msk.bf16.gmra.mrb[4].mxu0 %vm486_vm0, %v2993_v15 }
  0x1f   : > { %2598 = vmatpush3.bf16.msra.mxu0 %v2820_v22 }
  0x20   : > { %2599 = vmatprep.subr.bf16.mxu0 %v2822_v24 }
  0x23   : > { %2600 = vmatpush3.bf16.msra.mxu0 %v2822_v24 }
  0x24   : > { %2609 = vmatprep.subr.bf16.mxu0 %v3059_v26 }
  0xe9   : > { %v2587_v28 = vpop.f32.mrb[0].mxu0 }
  0xea   : > { %v573_v30 = vmul.f32 %v2587_v28, %v2329_v27  ;;  %v533_v31 = vpop.f32.mrb[1].mxu0 }
  0xeb   : > { %v571_v32 = vmul.f32 %v2329_v27, %v533_v31  ;;  %v2588_v33 = vpop.f32.mrb[2].mxu0 }
  0xec   : > { %v588_v34 = vadd.f32 %v2330_v29, %v573_v30  ;;  %v574_v35 = vmul.f32 %v2588_v33, %v2329_v27  ;;  %v536_v36 = vpop.f32.mrb[3].mxu0  ;;  %v2830_v33 = vld [vmem:[%s3508_s4 + $0x18] sm:$0xff]  }
  0xed   : > { %v586_v37 = vadd.f32 %v2330_v29, %v571_v32  ;;  %v572_v38 = vmul.f32 %v2329_v27, %v536_v36  ;;  %v2829_v32 = vld [vmem:[%s3508_s4 + $0x78] sm:$0xff]   ;;  %v2831_v36 = vld [vmem:[%s3508_s4 + $0x80] sm:$0xff]  }
  0xee   : > { %v596_v39 = vmax.f32 %v588_v34, 0.0  ;;  %v589_v40 = vadd.f32 %v2330_v29, %v574_v35 }
  0xef   : > { %v594_v41 = vmax.f32 %v586_v37, 0.0  ;;  %v587_v42 = vadd.f32 %v2330_v29, %v572_v38 }
  0xf0   : > { %637 = vst.msk [vmem:[#allocation2 + $0x50] sm:$0xff] %vm486_vm0, %v596_v39  ;;  %v597_v43 = vmax.f32 %v589_v40, 0.0 }
  0xf1   : > { %633 = vst.msk [vmem:[#allocation2 + $0x20] sm:$0xff] %vm486_vm0, %v594_v41  ;;  %v595_v44 = vmax.f32 %v587_v42, 0.0  ;;  %v2591_v45 = vpop.f32.mrb[4].mxu0 }
  0xf2   : > { %639 = vst.msk [vmem:[#allocation2 + $0x68] sm:$0xff] %vm486_vm0, %v597_v43  ;;  %v577_v46 = vmul.f32 %v2591_v45, %v2329_v27  ;;  %v549_v47 = vpop.f32.mrb[5].mxu0  ;;  %v2832_v43 = vld [vmem:[%s3508_s4 + $0x88] sm:$0xff]  }
  0xf3   : > { %635 = vst.msk [vmem:[#allocation2 + $0x38] sm:$0xff] %vm486_vm0, %v595_v44  ;;  %v575_v48 = vmul.f32 %v2329_v27, %v549_v47  ;;  %v2592_v49 = vpop.f32.mrb[6].mxu0 }
  0xf4   : > { %v592_v50 = vadd.f32 %v2330_v29, %v577_v46  ;;  %v578_v51 = vmul.f32 %v2592_v49, %v2329_v27  ;;  %v552_v52 = vpop.f32.mrb[7].mxu0  ;;  %v2833_v46 = vld [vmem:[%s3508_s4 + $0x90] sm:$0xff]  }
  0xf5   : > { %v590_v53 = vadd.f32 %v2330_v29, %v575_v48  ;;  %v576_v54 = vmul.f32 %v2329_v27, %v552_v52 }
  0xf6   : > { %v600_v55 = vmax.f32 %v592_v50, 0.0  ;;  %v593_v56 = vadd.f32 %v2330_v29, %v578_v51  ;;  %v2834_v51 = vld [vmem:[%s3508_s4 + $0x98] sm:$0xff]  }
  0xf7   : > { %v598_v59 = vmax.f32 %v590_v53, 0.0  ;;  %v591_v60 = vadd.f32 %v2330_v29, %v576_v54  ;;  %v3081_v3 = vld [vmem:[#allocation2 + $0x50] sm:$0xff]  ;;  %v2835_v53 = vld [vmem:[%s3508_s4 + $0xa0] sm:$0xff]  }
  0xf8   : > { %645 = vst.msk [vmem:[#allocation2 + $0xb0] sm:$0xff] %vm486_vm0, %v600_v55  ;;  %v601_v61 = vmax.f32 %v593_v56, 0.0  ;;  %v3074_v62 = vld [vmem:[#allocation2 + $0x20] sm:$0xff]  ;;  %v3088_v7 = vld [vmem:[#allocation2 + $0x51] sm:$0xff]  ;;  %v2836_v55 = vld [vmem:[%s3508_s4 + $0xa8] sm:$0xff]  }
  0xf9   : > { %v3076_v63 = vld [vmem:[#allocation2 + $0x21] sm:$0xff]  ;;  %641 = vst.msk [vmem:[#allocation2 + $0x80] sm:$0xff] %vm486_vm0, %v598_v59  ;;  %v599_v0 = vmax.f32 %v591_v60, 0.0  ;;  %v676_v1 = vpack.c.bf16 %v3074_v62, %v668_v57  ;;  %v3123_v19 = vld [vmem:[#allocation2 + $0x69] sm:$0xff]  ;;  %v2838_v60 = vld [vmem:[%s3508_s4 + $0xb8] sm:$0xff]  }
  0xfa   : > { %v899_v2 = vpack.c.bf16 %v3076_v63, %v891_v58  ;;  %647 = vst.msk [vmem:[#allocation2 + $0xc8] sm:$0xff] %vm486_vm0, %v601_v61  ;;  %v3084_v4 = vld [vmem:[#allocation2 + $0x38] sm:$0xff]  ;;  %v3113_v14 = vld [vmem:[#allocation2 + $0x68] sm:$0xff]  ;;  %v2837_v57 = vld [vmem:[%s3508_s4 + $0xb0] sm:$0xff]  }
  0xfb   : > { %v3086_v6 = vld [vmem:[#allocation2 + $0x39] sm:$0xff]  ;;  %643 = vst.msk [vmem:[#allocation2 + $0x98] sm:$0xff] %vm486_vm0, %v599_v0  ;;  %2601 = vmatprep.mubr.msk.bf16.mxu0 %vm486_vm0, %v676_v1  ;;  %v3095_v8 = vpack.c.bf16 %v3081_v3, %v3084_v4  ;;  %v1024_v37 = vld [vmem:[#allocation2 + $0x67] sm:$0xff]  ;;  %v651_v39 = vld [vmem:[#allocation2 + $0x4f] sm:$0xff]  ;;  %v1159_v52 = vpack.c.bf16 %v3084_v4, %v3074_v62  ;;  %v1160_v54 = vpack.c.bf16 %v3113_v14, %v3081_v3 }
  0xfc   : > { %2633 = vmatprep.mubr.msk.bf16.mxu1 %vm486_vm0, %v899_v2  ;;  %v3099_v9 = vpack.c.bf16 %v3088_v7, %v3086_v6  ;;  %v1030_v42 = vpack.c.bf16 %v1024_v37, %v651_v39  ;;  %v1289_v61 = vpack.c.bf16 %v3086_v6, %v3076_v63  ;;  %v2839_v62 = vld [vmem:[%s3508_s4 + $0xc0] sm:$0xff]   ;;  %v1290_v0 = vpack.c.bf16 %v3123_v19, %v3088_v7  ;;  %v2840_v1 = vld [vmem:[%s3508_s4 + $0xc8] sm:$0xff]   ;;  %v2841_v2 = vld [vmem:[%s3508_s4 + $0xd0] sm:$0xff]  }
  0xfd   : > { %2602 = vmatmul.mubr.msk.bf16.vlgmr.msra.gmra.mrb[8].mxu0 %vm486_vm0, %v3095_v8  ;;  %v2842_v6 = vld [vmem:[%s3508_s4 + $0xd8] sm:$0xff]   ;;  %v2843_v7 = vld [vmem:[%s3508_s4 + $0xe0] sm:$0xff]  }
  0xfe   : > { %2634 = vmatmul.mubr.msk.bf16.vlgmr.msra.gmra.mrb[0].mxu1 %vm486_vm0, %v3099_v9  ;;  %2610 = vmatpush3.bf16.msra.mxu0 %v3059_v26  ;;  %v1022_v26 = vld [vmem:[#allocation2 + $0x37] sm:$0xff] }
  0xff   : > { %2642 = vmatpush3.bf16.msra.mxu1 %v3054_v25  ;;  %2611 = vmatprep.subr.bf16.mxu0 %v2826_v13  ;;  %v3135_v24 = vld [vmem:[#allocation2 + $0xb0] sm:$0xff]  ;;  %v649_v25 = vld [vmem:[#allocation2 + $0x1f] sm:$0xff]  ;;  %v3170_v41 = vpack.c.bf16 %v651_v39, %v1022_v26 }
 0x100   : > { %2643 = vmatprep.subr.bf16.mxu1 %v2825_v10  ;;  %v3121_v18 = vld [vmem:[#allocation2 + $0x80] sm:$0xff]  ;;  %v3141_v29 = vld [vmem:[#allocation2 + $0xb1] sm:$0xff]  ;;  %v656_v34 = vpack.c.bf16 %v649_v25, %v648_v21  ;;  %v1029_v35 = vpack.c.bf16 %v1022_v26, %v649_v25 }
 0x101   : > { %v3125_v20 = vld [vmem:[#allocation2 + $0x81] sm:$0xff]  ;;  %v3129_v22 = vpack.c.bf16 %v3121_v18, %v3113_v14  ;;  %v655_v48 = vld [vmem:[#allocation2 + $0xaf] sm:$0xff] }
 0x102   : > { %v3133_v23 = vpack.c.bf16 %v3125_v20, %v3123_v19  ;;  %2612 = vmatpush3.bf16.msra.mxu0 %v2826_v13  ;;  %v3137_v27 = vld [vmem:[#allocation2 + $0x98] sm:$0xff]  ;;  %v3186_v47 = vld [vmem:[#allocation2 + $0xc7] sm:$0xff]  ;;  %v2845_v13 = vld [vmem:[%s3508_s4 + $0xf0] sm:$0xff]  }
 0x103   : > { %2644 = vmatpush3.bf16.msra.mxu1 %v2825_v10  ;;  %v3139_v28 = vld [vmem:[#allocation2 + $0x99] sm:$0xff]  ;;  %2605 = vmatprep.mubr.msk.bf16.mxu0 %vm486_vm0, %v3129_v22  ;;  %v3149_v30 = vpack.c.bf16 %v3135_v24, %v3137_v27  ;;  %v1032_v50 = vpack.c.bf16 %v3186_v47, %v655_v48  ;;  %v1161_v56 = vpack.c.bf16 %v3137_v27, %v3121_v18  ;;  %v3212_v58 = vld [vmem:[#allocation2 + $0xc8] sm:$0xff] }
 0x104   : > { %2637 = vmatprep.mubr.msk.bf16.mxu1 %vm486_vm0, %v3133_v23  ;;  %v3153_v31 = vpack.c.bf16 %v3141_v29, %v3139_v28  ;;  %2645 = vmatprep.subr.bf16.mxu1 %v2827_v16  ;;  %v653_v38 = vld [vmem:[#allocation2 + $0x7f] sm:$0xff]  ;;  %v1026_v40 = vld [vmem:[#allocation2 + $0x97] sm:$0xff]  ;;  %v1162_v59 = vpack.c.bf16 %v3212_v58, %v3135_v24  ;;  %v1291_v63 = vpack.c.bf16 %v3139_v28, %v3125_v20  ;;  %v1288_v3 = vld [vmem:[#allocation2 + $0xc9] sm:$0xff] }
 0x105   : > { %2613 = vmatprep.subr.bf16.mxu0 %v2828_v17  ;;  %2606 = vmatmul.mubr.msk.bf16.gmra.mrb[12].mxu0 %vm486_vm0, %v3149_v30  ;;  %v3175_v44 = vpack.c.bf16 %v653_v38, %v1024_v37  ;;  %v1031_v45 = vpack.c.bf16 %v1026_v40, %v653_v38  ;;  %v659_v49 = vpack.c.bf16 %v655_v48, %v1026_v40  ;;  %v2844_v10 = vld [vmem:[%s3508_s4 + $0xe8] sm:$0xff]   ;;  %v1418_v14 = vld [vmem:[#allocation2 + $0xdf] sm:$0xff]  ;;  %v2854_v27 = vld [vmem:[%s3511_s7 + $0x10] ss:$8 sps:$4 sm:$0xff]  }
 0x106   : > { %2638 = vmatmul.mubr.msk.bf16.gmra.mrb[4].mxu1 %vm486_vm0, %v3153_v31  ;;  %2614 = vmatpush3.bf16.msra.mxu0 %v2828_v17  ;;  %v1292_v4 = vpack.c.bf16 %v1288_v3, %v3141_v29  ;;  %v2846_v17 = vld [vmem:[%s3508_s4 + $0xf8] sm:$0xff]   ;;  %v2847_v18 = vld [vmem:[%s3508_s4 + $0x100] sm:$0xff]   ;;  %v2848_v19 = vld [vmem:[%s3508_s4 + $0x108] sm:$0xff]  }
 0x107   : > { %2646 = vmatpush3.bf16.msra.mxu1 %v2827_v16  ;;  %2617 = vmatprep.mubr.msk.bf16.mxu0 %vm486_vm0, %v656_v34  ;;  %v1422_v16 = vpack.c.bf16 %v1418_v14, %v3186_v47  ;;  %v1548_v20 = vld [vmem:[#allocation2 + $0xe0] sm:$0xff]  ;;  %v2850_v24 = vld [vmem:[%s3508_s4 + $0x118] sm:$0xff]  }
 0x108   : > { %2649 = vmatprep.mubr.msk.bf16.mxu1 %vm486_vm0, %v1029_v35  ;;  %2647 = vmatprep.subr.bf16.mxu1 %v2829_v32  ;;  %v1552_v21 = vpack.c.bf16 %v1548_v20, %v3212_v58  ;;  %v2851_v26 = vld [vmem:[%s3511_s7] ss:$8 sps:$4 sm:$0xff]   ;;  %v2859_v28 = vld [vmem:[%s3511_s7 + $0x24] ss:$8 sps:$4 sm:$0xff]  }
 0x109   : > { %2615 = vmatprep.subr.bf16.mxu0 %v2830_v33  ;;  %v2857_v29 = vld [vmem:[%s3511_s7 + $0x20] ss:$8 sps:$4 sm:$0xff]  }
 0x10a   : > { %2616 = vmatpush3.bf16.msra.mxu0 %v2830_v33  ;;  %v2865_v33 = vld [vmem:[%s3514_s10 + $0x4] ss:$8 sps:$4 sm:$0xff]   ;;  %v2863_v14 = vld [vmem:[%s3514_s10] ss:$8 sps:$4 sm:$0xff]  }
 0x10b   : > { %2648 = vmatpush3.bf16.msra.mxu1 %v2829_v32  ;;  %v2884_v32 = vmov 0  }
 0x10c   : > { %2657 = vmatprep.subr.bf16.mxu1 %v2831_v36 }
 0x10d   : > { %2618 = vmatmul.mubr.msk.bf16.vlgmr.msra.gmra.mrb[8].mxu0 %vm486_vm0, %v3170_v41 }
 0x10e   : > { %2650 = vmatmul.mubr.msk.bf16.vlgmr.msra.gmra.mrb[0].mxu1 %vm486_vm0, %v1030_v42  ;;  %2621 = vmatprep.mubr.msk.bf16.mxu0 %vm486_vm0, %v3175_v44 }
 0x10f   : > { %2658 = vmatpush3.bf16.msra.mxu1 %v2831_v36  ;;  %2653 = vmatprep.mubr.msk.bf16.mxu1 %vm486_vm0, %v1031_v45 }
 0x110   : > { %2659 = vmatprep.subr.bf16.mxu1 %v2832_v43 }
 0x113   : > { %2660 = vmatpush3.bf16.msra.mxu1 %v2832_v43  ;;  %v2467_v43 = vld [vmem:[%s3509_s5] ss:$0 sm:$0xff] }
 0x114   : > { %2661 = vmatprep.subr.bf16.mxu1 %v2833_v46 }
 0x115   : > { %2622 = vmatmul.mubr.msk.bf16.gmra.mrb[12].mxu0 %vm486_vm0, %v659_v49 }
 0x116   : > { %2654 = vmatmul.mubr.msk.bf16.gmra.mrb[4].mxu1 %vm486_vm0, %v1032_v50  ;;  %1935 = vmatprep.mubr.bf16.mxu0 %v2884_v32 }
 0x117   : > { %2662 = vmatpush3.bf16.msra.mxu1 %v2833_v46  ;;  %2665 = vmatprep.mubr.msk.bf16.mxu1 %vm486_vm0, %v1159_v52  ;;  %v2468_v46 = vld [vmem:[%s3510_s6] ss:$0 sm:$0xff] }
 0x118   : > { %2663 = vmatprep.subr.bf16.mxu1 %v2834_v51 }
 0x11b   : > { %2664 = vmatpush3.bf16.msra.mxu1 %v2834_v51 }
 0x11c   : > { %2673 = vmatprep.subr.bf16.mxu1 %v2835_v53 }
 0x11e   : > { %2666 = vmatmul.mubr.msk.bf16.vlgmr.msra.gmra.mrb[0].mxu1 %vm486_vm0, %v1160_v54 }
 0x11f   : > { %2674 = vmatpush3.bf16.msra.mxu1 %v2835_v53  ;;  %2669 = vmatprep.mubr.msk.bf16.mxu1 %vm486_vm0, %v1161_v56 }
 0x120   : > { %2675 = vmatprep.subr.bf16.mxu1 %v2836_v55 }
 0x123   : > { %2676 = vmatpush3.bf16.msra.mxu1 %v2836_v55 }
 0x124   : > { %2677 = vmatprep.subr.bf16.mxu1 %v2837_v57 }
 0x126   : > { %2670 = vmatmul.mubr.msk.bf16.gmra.mrb[4].mxu1 %vm486_vm0, %v1162_v59 }
 0x127   : > { %2678 = vmatpush3.bf16.msra.mxu1 %v2837_v57  ;;  %2681 = vmatprep.mubr.msk.bf16.mxu1 %vm486_vm0, %v1289_v61 }
 0x128   : > { %2679 = vmatprep.subr.bf16.mxu1 %v2838_v60 }
 0x12b   : > { %2680 = vmatpush3.bf16.msra.mxu1 %v2838_v60 }
 0x12c   : > { %2689 = vmatprep.subr.bf16.mxu1 %v2839_v62 }
 0x12e   : > { %2682 = vmatmul.mubr.msk.bf16.vlgmr.msra.gmra.mrb[0].mxu1 %vm486_vm0, %v1290_v0 }
 0x12f   : > { %2690 = vmatpush3.bf16.msra.mxu1 %v2839_v62  ;;  %2685 = vmatprep.mubr.msk.bf16.mxu1 %vm486_vm0, %v1291_v63 }
 0x130   : > { %2691 = vmatprep.subr.bf16.mxu1 %v2840_v1 }
 0x133   : > { %2692 = vmatpush3.bf16.msra.mxu1 %v2840_v1 }
 0x134   : > { %2693 = vmatprep.subr.bf16.mxu1 %v2841_v2 }
 0x136   : > { %2686 = vmatmul.mubr.msk.bf16.gmra.mrb[4].mxu1 %vm486_vm0, %v1292_v4 }
 0x137   : > { %2694 = vmatpush3.bf16.msra.mxu1 %v2841_v2  ;;  %2697 = vmatprep.mubr.msk.bf16.mxu1 %vm486_vm0, %v3170_v41 }
 0x138   : > { %2695 = vmatprep.subr.bf16.mxu1 %v2842_v6 }
 0x13b   : > { %2696 = vmatpush3.bf16.msra.mxu1 %v2842_v6 }
 0x13c   : > { %2705 = vmatprep.subr.bf16.mxu1 %v2843_v7 }
 0x13e   : > { %2698 = vmatmul.mubr.msk.bf16.vlgmr.msra.gmra.mrb[0].mxu1 %vm486_vm0, %v3175_v44 }
 0x13f   : > { %2706 = vmatpush3.bf16.msra.mxu1 %v2843_v7  ;;  %2701 = vmatprep.mubr.msk.bf16.mxu1 %vm486_vm0, %v659_v49 }
 0x140   : > { %2707 = vmatprep.subr.bf16.mxu1 %v2844_v10 }
 0x143   : > { %2708 = vmatpush3.bf16.msra.mxu1 %v2844_v10 }
 0x144   : > { %2709 = vmatprep.subr.bf16.mxu1 %v2845_v13 }
 0x146   : > { %2702 = vmatmul.mubr.msk.bf16.gmra.mrb[4].mxu1 %vm486_vm0, %v1422_v16 }
 0x147   : > { %2710 = vmatpush3.bf16.msra.mxu1 %v2845_v13  ;;  %2713 = vmatprep.mubr.msk.bf16.mxu1 %vm486_vm0, %v3095_v8  ;;  %v2849_v8 = vld [vmem:[%s3508_s4 + $0x110] sm:$0xff]  }
 0x148   : > { %2711 = vmatprep.subr.bf16.mxu1 %v2846_v17 }
 0x14b   : > { %2712 = vmatpush3.bf16.msra.mxu1 %v2846_v17 }
 0x14c   : > { %2721 = vmatprep.subr.bf16.mxu1 %v2847_v18 }
 0x14e   : > { %2714 = vmatmul.mubr.msk.bf16.vlgmr.msra.gmra.mrb[0].mxu1 %vm486_vm0, %v3129_v22  ;;  %v1678_v22 = vld [vmem:[#allocation2 + $0xe1] sm:$0xff] }
 0x14f   : > { %2722 = vmatpush3.bf16.msra.mxu1 %v2847_v18  ;;  %2717 = vmatprep.mubr.msk.bf16.mxu1 %vm486_vm0, %v3149_v30  ;;  %v1682_v25 = vpack.c.bf16 %v1678_v22, %v1288_v3  ;;  %v2862_v30 = vld [vmem:[%s3511_s7 + $0x34] ss:$8 sps:$4 sm:$0xff]  }
 0x150   : > { %2723 = vmatprep.subr.bf16.mxu1 %v2848_v19 }
 0x153   : > { %2724 = vmatpush3.bf16.msra.mxu1 %v2848_v19  ;;  %v2868_v19 = vld [vmem:[%s3514_s10 + $0x14] ss:$8 sps:$4 sm:$0xff]  }
 0x154   : > { %2725 = vmatprep.subr.bf16.mxu1 %v2849_v8 }
 0x156   : > { %2718 = vmatmul.mubr.msk.bf16.gmra.mrb[4].mxu1 %vm486_vm0, %v1552_v21 }
 0x157   : > { %2726 = vmatpush3.bf16.msra.mxu1 %v2849_v8  ;;  %2729 = vmatprep.mubr.msk.bf16.mxu1 %vm486_vm0, %v3099_v9  ;;  %v2853_v9 = vld [vmem:[%s3511_s7 + $0x4] ss:$8 sps:$4 sm:$0xff]  }
 0x158   : > { %2727 = vmatprep.subr.bf16.mxu1 %v2850_v24  ;;  %1903 = vmatprep.subr.bf16.mxu0 %v2853_v9  ;;  %v2871_v9 = vld [vmem:[%s3514_s10 + $0x24] ss:$8 sps:$4 sm:$0xff]  }
 0x159   : > { %1904 = vmatpush1.bf16.msra.mxu0 %v2851_v26 }
 0x15b   : > { %2728 = vmatpush3.bf16.msra.mxu1 %v2850_v24 }
 0x15e   : > { %2730 = vmatmul.mubr.msk.bf16.vlgmr.msra.gmra.mrb[0].mxu1 %vm486_vm0, %v3133_v23  ;;  %v2856_v23 = vld [vmem:[%s3511_s7 + $0x14] ss:$8 sps:$4 sm:$0xff]  }
 0x15f   : > { %2733 = vmatprep.mubr.msk.bf16.mxu1 %vm486_vm0, %v3153_v31  ;;  %1905 = vmatprep.subr.bf16.mxu0 %v2856_v23  ;;  %v2860_v31 = vld [vmem:[%s3511_s7 + $0x30] ss:$8 sps:$4 sm:$0xff]  }
 0x160   : > { %1906 = vmatpush1.bf16.msra.mxu0 %v2854_v27 }
 0x161   : > { %1907 = vmatprep.subr.bf16.mxu0 %v2859_v28 }
 0x164   : > { %1908 = vmatpush1.bf16.msra.mxu0 %v2857_v29 }
 0x165   : > { %1909 = vmatprep.subr.bf16.mxu0 %v2862_v30 }
 0x166   : > { %2734 = vmatmul.mubr.msk.bf16.gmra.mrb[4].mxu1 %vm486_vm0, %v1682_v25  ;;  %v2866_v25 = vld [vmem:[%s3514_s10 + $0x10] ss:$8 sps:$4 sm:$0xff]  }
 0x168   : > { %1910 = vmatpush1.bf16.msra.mxu0 %v2860_v31  ;;  %v2869_v31 = vld [vmem:[%s3514_s10 + $0x20] ss:$8 sps:$4 sm:$0xff]  }
 0x169   : > { %2080 = vmatprep.subr.bf16.mxu0 %v2865_v33 }
 0x1e0   : > { %v2619_v34 = vpop.f32.mrb[8].mxu0 }
 0x1e1   : > { %v860_v35 = vpop.f32.mrb[9].mxu0 }
 0x1e2   : > { %v2620_v36 = vpop.f32.mrb[10].mxu0 }
 0x1e3   : > { %v863_v37 = vpop.f32.mrb[11].mxu0 }
 0x1e8   : > { %v2623_v38 = vpop.f32.mrb[12].mxu0 }
 0x1e9   : > { %v876_v39 = vpop.f32.mrb[13].mxu0 }
 0x1ea   : > { %v2624_v40 = vpop.f32.mrb[14].mxu0 }
 0x1eb   : > { %v879_v41 = vpop.f32.mrb[15].mxu0 }
 0x231   : > { %v2731_v42 = vpop.f32.mrb[0].mxu1 }
 0x232   : > { %v2737_v44 = vadd.f32 %v2731_v42, %v2619_v34  ;;  %v1762_v45 = vpop.f32.mrb[1].mxu1  ;;  %v2874_v34 = vld [vmem:[%s3514_s10 + $0x34] ss:$8 sps:$4 sm:$0xff]  }
 0x233   : > { %v2738_v47 = vadd.f32 %v1762_v45, %v860_v35  ;;  %v2732_v48 = vpop.f32.mrb[2].mxu1  ;;  %v2872_v35 = vld [vmem:[%s3514_s10 + $0x30] ss:$8 sps:$4 sm:$0xff]  }
 0x234   : > { %v1810_v49 = vmul.f32 %v2737_v44, %v2467_v43  ;;  %v2739_v50 = vadd.f32 %v2732_v48, %v2620_v36  ;;  %v1765_v51 = vpop.f32.mrb[3].mxu1 }
 0x235   : > { %v1808_v52 = vmul.f32 %v2738_v47, %v2467_v43  ;;  %v2740_v53 = vadd.f32 %v1765_v51, %v863_v37  ;;  %v2153_v51 = vld [vmem:[%s3515_s11] sm:$0x3] }
 0x236   : > { %v1825_v54 = vadd.f32 %v2468_v46, %v1810_v49  ;;  %v1811_v55 = vmul.f32 %v2739_v50, %v2467_v43 }
 0x237   : > { %v1823_v56 = vadd.f32 %v2468_v46, %v1808_v52  ;;  %v1809_v57 = vmul.f32 %v2740_v53, %v2467_v43 }
 0x238   : > { %v1826_v58 = vadd.f32 %v2468_v46, %v1811_v55  ;;  %v1833_v61 = vmax.f32 %v1825_v54, 0.0  ;;  %v2004_v54 = vld [vmem:[%s3513_s9] sm:$0x3] }
 0x239   : > { %v1824_v59 = vadd.f32 %v2468_v46, %v1809_v57  ;;  %v2735_v60 = vpop.f32.mrb[4].mxu1  ;;  %v1831_v63 = vmax.f32 %v1823_v56, 0.0  ;;  %v2181_v56 = vld [vmem:[%s3516_s12] sm:$0x3] }
 0x23a   : > { %v1834_v62 = vmax.f32 %v1826_v58, 0.0  ;;  %v2741_v0 = vadd.f32 %v2735_v60, %v2623_v38  ;;  %v1778_v1 = vpop.f32.mrb[5].mxu1 }
 0x23b   : > { %v1832_v2 = vmax.f32 %v1824_v59, 0.0  ;;  %v2742_v3 = vadd.f32 %v1778_v1, %v876_v39  ;;  %v2736_v4 = vpop.f32.mrb[6].mxu1 }
 0x23c   : > { %v1840_v6 = vpack.c.bf16 %v1834_v62, %v1833_v61  ;;  %v1814_v7 = vmul.f32 %v2741_v0, %v2467_v43  ;;  %v2743_v10 = vadd.f32 %v2736_v4, %v2624_v40  ;;  %v1781_v13 = vpop.f32.mrb[7].mxu1 }
 0x23d   : > { %v1839_v16 = vpack.c.bf16 %v1832_v2, %v1831_v63  ;;  %v1812_v17 = vmul.f32 %v2742_v3, %v2467_v43  ;;  %v2744_v18 = vadd.f32 %v1781_v13, %v879_v41 }
 0x23e   : > { %v1829_v8 = vadd.f32 %v2468_v46, %v1814_v7  ;;  %v1815_v20 = vmul.f32 %v2743_v10, %v2467_v43 }
 0x23f   : > { %v1827_v21 = vadd.f32 %v2468_v46, %v1812_v17  ;;  %v1813_v24 = vmul.f32 %v2744_v18, %v2467_v43  ;;  %2477 = vmatmul.mubr.msk.bf16.vlgmr.msra.gmra.mrb[16].mxu0 %vm486_vm0, %v1839_v16  ;;  %v1978_v43 = vlaneseq }
 0x240   : > { %v1830_v22 = vadd.f32 %v2468_v46, %v1815_v20  ;;  %2081 = vmatpush1.bf16.msra.mxu0 %v2863_v14  ;;  %1945 = vmatprep.mubr.bf16.mxu0 %v2884_v32  ;;  %v1837_v23 = vmax.f32 %v1829_v8, 0.0 }
 0x241   : > { %v1828_v26 = vadd.f32 %v2468_v46, %v1813_v24  ;;  %2082 = vmatprep.subr.bf16.mxu0 %v2868_v19  ;;  %v1835_v28 = vmax.f32 %v1827_v21, 0.0 }
 0x242   : > { %v1838_v27 = vmax.f32 %v1830_v22, 0.0 }
 0x243   : > { %v1836_v29 = vmax.f32 %v1828_v26, 0.0 }
 0x244   : > { %v1842_v30 = vpack.c.bf16 %v1838_v27, %v1837_v23  ;;  %2083 = vmatpush1.bf16.msra.mxu0 %v2866_v25 }
 0x245   : > { %v1841_v33 = vpack.c.bf16 %v1836_v29, %v1835_v28  ;;  %2084 = vmatprep.subr.bf16.mxu0 %v2871_v9 }
 0x247   : > { %2478 = vmatmul.mubr.msk.bf16.gmra.mrb[20].mxu0 %vm486_vm0, %v1840_v6 }
 0x248   : > { %1955 = vmatprep.mubr.bf16.mxu0 %v2884_v32  ;;  %2085 = vmatpush1.bf16.msra.mxu0 %v2869_v31 }
 0x249   : > { %2086 = vmatprep.subr.bf16.mxu0 %v2874_v34 }
 0x24c   : > { %2087 = vmatpush1.bf16.msra.mxu0 %v2872_v35 }
 0x24f   : > { %2479 = vmatmul.mubr.msk.bf16.gmra.mrb[24].mxu0 %vm486_vm0, %v1841_v33 }
 0x250   : > { %1965 = vmatprep.mubr.bf16.mxu0 %v2884_v32 }
 0x257   : > { %2480 = vmatmul.mubr.msk.bf16.gmra.mrb[28].mxu0 %vm486_vm0, %v1842_v30 }
 0x258   : > { %2112 = vmatprep.mubr.bf16.mxu0 %v2884_v32 }
 0x25f   : > { %2489 = vmatmul.mubr.msk.bf16.vlgmr.msra.gmra.mrb[32].mxu0 %vm486_vm0, %v2978_v5 }
 0x260   : > { %2122 = vmatprep.mubr.bf16.mxu0 %v2884_v32 }
 0x267   : > { %2490 = vmatmul.mubr.msk.bf16.gmra.mrb[36].mxu0 %vm486_vm0, %v2985_v11 }
 0x268   : > { %2132 = vmatprep.mubr.bf16.mxu0 %v2884_v32 }
 0x26f   : > { %2491 = vmatmul.mubr.msk.bf16.gmra.mrb[40].mxu0 %vm486_vm0, %v2987_v12  ;;  %v1979_v12 = vshrl.u32 %v1978_v43, 7 }
 0x270   : > { %2142 = vmatprep.mubr.bf16.mxu0 %v2884_v32 }
 0x271   : > { %v1980_v46 = vsub.s32 0, %v1979_v12  ;;  %v1984_v47 = vsub.s32 1, %v1979_v12 }
 0x273   : > { %v3395_v57 = vrot.slane %v2153_v51, %v1980_v46  ;;  %v3397_v58 = vrot.slane %v2153_v51, %v1984_v47  ;;  %v3400_v60 = vrot.slane %v2004_v54, %v1980_v46  ;;  %v3402_v61 = vrot.slane %v2181_v56, %v1980_v46 }
 0x274   : > { %v3405_v0 = vrot.slane %v2004_v54, %v1984_v47  ;;  %v3407_v63 = vrot.slane %v2181_v56, %v1984_v47 }
 0x277   : > { %2492 = vmatmul.mubr.msk.bf16.gmra.mrb[44].mxu0 %vm486_vm0, %v2993_v15  ;;  %v1976_v15 = vld [vmem:[%s3512_s8] sm:$0x3] }
 0x278   : > { %v3383_v52 = vrot.slane %v1976_v15, %v1980_v46  ;;  %v3390_v55 = vrot.slane %v1976_v15, %v1984_v47 }
 0x312   : > { %v1937_v36 = vpop.f32.mrb[16].mxu0 }
 0x313   : > { %v1939_v37 = vpop.f32.mrb[17].mxu0  ;;  %v1988_v59 = vmul.f32 %v3383_v52, %v1937_v36 }
 0x314   : > { %v1941_v38 = vpop.f32.mrb[18].mxu0  ;;  %v1989_v62 = vmul.f32 %v3390_v55, %v1939_v37 }
 0x315   : > { %v1943_v39 = vpop.f32.mrb[19].mxu0  ;;  %v1990_v2 = vmul.f32 %v3383_v52, %v1941_v38  ;;  %v2016_v13 = vadd.f32 %v3400_v60, %v1988_v59 }
 0x316   : > { %v1991_v6 = vmul.f32 %v3390_v55, %v1943_v39  ;;  %v2017_v18 = vadd.f32 %v3405_v0, %v1989_v62 }
 0x317   : > { %v2018_v20 = vadd.f32 %v3400_v60, %v1990_v2 }
 0x318   : > { %v2019_v22 = vadd.f32 %v3405_v0, %v1991_v6 }
 0x31a   : > { %v1947_v5 = vpop.f32.mrb[20].mxu0 }
 0x31b   : > { %v1949_v40 = vpop.f32.mrb[21].mxu0  ;;  %v1992_v9 = vmul.f32 %v3383_v52, %v1947_v5 }
 0x31c   : > { %v1951_v41 = vpop.f32.mrb[22].mxu0  ;;  %v1993_v28 = vmul.f32 %v3390_v55, %v1949_v40 }
 0x31d   : > { %v1953_v42 = vpop.f32.mrb[23].mxu0  ;;  %v1994_v33 = vmul.f32 %v3383_v52, %v1951_v41  ;;  %v2020_v40 = vadd.f32 %v3400_v60, %v1992_v9 }
 0x31e   : > { %v1995_v37 = vmul.f32 %v3390_v55, %v1953_v42  ;;  %v2021_v46 = vadd.f32 %v3405_v0, %v1993_v28 }
 0x31f   : > { %v2022_v47 = vadd.f32 %v3400_v60, %v1994_v33 }
 0x320   : > { %v2023_v56 = vadd.f32 %v3405_v0, %v1995_v37 }
 0x322   : > { %v3363_v11 = vpop.f32.mrb[24].mxu0 }
 0x323   : > { %v3365_v44 = vpop.f32.mrb[25].mxu0 }
 0x324   : > { %v3367_v45 = vpop.f32.mrb[26].mxu0 }
 0x325   : > { %v3369_v32 = vpop.f32.mrb[27].mxu0 }
 0x32a   : > { %v3374_v48 = vpop.f32.mrb[28].mxu0 }
 0x32b   : > { %v3376_v49 = vpop.f32.mrb[29].mxu0 }
 0x32c   : > { %v3378_v50 = vpop.f32.mrb[30].mxu0  ;;  %v2001_v33 = vmul.f32 %v3390_v55, %v3376_v49 }
 0x32d   : > { %v3385_v53 = vpop.f32.mrb[31].mxu0  ;;  %v2002_v37 = vmul.f32 %v3383_v52, %v3378_v50 }
 0x332   : > { %v2114_v1 = vpop.f32.mrb[32].mxu0 }
 0x333   : > { %v2165_v3 = vmul.f32 %v3395_v57, %v2114_v1  ;;  %v2116_v4 = vpop.f32.mrb[33].mxu0  ;;  %v1996_v1 = vmul.f32 %v3383_v52, %v3363_v11  ;;  %v1999_v11 = vmul.f32 %v3390_v55, %v3369_v32 }
 0x334   : > { %v2166_v7 = vmul.f32 %v3397_v58, %v2116_v4  ;;  %v2118_v10 = vpop.f32.mrb[34].mxu0  ;;  %v1997_v4 = vmul.f32 %v3390_v55, %v3365_v44 }
 0x335   : > { %v2193_v14 = vadd.f32 %v3402_v61, %v2165_v3  ;;  %v2167_v16 = vmul.f32 %v3395_v57, %v2118_v10  ;;  %v2120_v17 = vpop.f32.mrb[35].mxu0 }
 0x336   : > { %v2194_v19 = vadd.f32 %v3407_v63, %v2166_v7  ;;  %v2168_v8 = vmul.f32 %v3397_v58, %v2120_v17 }
 0x337   : > { %v2209_v21 = vadd.f32 %v2193_v14, %v2016_v13  ;;  %v2195_v24 = vadd.f32 %v3402_v61, %v2167_v16  ;;  %v1998_v13 = vmul.f32 %v3383_v52, %v3367_v45 }
 0x338   : > { %v2210_v25 = vadd.f32 %v2194_v19, %v2017_v18  ;;  %v2196_v26 = vadd.f32 %v3407_v63, %v2168_v8  ;;  %v2024_v8 = vadd.f32 %v3400_v60, %v1996_v1 }
 0x339   : > { %v2225_v23 = vmax.f32 %v2209_v21, 0.0  ;;  %v2211_v27 = vadd.f32 %v2195_v24, %v2018_v20  ;;  %v2025_v24 = vadd.f32 %v3405_v0, %v1997_v4 }
 0x33a   : > { %v2226_v29 = vmax.f32 %v2210_v25, 0.0  ;;  %v2212_v30 = vadd.f32 %v2196_v26, %v2019_v22  ;;  %v2124_v31 = vpop.f32.mrb[36].mxu0  ;;  %v2026_v25 = vadd.f32 %v3400_v60, %v1998_v13 }
 0x33b   : > { %2241 = vst [vmem:[%s3425_s24] sm:$0xff] %v2225_v23  ;;  %v2227_v34 = vmax.f32 %v2211_v27, 0.0  ;;  %v2169_v35 = vmul.f32 %v3395_v57, %v2124_v31  ;;  %v2126_v36 = vpop.f32.mrb[37].mxu0  ;;  %v2027_v23 = vadd.f32 %v3405_v0, %v1999_v11 }
 0x33c   : > { %2242 = vst [vmem:[%s3425_s24 + $0x8] sm:$0xff] %v2226_v29  ;;  %v2228_v38 = vmax.f32 %v2212_v30, 0.0  ;;  %v2170_v39 = vmul.f32 %v3397_v58, %v2126_v36  ;;  %v2128_v5 = vpop.f32.mrb[38].mxu0  ;;  %v2000_v29 = vmul.f32 %v3383_v52, %v3374_v48  ;;  %v2003_v48 = vmul.f32 %v3390_v55, %v3385_v53 }
 0x33d   : > { %2243 = vst [vmem:[%s3425_s24 + $0x10] sm:$0xff] %v2227_v34  ;;  %v2197_v43 = vadd.f32 %v3402_v61, %v2169_v35  ;;  %v2171_v41 = vmul.f32 %v3395_v57, %v2128_v5  ;;  %v2130_v12 = vpop.f32.mrb[39].mxu0 }
 0x33e   : > { %2244 = vst [vmem:[%s3425_s24 + $0x18] sm:$0xff] %v2228_v38  ;;  %v2198_v15 = vadd.f32 %v3407_v63, %v2170_v39  ;;  %v2172_v42 = vmul.f32 %v3397_v58, %v2130_v12 }
 0x33f   : > { %v2213_v51 = vadd.f32 %v2197_v43, %v2020_v40  ;;  %v2199_v54 = vadd.f32 %v3402_v61, %v2171_v41  ;;  %v2028_v41 = vadd.f32 %v3400_v60, %v2000_v29 }
 0x340   : > { %v2214_v59 = vadd.f32 %v2198_v15, %v2021_v46  ;;  %v2200_v62 = vadd.f32 %v3407_v63, %v2172_v42  ;;  %v2029_v46 = vadd.f32 %v3405_v0, %v2001_v33  ;;  %v2030_v15 = vadd.f32 %v3400_v60, %v2002_v37 }
 0x341   : > { %v2229_v2 = vmax.f32 %v2213_v51, 0.0  ;;  %v2215_v3 = vadd.f32 %v2199_v54, %v2022_v47  ;;  %v2031_v51 = vadd.f32 %v3405_v0, %v2003_v48 }
 0x342   : > { %v2230_v6 = vmax.f32 %v2214_v59, 0.0  ;;  %v2216_v7 = vadd.f32 %v2200_v62, %v2023_v56  ;;  %v2134_v10 = vpop.f32.mrb[40].mxu0 }
 0x343   : > { %2245 = vst [vmem:[%s3425_s24 + $0x20] sm:$0xff] %v2229_v2  ;;  %v2231_v14 = vmax.f32 %v2215_v3, 0.0  ;;  %v2173_v16 = vmul.f32 %v3395_v57, %v2134_v10  ;;  %v2136_v17 = vpop.f32.mrb[41].mxu0 }
 0x344   : > { %2246 = vst [vmem:[%s3425_s24 + $0x28] sm:$0xff] %v2230_v6  ;;  %v2232_v18 = vmax.f32 %v2216_v7, 0.0  ;;  %v2174_v19 = vmul.f32 %v3397_v58, %v2136_v17  ;;  %v2138_v44 = vpop.f32.mrb[42].mxu0 }
 0x345   : > { %2247 = vst [vmem:[%s3425_s24 + $0x30] sm:$0xff] %v2231_v14  ;;  %v2201_v20 = vadd.f32 %v3402_v61, %v2173_v16  ;;  %v2175_v45 = vmul.f32 %v3395_v57, %v2138_v44  ;;  %v2140_v21 = vpop.f32.mrb[43].mxu0 }
 0x346   : > { %2248 = vst [vmem:[%s3425_s24 + $0x38] sm:$0xff] %v2232_v18  ;;  %v2202_v22 = vadd.f32 %v3407_v63, %v2174_v19  ;;  %v2176_v32 = vmul.f32 %v3397_v58, %v2140_v21 }
 0x347   : > { %v2217_v26 = vadd.f32 %v2201_v20, %v2024_v8  ;;  %v2203_v9 = vadd.f32 %v3402_v61, %v2175_v45 }
 0x348   : > { %v2218_v27 = vadd.f32 %v2202_v22, %v2025_v24  ;;  %v2204_v28 = vadd.f32 %v3407_v63, %v2176_v32 }
 0x349   : > { %v2233_v30 = vmax.f32 %v2217_v26, 0.0  ;;  %v2219_v31 = vadd.f32 %v2203_v9, %v2026_v25 }
 0x34a   : > { %v2234_v34 = vmax.f32 %v2218_v27, 0.0  ;;  %v2220_v35 = vadd.f32 %v2204_v28, %v2027_v23  ;;  %v2144_v36 = vpop.f32.mrb[44].mxu0 }
 0x34b   : > { %2249 = vst [vmem:[%s3425_s24 + $0x40] sm:$0xff] %v2233_v30  ;;  %v2235_v38 = vmax.f32 %v2219_v31, 0.0  ;;  %v2177_v39 = vmul.f32 %v3395_v57, %v2144_v36  ;;  %v2146_v5 = vpop.f32.mrb[45].mxu0 }
 0x34c   : > { %2250 = vst [vmem:[%s3425_s24 + $0x48] sm:$0xff] %v2234_v34  ;;  %v2236_v40 = vmax.f32 %v2220_v35, 0.0  ;;  %v2178_v43 = vmul.f32 %v3397_v58, %v2146_v5  ;;  %v2148_v49 = vpop.f32.mrb[46].mxu0 }
 0x34d   : > { %2251 = vst [vmem:[%s3425_s24 + $0x50] sm:$0xff] %v2235_v38  ;;  %v2205_v12 = vadd.f32 %v3402_v61, %v2177_v39  ;;  %v2179_v50 = vmul.f32 %v3395_v57, %v2148_v49  ;;  %v2150_v52 = vpop.f32.mrb[47].mxu0 }
 0x34e   : > { %2252 = vst [vmem:[%s3425_s24 + $0x58] sm:$0xff] %v2236_v40  ;;  %v2206_v53 = vadd.f32 %v3407_v63, %v2178_v43  ;;  %v2180_v55 = vmul.f32 %v3397_v58, %v2150_v52 }
 0x34f   : > { %v2221_v42 = vadd.f32 %v2205_v12, %v2028_v41  ;;  %v2207_v47 = vadd.f32 %v3402_v61, %v2179_v50 }
 0x350   : > { %v2222_v57 = vadd.f32 %v2206_v53, %v2029_v46  ;;  %v2208_v54 = vadd.f32 %v3407_v63, %v2180_v55 }
 0x351   : > { %v2237_v56 = vmax.f32 %v2221_v42, 0.0  ;;  %v2223_v59 = vadd.f32 %v2207_v47, %v2030_v15 }
 0x352   : > { %v2238_v62 = vmax.f32 %v2222_v57, 0.0  ;;  %v2224_v1 = vadd.f32 %v2208_v54, %v2031_v51 }
 0x353   : > { %2253 = vst [vmem:[%s3425_s24 + $0x60] sm:$0xff] %v2237_v56  ;;  %v2239_v2 = vmax.f32 %v2223_v59, 0.0 }
 0x354   : > { %2254 = vst [vmem:[%s3425_s24 + $0x68] sm:$0xff] %v2238_v62  ;;  %v2240_v3 = vmax.f32 %v2224_v1, 0.0 }
 0x355   : > { %2255 = vst [vmem:[%s3425_s24 + $0x70] sm:$0xff] %v2239_v2 }
 0x356   : > { %2256 = vst [vmem:[%s3425_s24 + $0x78] sm:$0xff] %v2240_v3 }
 0x357 PF: > { %s23_s25 = sadd.s32 1, %s2881_s25  }
 0x358   : > { %p20_p4 = scmp.ge.s32.totalorder %s23_s25, 4  }
 0x35a   :  { %22 = sbr.rel (!%p20_p4) target bundleno = 1 (0x1), region = 118 }

// kernel: _lambda_.9
= control target key start
LH: loop header
LB: loop body
LE: loop exit
PB: predicated region body
PF: predicated region fallthrough
CT: control target
= control target key end

     0   :  { %9 = vsyncpa [#allocation4], 0  ;;  %s1616_s0 = inlined_call_operand.vmem [shape: bf16[128,256], index: 0, kind: input, shape index: {}]   ;;  %s1617_s1 = inlined_call_operand.vmem [shape: bf16[256,256], index: 1, kind: input, shape index: {}]   ;;  %s1618_s2 = inlined_call_operand.vmem [shape: f32[1,256], index: 2, kind: input, shape index: {}]   ;;  %s1619_s3 = inlined_call_operand.vmem [shape: f32[1,256], index: 3, kind: input, shape index: {}]   ;;  %s1620_s4 = inlined_call_operand.hbm [shape: f32[128,256], index: 4, kind: output, shape index: {}]  }
   0x1   :  { %11 = vsyncpa [#allocation4 + $0x1], 0  ;;  %s1291_s15 = smov 0   ;;  %s1293_s16 = smov 0  }
   0x2   :  { %s1295_s17 = smov 0   ;;  %s1297_s18 = smov 0  }
   0x3   :  { %s1299_s19 = smov 0   ;;  %s1301_s20 = smov 0  }
   0x4 LB: > { %s956_s21 = sadd.s32 4294967295, %s1260_s20   ;;  %s957_s22 = sadd.s32 4294967294, %s1260_s20   ;;  %s1260_s20 = sphi %s1301_s20, %s17_s20   ;;  %s1256_s19 = sphi %s1299_s19, %s1627_s19   ;;  %s1252_s18 = sphi %s1297_s18, %s1626_s18   ;;  %s1248_s17 = sphi %s1295_s17, %s1625_s17   ;;  %s1244_s16 = sphi %s1293_s16, %s1624_s16   ;;  %s1240_s15 = sphi %s1291_s15, %s1623_s15  }
   0x5   : > { %s26_s23 = sadd.s32 1, %s1256_s19  ;;  %s62_s24 = sadd.s32 1, %s1248_s17 }
   0x6   : > { %p27_p0 = scmp.ge.s32.totalorder %s26_s23, 2  ;;  %p69_p1 = scmp.ne.s32.totalorder %s1248_s17, %s1244_s16 }
   0x7   : > { %p70_p2 = scmp.eq.s32.totalorder %s1260_s20, 0  ;;  %p153_p3 = scmp.eq.s32.totalorder %s956_s21, 1 }
   0x8   : > { %s1629_s23 = smov (%p27_p0, %s26_s23), 0  ;;  %p158_p6 = scmp.ne.s32.totalorder %s1244_s16, %s1240_s15 }
   0x9   : > { %p71_p4 = por %p70_p2, %p69_p1  ;;  %p1330_p5 = por %p153_p3, %p69_p1 }
   0xa   : > { %s59_s26 = ssub.s32 %s1256_s19, %s1629_s23  ;;  %p159_p8 = scmp.eq.s32.totalorder %s957_s22, 1 }
   0xb   : > { %p60_p7 = scmp.eq.s32.totalorder %s59_s26, 0  ;;  %p960_p10 = scmp.ge.s32.totalorder %s1260_s20, 2 }
   0xc   : > { %p1341_p9 = por %p159_p8, %p158_p6 }
   0xd   : > { %s1339_s27 = scalar_select %p60_p7, %s1248_s17, %s62_s24  }
   0xe   : > { %185 = sbr.rel (%p960_p10) target bundleno = 46 (0x2e), region = 20 }
  0x15   : > { %188 = sbr.rel (!%p71_p4) target bundleno = 46 (0x2e), region = 24  ;;  %s190_s29 = sand.u32 (%p71_p4), 1, %s1248_s17  }
  0x16   : > { %s962_s30 = sshll.u32 (%p71_p4), %s1256_s19, 2  ;;  %s961_s5 = sshll.u32 (%p71_p4), %s190_s29, 7 }
  0x17   : > { %s1353_s8 = scalar_lea.vmem (%p71_p4), %s1617_s1, %s962_s30  ;;  %s1357_s9 = scalar_lea.vmem (%p71_p4), [#allocation2], %s961_s5 }
  0x18   : > { %v210_v0 = vld [vmem:[%s1353_s8] sm:$0xf] (%p71_p4)  ;;  %v212_v1 = vld [vmem:[%s1353_s8 + $0x8] sm:$0xf] (%p71_p4)  ;;  %v214_v2 = vld [vmem:[%s1353_s8 + $0x10] sm:$0xf] (%p71_p4) }
  0x19   : > { %211 = vst [vmem:[%s1357_s9] sm:$0xf] (%p71_p4), %v210_v0  ;;  %213 = vst [vmem:[%s1357_s9 + $0x4] sm:$0xf] (%p71_p4), %v212_v1  ;;  %v216_v3 = vld [vmem:[%s1353_s8 + $0x18] sm:$0xf] (%p71_p4) }
  0x1a   : > { %v218_v4 = vld [vmem:[%s1353_s8 + $0x20] sm:$0xf] (%p71_p4)  ;;  %215 = vst [vmem:[%s1357_s9 + $0x8] sm:$0xf] (%p71_p4), %v214_v2  ;;  %217 = vst [vmem:[%s1357_s9 + $0xc] sm:$0xf] (%p71_p4), %v216_v3 }
  0x1b   : > { %219 = vst [vmem:[%s1357_s9 + $0x10] sm:$0xf] (%p71_p4), %v218_v4  ;;  %v220_v5 = vld [vmem:[%s1353_s8 + $0x28] sm:$0xf] (%p71_p4)  ;;  %v222_v6 = vld [vmem:[%s1353_s8 + $0x30] sm:$0xf] (%p71_p4) }
  0x1c   : > { %v224_v7 = vld [vmem:[%s1353_s8 + $0x38] sm:$0xf]  ;;  %221 = vst [vmem:[%s1357_s9 + $0x14] sm:$0xf] %v220_v5  ;;  %223 = vst [vmem:[%s1357_s9 + $0x18] sm:$0xf] %v222_v6 }
  0x1d   : > { %225 = vst [vmem:[%s1357_s9 + $0x1c] sm:$0xf] %v224_v7  ;;  %v226_v8 = vld [vmem:[%s1353_s8 + $0x40] sm:$0xf]  ;;  %v228_v9 = vld [vmem:[%s1353_s8 + $0x48] sm:$0xf] }
  0x1e   : > { %v230_v10 = vld [vmem:[%s1353_s8 + $0x50] sm:$0xf]  ;;  %227 = vst [vmem:[%s1357_s9 + $0x20] sm:$0xf] %v226_v8  ;;  %229 = vst [vmem:[%s1357_s9 + $0x24] sm:$0xf] %v228_v9 }
  0x1f   : > { %231 = vst [vmem:[%s1357_s9 + $0x28] sm:$0xf] %v230_v10  ;;  %v232_v11 = vld [vmem:[%s1353_s8 + $0x58] sm:$0xf]  ;;  %v234_v12 = vld [vmem:[%s1353_s8 + $0x60] sm:$0xf] }
  0x20   : > { %v236_v13 = vld [vmem:[%s1353_s8 + $0x68] sm:$0xf]  ;;  %233 = vst [vmem:[%s1357_s9 + $0x2c] sm:$0xf] %v232_v11  ;;  %235 = vst [vmem:[%s1357_s9 + $0x30] sm:$0xf] %v234_v12 }
  0x21   : > { %237 = vst [vmem:[%s1357_s9 + $0x34] sm:$0xf] %v236_v13  ;;  %v238_v14 = vld [vmem:[%s1353_s8 + $0x70] sm:$0xf]  ;;  %v240_v15 = vld [vmem:[%s1353_s8 + $0x78] sm:$0xf] }
  0x22   : > { %v242_v16 = vld [vmem:[%s1353_s8 + $0x80] sm:$0xf]  ;;  %239 = vst [vmem:[%s1357_s9 + $0x38] sm:$0xf] %v238_v14  ;;  %241 = vst [vmem:[%s1357_s9 + $0x3c] sm:$0xf] %v240_v15 }
  0x23   : > { %243 = vst [vmem:[%s1357_s9 + $0x40] sm:$0xf] %v242_v16  ;;  %v244_v17 = vld [vmem:[%s1353_s8 + $0x88] sm:$0xf]  ;;  %v246_v18 = vld [vmem:[%s1353_s8 + $0x90] sm:$0xf] }
  0x24   : > { %v248_v19 = vld [vmem:[%s1353_s8 + $0x98] sm:$0xf]  ;;  %245 = vst [vmem:[%s1357_s9 + $0x44] sm:$0xf] %v244_v17  ;;  %247 = vst [vmem:[%s1357_s9 + $0x48] sm:$0xf] %v246_v18 }
  0x25   : > { %249 = vst [vmem:[%s1357_s9 + $0x4c] sm:$0xf] %v248_v19  ;;  %v250_v20 = vld [vmem:[%s1353_s8 + $0xa0] sm:$0xf]  ;;  %v252_v21 = vld [vmem:[%s1353_s8 + $0xa8] sm:$0xf] }
  0x26   : > { %v254_v22 = vld [vmem:[%s1353_s8 + $0xb0] sm:$0xf]  ;;  %251 = vst [vmem:[%s1357_s9 + $0x50] sm:$0xf] %v250_v20  ;;  %253 = vst [vmem:[%s1357_s9 + $0x54] sm:$0xf] %v252_v21 }
  0x27   : > { %255 = vst [vmem:[%s1357_s9 + $0x58] sm:$0xf] %v254_v22  ;;  %v256_v23 = vld [vmem:[%s1353_s8 + $0xb8] sm:$0xf]  ;;  %v258_v24 = vld [vmem:[%s1353_s8 + $0xc0] sm:$0xf] }
  0x28   : > { %v260_v25 = vld [vmem:[%s1353_s8 + $0xc8] sm:$0xf]  ;;  %257 = vst [vmem:[%s1357_s9 + $0x5c] sm:$0xf] %v256_v23  ;;  %259 = vst [vmem:[%s1357_s9 + $0x60] sm:$0xf] %v258_v24 }
  0x29   : > { %261 = vst [vmem:[%s1357_s9 + $0x64] sm:$0xf] %v260_v25  ;;  %v262_v26 = vld [vmem:[%s1353_s8 + $0xd0] sm:$0xf]  ;;  %v264_v27 = vld [vmem:[%s1353_s8 + $0xd8] sm:$0xf] }
  0x2a   : > { %v266_v28 = vld [vmem:[%s1353_s8 + $0xe0] sm:$0xf]  ;;  %263 = vst [vmem:[%s1357_s9 + $0x68] sm:$0xf] %v262_v26  ;;  %265 = vst [vmem:[%s1357_s9 + $0x6c] sm:$0xf] %v264_v27 }
  0x2b   : > { %267 = vst [vmem:[%s1357_s9 + $0x70] sm:$0xf] %v266_v28  ;;  %v268_v29 = vld [vmem:[%s1353_s8 + $0xe8] sm:$0xf]  ;;  %v270_v30 = vld [vmem:[%s1353_s8 + $0xf0] sm:$0xf] }
  0x2c   : > { %v272_v31 = vld [vmem:[%s1353_s8 + $0xf8] sm:$0xf]  ;;  %269 = vst [vmem:[%s1357_s9 + $0x74] sm:$0xf] %v268_v29  ;;  %271 = vst [vmem:[%s1357_s9 + $0x78] sm:$0xf] %v270_v30 }
  0x2d   : > { %273 = vst [vmem:[%s1357_s9 + $0x7c] sm:$0xf] %v272_v31 }
  0x2e PF: > { %p963_p11 = scmp.ge.s32.totalorder %s1260_s20, 1  ;;  %p371_p12 = scmp.lt.s32.totalorder %s1260_s20, 3 }
  0x30   : > { %p372_p13 = pnand %p963_p11, %p371_p12 }
  0x31   : > { %s378_s10 = sand.u32 (!%p372_p13), 1, %s1244_s16   ;;  %v1160_v32 = vld [vmem:[%s1616_s0 + $0x4] ss:$8 sps:$4 sm:$0xff] (!%p372_p13)   ;;  %v1158_v50 = vld [vmem:[%s1616_s0] ss:$8 sps:$4 sm:$0xff] (!%p372_p13)   ;;  %p422_p0 = scmp.lt.s32.totalorder (!%p372_p13), %s1252_s18, 1 }
  0x32   : > { %375 = sbr.rel (%p372_p13) target bundleno = 349 (0x15d), region = 73  ;;  %s1426_s11 = sshll.u32 (!%p372_p13), %s378_s10, 7  ;;  %v1163_v33 = vld [vmem:[%s1616_s0 + $0x44] ss:$8 sps:$4 sm:$0xff] (!%p372_p13)   ;;  %686 = vmatprep.mubr.bf16.mxu0 (!%p372_p13), %v1160_v32  ;;  %v1161_v51 = vld [vmem:[%s1616_s0 + $0x40] ss:$8 sps:$4 sm:$0xff] (!%p372_p13)  }
  0x33   : > { %s1435_s22 = scalar_lea.vmem (!%p372_p13), [#allocation2], %s1426_s11  ;;  %718 = vmatprep.mubr.bf16.mxu1 (!%p372_p13), %v1163_v33  ;;  %v1164_v52 = vld [vmem:[%s1616_s0 + $0x14] ss:$8 sps:$4 sm:$0xff] (!%p372_p13)   ;;  %v1168_v54 = vld [vmem:[%s1616_s0 + $0x10] ss:$8 sps:$4 sm:$0xff] (!%p372_p13)   ;;  %s1516_s8 = scalar_lea.vmem (!%p372_p13), [#allocation3], %s1426_s11 }
  0x34   : > { %v1142_v34 = vld [vmem:[%s1435_s22 + $0x40] sm:$0xff] (!%p372_p13)   ;;  %v1144_v36 = vld [vmem:[%s1435_s22 + $0x48] sm:$0xff] (!%p372_p13)   ;;  %v1146_v38 = vld [vmem:[%s1435_s22 + $0x50] sm:$0xff] (!%p372_p13)   ;;  %s1001_s11 = sshll.u32 (!%p372_p13), %s1252_s18, 7  ;;  %s845_s9 = sshll.u32 (!%p372_p13), %s1516_s8, 4  ;;  %s1561_s9 = int_to_ptr.vmem [resolvable:$true] %s845_s9 }
  0x35   : > { %v1143_v35 = vld [vmem:[%s1435_s22] sm:$0xff] (!%p372_p13)   ;;  %1004 = vmatprep.subr.bf16.mxu0 (!%p372_p13), %v1142_v34  ;;  %1068 = vmatprep.subr.bf16.mxu1 (!%p372_p13), %v1142_v34  ;;  %v1145_v37 = vld [vmem:[%s1435_s22 + $0x8] sm:$0xff] (!%p372_p13)   ;;  %v1147_v39 = vld [vmem:[%s1435_s22 + $0x10] sm:$0xff] (!%p372_p13)   ;;  %s1559_s13 = scalar_lea.hbm (!%p372_p13), %s1620_s4, %s1001_s11  ;;  %s1569_s14 = scalar_lea.sflag (!%p372_p13), [#allocation4], %s378_s10 }
  0x36   : > { %1005 = vmatpush3.bf16.msra.mxu0 (!%p372_p13), %v1143_v35  ;;  %1076 = vmatpush3.bf16.msra.mxu1 (!%p372_p13), %v1143_v35  ;;  %v1148_v40 = vld [vmem:[%s1435_s22 + $0x58] sm:$0xff] (!%p372_p13)   ;;  %v1150_v42 = vld [vmem:[%s1435_s22 + $0x60] sm:$0xff] (!%p372_p13)   ;;  %v1152_v44 = vld [vmem:[%s1435_s22 + $0x68] sm:$0xff] (!%p372_p13)   ;;  %s1182_s21 = scalar_lea.vmem (!%p372_p13), %s1561_s9, 2048 }
  0x37   : > { %1006 = vmatprep.subr.bf16.mxu0 (!%p372_p13), %v1144_v36  ;;  %1069 = vmatprep.subr.bf16.mxu1 (!%p372_p13), %v1144_v36  ;;  %v1149_v41 = vld [vmem:[%s1435_s22 + $0x18] sm:$0xff] (!%p372_p13)   ;;  %v1151_v43 = vld [vmem:[%s1435_s22 + $0x20] sm:$0xff] (!%p372_p13)   ;;  %v1153_v45 = vld [vmem:[%s1435_s22 + $0x28] sm:$0xff] (!%p372_p13)   ;;  %p1183_p1 = scmp.ne.s32.totalorder (!%p372_p13), %s1561_s9, %s1182_s21 }
  0x38   : > { %v1154_v46 = vld [vmem:[%s1435_s22 + $0x70] sm:$0xff] (!%p372_p13)   ;;  %v1156_v48 = vld [vmem:[%s1435_s22 + $0x78] sm:$0xff] (!%p372_p13)   ;;  %v1170_v56 = vld [vmem:[%s1616_s0 + $0x24] ss:$8 sps:$4 sm:$0xff] (!%p372_p13)  }
  0x39   : > { %v1155_v47 = vld [vmem:[%s1435_s22 + $0x30] sm:$0xff]   ;;  %v1157_v49 = vld [vmem:[%s1435_s22 + $0x38] sm:$0xff]   ;;  %v1172_v57 = vld [vmem:[%s1616_s0 + $0x64] ss:$8 sps:$4 sm:$0xff]   ;;  %s423_s24 = scalar_select %p422_p0, %s1252_s18, 1 }
  0x3a   : > { %1007 = vmatpush3.bf16.msra.mxu0 %v1145_v37  ;;  %1077 = vmatpush3.bf16.msra.mxu1 %v1145_v37  ;;  %v1166_v53 = vld [vmem:[%s1616_s0 + $0x54] ss:$8 sps:$4 sm:$0xff]   ;;  %v1169_v55 = vld [vmem:[%s1616_s0 + $0x50] ss:$8 sps:$4 sm:$0xff]   ;;  %v1174_v58 = vld [vmem:[%s1616_s0 + $0x20] ss:$8 sps:$4 sm:$0xff]   ;;  %p1184_p2 = pnand %p1183_p1, %p1330_p5 }
  0x3b   : > { %1008 = vmatprep.subr.bf16.mxu0 %v1146_v38  ;;  %1070 = vmatprep.subr.bf16.mxu1 %v1146_v38  ;;  %v1175_v59 = vld [vmem:[%s1616_s0 + $0x60] ss:$8 sps:$4 sm:$0xff]   ;;  %v1176_v60 = vld [vmem:[%s1616_s0 + $0x34] ss:$8 sps:$4 sm:$0xff]   ;;  %v1180_v62 = vld [vmem:[%s1616_s0 + $0x30] ss:$8 sps:$4 sm:$0xff]   ;;  %s424_s30 = scalar_lea.vmem %s1618_s2, %s423_s24  ;;  %s427_s7 = scalar_lea.vmem %s1619_s3, %s423_s24 }
  0x3c   : > { %v1178_v61 = vld [vmem:[%s1616_s0 + $0x74] ss:$8 sps:$4 sm:$0xff]   ;;  %v1181_v63 = vld [vmem:[%s1616_s0 + $0x70] ss:$8 sps:$4 sm:$0xff]   ;;  %v1503_v3 = vld [vmem:[%s424_s30] ss:$0 sm:$0xff]  ;;  %p1185_p3 = pneg %p1184_p2 }
  0x3d   : > { %v1505_v9 = vld [vmem:[%s427_s7] ss:$0 sm:$0xff]  ;;  %s1262_s22 = smov [#allocation3]  }
  0x3e   : > { %1009 = vmatpush3.bf16.msra.mxu0 %v1147_v39  ;;  %1078 = vmatpush3.bf16.msra.mxu1 %v1147_v39  ;;  %s1186_s24 = sshll.u32 %s1262_s22, 4  ;;  %s1187_s24 = int_to_ptr.vmem [resolvable:$false] %s1186_s24 }
  0x3f   : > { %1010 = vmatprep.subr.bf16.mxu0 %v1148_v40  ;;  %1071 = vmatprep.subr.bf16.mxu1 %v1148_v40  ;;  %s1188_s26 = scalar_lea.vmem %s1187_s24, 4096  ;;  %p1189_p4 = scmp.lt.s32.totalorder %s1561_s9, %s1187_s24 }
  0x40   : > { %p1190_p6 = scmp.lt.s32.totalorder %s1188_s26, %s1182_s21 }
  0x42   : > { %1011 = vmatpush3.bf16.msra.mxu0 %v1149_v41  ;;  %1079 = vmatpush3.bf16.msra.mxu1 %v1149_v41  ;;  %p1191_p7 = por %p1190_p6, %p1189_p4 }
  0x43   : > { %1012 = vmatprep.subr.bf16.mxu0 %v1150_v42  ;;  %1072 = vmatprep.subr.bf16.mxu1 %v1150_v42 }
  0x44   : > { %p1192_p8 = pnand %p1191_p7, %p1185_p3 }
  0x46   : > { %1013 = vmatpush3.bf16.msra.mxu0 %v1151_v43  ;;  %1080 = vmatpush3.bf16.msra.mxu1 %v1151_v43 }
  0x47   : > { %1014 = vmatprep.subr.bf16.mxu0 %v1152_v44  ;;  %1073 = vmatprep.subr.bf16.mxu1 %v1152_v44 }
  0x4a   : > { %1015 = vmatpush3.bf16.msra.mxu0 %v1153_v45  ;;  %1081 = vmatpush3.bf16.msra.mxu1 %v1153_v45 }
  0x4b   : > { %1016 = vmatprep.subr.bf16.mxu0 %v1154_v46  ;;  %1074 = vmatprep.subr.bf16.mxu1 %v1154_v46 }
  0x4e   : > { %1017 = vmatpush3.bf16.msra.mxu0 %v1155_v47  ;;  %1082 = vmatpush3.bf16.msra.mxu1 %v1155_v47 }
  0x4f   : > { %1018 = vmatprep.subr.bf16.mxu0 %v1156_v48  ;;  %1075 = vmatprep.subr.bf16.mxu1 %v1156_v48 }
  0x52   : > { %1019 = vmatpush3.bf16.msra.mxu0 %v1157_v49  ;;  %1083 = vmatpush3.bf16.msra.mxu1 %v1157_v49 }
  0x55   : > { %687 = vmatmul.mubr.bf16.vlgmr.msra.gmra.mrb[0].mxu0 %v1158_v50  ;;  %719 = vmatmul.mubr.bf16.vlgmr.msra.gmra.mrb[0].mxu1 %v1161_v51 }
  0x56   : > { %694 = vmatprep.mubr.bf16.mxu0 %v1164_v52  ;;  %726 = vmatprep.mubr.bf16.mxu1 %v1166_v53 }
  0x5d   : > { %695 = vmatmul.mubr.bf16.gmra.mrb[4].mxu0 %v1168_v54  ;;  %727 = vmatmul.mubr.bf16.gmra.mrb[4].mxu1 %v1169_v55 }
  0x5e   : > { %702 = vmatprep.mubr.bf16.mxu0 %v1170_v56  ;;  %734 = vmatprep.mubr.bf16.mxu1 %v1172_v57 }
  0x65   : > { %703 = vmatmul.mubr.bf16.gmra.mrb[8].mxu0 %v1174_v58  ;;  %735 = vmatmul.mubr.bf16.gmra.mrb[8].mxu1 %v1175_v59 }
  0x66   : > { %710 = vmatprep.mubr.bf16.mxu0 %v1176_v60  ;;  %742 = vmatprep.mubr.bf16.mxu1 %v1178_v61 }
  0x6d   : > { %711 = vmatmul.mubr.bf16.gmra.mrb[12].mxu0 %v1180_v62  ;;  %743 = vmatmul.mubr.bf16.gmra.mrb[12].mxu1 %v1181_v63 }
 0x128   : > { %v1020_v0 = vpop.f32.mrb[0].mxu0  ;;  %v1044_v1 = vpop.f32.mrb[0].mxu1 }
 0x129   : > { %v1021_v2 = vpop.f32.mrb[1].mxu0  ;;  %v1045_v4 = vpop.f32.mrb[1].mxu1 }
 0x12a   : > { %v1022_v5 = vadd.f32 %v1021_v2, %v1020_v0  ;;  %v1046_v6 = vadd.f32 %v1045_v4, %v1044_v1  ;;  %v1023_v7 = vpop.f32.mrb[2].mxu0  ;;  %v1047_v8 = vpop.f32.mrb[2].mxu1 }
 0x12b   : > { %v1024_v10 = vpop.f32.mrb[3].mxu0  ;;  %v1048_v11 = vpop.f32.mrb[3].mxu1 }
 0x12c   : > { %v758_v12 = vmul.f32 %v1022_v5, %v1503_v3  ;;  %v766_v13 = vmul.f32 %v1046_v6, %v1503_v3  ;;  %v1025_v14 = vadd.f32 %v1024_v10, %v1023_v7  ;;  %v1049_v15 = vadd.f32 %v1048_v11, %v1047_v8 }
 0x12e   : > { %v781_v16 = vadd.f32 %v1505_v9, %v758_v12  ;;  %v789_v17 = vadd.f32 %v1505_v9, %v766_v13  ;;  %v759_v18 = vmul.f32 %v1025_v14, %v1503_v3  ;;  %v767_v19 = vmul.f32 %v1049_v15, %v1503_v3 }
 0x130   : > { %v797_v20 = vmax.f32 %v781_v16, 0.0  ;;  %v805_v21 = vmax.f32 %v789_v17, 0.0  ;;  %v782_v22 = vadd.f32 %v1505_v9, %v759_v18  ;;  %v790_v23 = vadd.f32 %v1505_v9, %v767_v19  ;;  %v1026_v24 = vpop.f32.mrb[4].mxu0  ;;  %v1050_v25 = vpop.f32.mrb[4].mxu1 }
 0x131   : > { %v1027_v26 = vpop.f32.mrb[5].mxu0  ;;  %v1051_v27 = vpop.f32.mrb[5].mxu1 }
 0x132   : > { %813 = vst [vmem:[%s1516_s8] sm:$0xff] %v797_v20  ;;  %821 = vst [vmem:[%s1516_s8 + $0x40] sm:$0xff] %v805_v21  ;;  %v798_v28 = vmax.f32 %v782_v22, 0.0  ;;  %v806_v29 = vmax.f32 %v790_v23, 0.0  ;;  %v1028_v30 = vadd.f32 %v1027_v26, %v1026_v24  ;;  %v1052_v31 = vadd.f32 %v1051_v27, %v1050_v25  ;;  %v1029_v32 = vpop.f32.mrb[6].mxu0  ;;  %v1053_v33 = vpop.f32.mrb[6].mxu1 }
 0x133   : > { %v1030_v34 = vpop.f32.mrb[7].mxu0  ;;  %v1054_v35 = vpop.f32.mrb[7].mxu1 }
 0x134   : > { %814 = vst [vmem:[%s1516_s8 + $0x8] sm:$0xff] %v798_v28  ;;  %822 = vst [vmem:[%s1516_s8 + $0x48] sm:$0xff] %v806_v29  ;;  %v760_v36 = vmul.f32 %v1028_v30, %v1503_v3  ;;  %v768_v37 = vmul.f32 %v1052_v31, %v1503_v3  ;;  %v1031_v38 = vadd.f32 %v1030_v34, %v1029_v32 }
 0x135   : > { %v1055_v39 = vadd.f32 %v1054_v35, %v1053_v33 }
 0x136   : > { %v783_v40 = vadd.f32 %v1505_v9, %v760_v36  ;;  %v791_v41 = vadd.f32 %v1505_v9, %v768_v37  ;;  %v761_v42 = vmul.f32 %v1031_v38, %v1503_v3 }
 0x137   : > { %v769_v43 = vmul.f32 %v1055_v39, %v1503_v3 }
 0x138   : > { %v799_v44 = vmax.f32 %v783_v40, 0.0  ;;  %v807_v45 = vmax.f32 %v791_v41, 0.0  ;;  %v784_v46 = vadd.f32 %v1505_v9, %v761_v42  ;;  %v1032_v48 = vpop.f32.mrb[8].mxu0  ;;  %v1056_v49 = vpop.f32.mrb[8].mxu1 }
 0x139   : > { %v792_v47 = vadd.f32 %v1505_v9, %v769_v43  ;;  %v1033_v50 = vpop.f32.mrb[9].mxu0  ;;  %v1057_v51 = vpop.f32.mrb[9].mxu1 }
 0x13a   : > { %815 = vst [vmem:[%s1516_s8 + $0x10] sm:$0xff] %v799_v44  ;;  %823 = vst [vmem:[%s1516_s8 + $0x50] sm:$0xff] %v807_v45  ;;  %v800_v52 = vmax.f32 %v784_v46, 0.0  ;;  %v1034_v54 = vadd.f32 %v1033_v50, %v1032_v48  ;;  %v1058_v55 = vadd.f32 %v1057_v51, %v1056_v49  ;;  %v1035_v56 = vpop.f32.mrb[10].mxu0  ;;  %v1059_v57 = vpop.f32.mrb[10].mxu1 }
 0x13b   : > { %v808_v53 = vmax.f32 %v792_v47, 0.0  ;;  %v1036_v58 = vpop.f32.mrb[11].mxu0  ;;  %v1060_v59 = vpop.f32.mrb[11].mxu1 }
 0x13c   : > { %816 = vst [vmem:[%s1516_s8 + $0x18] sm:$0xff] %v800_v52  ;;  %v762_v60 = vmul.f32 %v1034_v54, %v1503_v3  ;;  %v770_v61 = vmul.f32 %v1058_v55, %v1503_v3  ;;  %v1037_v62 = vadd.f32 %v1036_v58, %v1035_v56  ;;  %v1061_v63 = vadd.f32 %v1060_v59, %v1059_v57 }
 0x13d   : > { %824 = vst [vmem:[%s1516_s8 + $0x58] sm:$0xff] %v808_v53 }
 0x13e   : > { %v785_v0 = vadd.f32 %v1505_v9, %v762_v60  ;;  %v793_v1 = vadd.f32 %v1505_v9, %v770_v61  ;;  %v763_v2 = vmul.f32 %v1037_v62, %v1503_v3  ;;  %v771_v4 = vmul.f32 %v1061_v63, %v1503_v3 }
 0x140   : > { %v801_v5 = vmax.f32 %v785_v0, 0.0  ;;  %v809_v6 = vmax.f32 %v793_v1, 0.0  ;;  %v786_v7 = vadd.f32 %v1505_v9, %v763_v2  ;;  %v794_v8 = vadd.f32 %v1505_v9, %v771_v4  ;;  %v1038_v10 = vpop.f32.mrb[12].mxu0  ;;  %v1062_v11 = vpop.f32.mrb[12].mxu1 }
 0x141   : > { %v1039_v12 = vpop.f32.mrb[13].mxu0  ;;  %v1063_v13 = vpop.f32.mrb[13].mxu1 }
 0x142   : > { %817 = vst [vmem:[%s1516_s8 + $0x20] sm:$0xff] %v801_v5  ;;  %825 = vst [vmem:[%s1516_s8 + $0x60] sm:$0xff] %v809_v6  ;;  %v802_v14 = vmax.f32 %v786_v7, 0.0  ;;  %v810_v15 = vmax.f32 %v794_v8, 0.0  ;;  %v1040_v16 = vadd.f32 %v1039_v12, %v1038_v10  ;;  %v1064_v17 = vadd.f32 %v1063_v13, %v1062_v11  ;;  %v1041_v18 = vpop.f32.mrb[14].mxu0  ;;  %v1065_v19 = vpop.f32.mrb[14].mxu1 }
 0x143   : > { %v1042_v20 = vpop.f32.mrb[15].mxu0  ;;  %v1066_v21 = vpop.f32.mrb[15].mxu1 }
 0x144   : > { %818 = vst [vmem:[%s1516_s8 + $0x28] sm:$0xff] %v802_v14  ;;  %826 = vst [vmem:[%s1516_s8 + $0x68] sm:$0xff] %v810_v15  ;;  %v764_v22 = vmul.f32 %v1040_v16, %v1503_v3  ;;  %v772_v23 = vmul.f32 %v1064_v17, %v1503_v3  ;;  %v1043_v24 = vadd.f32 %v1042_v20, %v1041_v18 }
 0x145   : > { %v1067_v25 = vadd.f32 %v1066_v21, %v1065_v19 }
 0x146   : > { %v787_v26 = vadd.f32 %v1505_v9, %v764_v22  ;;  %v795_v27 = vadd.f32 %v1505_v9, %v772_v23  ;;  %v765_v28 = vmul.f32 %v1043_v24, %v1503_v3 }
 0x147   : > { %v773_v29 = vmul.f32 %v1067_v25, %v1503_v3 }
 0x148   : > { %v803_v30 = vmax.f32 %v787_v26, 0.0  ;;  %v811_v31 = vmax.f32 %v795_v27, 0.0  ;;  %v788_v32 = vadd.f32 %v1505_v9, %v765_v28 }
 0x149   : > { %v796_v33 = vadd.f32 %v1505_v9, %v773_v29 }
 0x14a   : > { %819 = vst [vmem:[%s1516_s8 + $0x30] sm:$0xff] %v803_v30  ;;  %827 = vst [vmem:[%s1516_s8 + $0x70] sm:$0xff] %v811_v31  ;;  %v804_v3 = vmax.f32 %v788_v32, 0.0 }
 0x14b   : > { %v812_v34 = vmax.f32 %v796_v33, 0.0 }
 0x14c   : > { %820 = vst [vmem:[%s1516_s8 + $0x38] sm:$0xff] %v804_v3 }
 0x14d   : > { %828 = vst [vmem:[%s1516_s8 + $0x78] sm:$0xff] %v812_v34 }
 0x14e   : > { %1195 = shalt.err (!%p1192_p8)
}
 0x14f   : > { %s1196_s10 = scalar_lea.hbm %s1559_s13, 2048  ;;  %s1200_s5 = scalar_lea.hbm %s1620_s4, 4096 }
 0x150   : > { %p1197_p11 = scmp.ne.s32.totalorder %s1559_s13, %s1196_s10  ;;  %p1201_p0 = scmp.lt.u32.totalorder %s1559_s13, %s1620_s4 }
 0x151   : > { %p1202_p1 = scmp.lt.u32.totalorder %s1200_s5, %s1196_s10  ;;  %p1204_p3 = scmp.lt.u32.totalorder %s1196_s10, %s1559_s13 }
 0x152   : > { %p1198_p12 = pnand %p1197_p11, %p1330_p5 }
 0x153   : > { %p1203_p2 = por %p1202_p1, %p1201_p0 }
 0x154   : > { %p1199_p13 = pneg %p1198_p12 }
 0x155   : > { %p1205_p4 = por %p1204_p3, %p1203_p2 }
 0x157   : > { %p1206_p6 = pnand %p1205_p4, %p1199_p13 }
 0x159   : > { %1209 = shalt.err (!%p1206_p6)
}
 0x15a   : > { %s1263_s8 = smov 128   ;;  %s1264_s11 = smov 256  }
 0x15b   : > { %s1265_s18 = smov 8  }
 0x15c   : > { %1084 = dma.vmem_to_hbm [thread:$0]  (%p1330_p5), %s1561_s9, 2048, %s1559_s13, %s1569_s14, %s1263_s8, %s1264_s11, %s1265_s18  }
 0x15d PF: > { %s860_s12 = sand.u32 1, %s1240_s15   ;;  %p1087_p7 = pnand %p960_p10, %p1341_p9 }
 0x15e   : > { %s861_s21 = scalar_lea.sflag [#allocation4], %s860_s12 }
 0x15f   : > { %1235 = dma.done.wait (!%p1087_p7), %s861_s21, 2048  }
 0x160   : > { %1237 = vsyncadd (!%p1087_p7), %s861_s21, 4294965248  ;;  %s17_s20 = sadd.s32 1, %s1260_s20   ;;  %s1623_s15 = smov %s1244_s16 }
 0x161   : > { %p14_p8 = scmp.ge.s32.totalorder %s17_s20, 4   ;;  %s1624_s16 = smov %s1248_s17 }
 0x162   : > { %s1625_s17 = smov %s1339_s27  ;;  %s1626_s18 = smov %s1256_s19 }
 0x163   : > { %s1627_s19 = smov %s1629_s23  ;;  %16 = sbr.rel (!%p14_p8) target bundleno = 4 (0x4), region = 126 }
 0x16a   :  { %866 = vsyncpa [#allocation4], 1 }
 0x16b   :  { %868 = vsyncpa [#allocation4 + $0x1], 1 }

// kernel: _lambda_.7
= control target key start
LH: loop header
LB: loop body
LE: loop exit
PB: predicated region body
PF: predicated region fallthrough
CT: control target
= control target key end

     0   :  { %s2794_s13 = smov 0   ;;  %s3338_s0 = inlined_call_operand.vmem [shape: f32[2,64,256], index: 0, kind: input, shape index: {}]   ;;  %s3339_s1 = inlined_call_operand.vmem [shape: bf16[256,64], index: 1, kind: input, shape index: {}]   ;;  %s3340_s2 = inlined_call_operand.vmem [shape: f32[1,64], index: 2, kind: input, shape index: {}]   ;;  %s3341_s3 = inlined_call_operand.vmem [shape: f32[1,64], index: 3, kind: input, shape index: {}]   ;;  %s3342_s4 = inlined_call_operand.vmem [shape: bf16[3,3,64,64], index: 4, kind: input, shape index: {}]   ;;  %s3343_s5 = inlined_call_operand.vmem [shape: f32[1,64], index: 5, kind: input, shape index: {}]   ;;  %s3344_s6 = inlined_call_operand.vmem [shape: f32[1,64], index: 6, kind: input, shape index: {}]   ;;  %s3345_s7 = inlined_call_operand.vmem [shape: bf16[64,256], index: 7, kind: input, shape index: {}]   ;;  %s3346_s8 = inlined_call_operand.vmem [shape: f32[1,256], index: 8, kind: input, shape index: {}]   ;;  %s3347_s9 = inlined_call_operand.vmem [shape: f32[1,256], index: 9, kind: input, shape index: {}]   ;;  %s3348_s10 = inlined_call_operand.vmem [shape: f32[2,64,256], index: 10, kind: output, shape index: {}]  }
   0x1 LB: > { %s2150_s14 = sadd.s32 4294967295, %s2735_s13   ;;  %p2154_p0 = scmp.ge.s32.totalorder %s2735_s13, 1  ;;  %s2735_s13 = sphi %s2794_s13, %s20_s13  }
   0x2   : > { %p312_p1 = scmp.lt.s32.totalorder %s2735_s13, 3 }
   0x4   : > { %p313_p2 = pnand %p2154_p0, %p312_p1 }
   0x5   : > { %v2661_v0 = vld [vmem:[%s3339_s1 + $0x40] sm:$0xff] (!%p313_p2)   ;;  %v2663_v2 = vld [vmem:[%s3339_s1 + $0x48] sm:$0xff] (!%p313_p2)   ;;  %p350_p3 = scmp.lt.s32.totalorder (!%p313_p2), %s2150_s14, 1  ;;  %v2665_v4 = vld [vmem:[%s3339_s1 + $0x50] sm:$0xff] (!%p313_p2)   ;;  %vm616_vm0 = vcmask (!%p313_p2), 523264   ;;  %v2737_v40 = vmov (!%p313_p2), 0.0  }
   0x6   : > { %316 = sbr.rel (%p313_p2) target bundleno = 855 (0x357), region = 60  ;;  %v2662_v1 = vld [vmem:[%s3339_s1] sm:$0xff] (!%p313_p2)   ;;  %2331 = vmatprep.subr.bf16.mxu0 (!%p313_p2), %v2661_v0  ;;  %v2664_v3 = vld [vmem:[%s3339_s1 + $0x8] sm:$0xff] (!%p313_p2)   ;;  %v2666_v5 = vld [vmem:[%s3339_s1 + $0x10] sm:$0xff] (!%p313_p2)   ;;  %621 = vst.msk [vmem:[#allocation2 + $0x20] sm:$0xff] (!%p313_p2), %vm616_vm0, %v2737_v40 }
   0x7   : > { %2332 = vmatpush3.bf16.msra.mxu0 (!%p313_p2), %v2662_v1  ;;  %v2667_v6 = vld [vmem:[%s3339_s1 + $0x58] sm:$0xff] (!%p313_p2)   ;;  %v2669_v8 = vld [vmem:[%s3339_s1 + $0x60] sm:$0xff] (!%p313_p2)   ;;  %v2671_v10 = vld [vmem:[%s3339_s1 + $0x68] sm:$0xff] (!%p313_p2)   ;;  %617 = vst.msk [vmem:[#allocation2] sm:$0xff] (!%p313_p2), %vm616_vm0, %v2737_v40 }
   0x8   : > { %2333 = vmatprep.subr.bf16.mxu0 (!%p313_p2), %v2663_v2  ;;  %v2668_v7 = vld [vmem:[%s3339_s1 + $0x18] sm:$0xff] (!%p313_p2)   ;;  %v2670_v9 = vld [vmem:[%s3339_s1 + $0x20] sm:$0xff] (!%p313_p2)   ;;  %v2672_v14 = vld [vmem:[%s3339_s1 + $0x28] sm:$0xff] (!%p313_p2)   ;;  %618 = vst.msk [vmem:[#allocation2 + $0x8] sm:$0xff] (!%p313_p2), %vm616_vm0, %v2737_v40 }
   0x9   : > { %v2673_v15 = vld [vmem:[%s3339_s1 + $0x70] sm:$0xff] (!%p313_p2)   ;;  %v2675_v17 = vld [vmem:[%s3339_s1 + $0x78] sm:$0xff] (!%p313_p2)   ;;  %619 = vst.msk [vmem:[#allocation2 + $0x10] sm:$0xff] (!%p313_p2), %vm616_vm0, %v2737_v40  ;;  %620 = vst.msk [vmem:[#allocation2 + $0x18] sm:$0xff] (!%p313_p2), %vm616_vm0, %v2737_v40 }
   0xa   : > { %v2674_v16 = vld [vmem:[%s3339_s1 + $0x30] sm:$0xff] (!%p313_p2)   ;;  %v2676_v18 = vld [vmem:[%s3339_s1 + $0x38] sm:$0xff] (!%p313_p2)   ;;  %622 = vst.msk [vmem:[#allocation2 + $0x28] sm:$0xff] (!%p313_p2), %vm616_vm0, %v2737_v40  ;;  %623 = vst.msk [vmem:[#allocation2 + $0x30] sm:$0xff] (!%p313_p2), %vm616_vm0, %v2737_v40 }
   0xb   : > { %2334 = vmatpush3.bf16.msra.mxu0 (!%p313_p2), %v2664_v3  ;;  %624 = vst.msk [vmem:[#allocation2 + $0x38] sm:$0xff] (!%p313_p2), %vm616_vm0, %v2737_v40  ;;  %625 = vst.msk [vmem:[#allocation2 + $0x40] sm:$0xff] (!%p313_p2), %vm616_vm0, %v2737_v40  ;;  %v2677_v41 = vld [vmem:[%s3342_s4 + $0x20] sm:$0xff] (!%p313_p2)   ;;  %v2679_v43 = vld [vmem:[%s3342_s4 + $0x28] sm:$0xff] (!%p313_p2)  }
   0xc   : > { %2335 = vmatprep.subr.bf16.mxu0 (!%p313_p2), %v2665_v4  ;;  %626 = vst.msk [vmem:[#allocation2 + $0x48] sm:$0xff] (!%p313_p2), %vm616_vm0, %v2737_v40  ;;  %627 = vst.msk [vmem:[#allocation2 + $0x50] sm:$0xff] (!%p313_p2), %vm616_vm0, %v2737_v40  ;;  %v2678_v42 = vld [vmem:[%s3342_s4 + $0x40] sm:$0xff] (!%p313_p2)   ;;  %v2680_v44 = vld [vmem:[%s3342_s4 + $0x48] sm:$0xff] (!%p313_p2)  }
   0xd   : > { %s3350_s14 = smov (!%p350_p3, %s2150_s14), 1  ;;  %628 = vst.msk [vmem:[#allocation2 + $0x58] sm:$0xff] %vm616_vm0, %v2737_v40  ;;  %629 = vst.msk [vmem:[#allocation2 + $0x60] sm:$0xff] %vm616_vm0, %v2737_v40  ;;  %2475 = vmatprep.subr.bf16.mxu1 %v2678_v42  ;;  %v2681_v45 = vld [vmem:[%s3342_s4 + $0x30] sm:$0xff]   ;;  %v2683_v47 = vld [vmem:[%s3342_s4 + $0x38] sm:$0xff]  }
   0xe   : > { %s2329_s29 = sshll.u32 %s3350_s14, 7  ;;  %630 = vst.msk [vmem:[#allocation2 + $0x68] sm:$0xff] %vm616_vm0, %v2737_v40  ;;  %631 = vst.msk [vmem:[#allocation2 + $0x70] sm:$0xff] %vm616_vm0, %v2737_v40  ;;  %2476 = vmatpush3.bf16.msra.mxu1 %v2678_v42  ;;  %v2682_v46 = vld [vmem:[%s3342_s4 + $0x50] sm:$0xff]   ;;  %v2684_v48 = vld [vmem:[%s3342_s4 + $0x58] sm:$0xff]  }
   0xf   : > { %2336 = vmatpush3.bf16.msra.mxu0 %v2666_v5  ;;  %s2837_s18 = scalar_lea.vmem %s3338_s0, %s2329_s29  ;;  %632 = vst.msk [vmem:[#allocation2 + $0x78] sm:$0xff] %vm616_vm0, %v2737_v40  ;;  %633 = vst.msk [vmem:[#allocation2 + $0x80] sm:$0xff] %vm616_vm0, %v2737_v40  ;;  %2477 = vmatprep.subr.bf16.mxu1 %v2680_v44  ;;  %v2969_v49 = vld [vmem:[%s3342_s4 + $0x60] sm:$0xff]   ;;  %s3277_s23 = scalar_lea.vmem %s3348_s10, %s2329_s29 }
  0x10   : > { %2337 = vmatprep.subr.bf16.mxu0 %v2667_v6  ;;  %v362_v11 = vld [vmem:[%s2837_s18 + $0x8] sm:$0xff]  ;;  %v364_v12 = vld [vmem:[%s2837_s18 + $0x18] sm:$0xff]  ;;  %v2863_v19 = vld [vmem:[%s2837_s18] sm:$0xff]  ;;  %634 = vst.msk [vmem:[#allocation2 + $0x88] sm:$0xff] %vm616_vm0, %v2737_v40 }
  0x11   : > { %v378_v13 = vpack.c.bf16 %v364_v12, %v362_v11  ;;  %v2866_v20 = vld [vmem:[%s2837_s18 + $0x10] sm:$0xff]  ;;  %v366_v21 = vld [vmem:[%s2837_s18 + $0x28] sm:$0xff]  ;;  %v368_v22 = vld [vmem:[%s2837_s18 + $0x38] sm:$0xff]  ;;  %635 = vst.msk [vmem:[#allocation2 + $0x90] sm:$0xff] %vm616_vm0, %v2737_v40 }
  0x12   : > { %v377_v23 = vpack.c.bf16 %v2866_v20, %v2863_v19  ;;  %v380_v24 = vpack.c.bf16 %v368_v22, %v366_v21  ;;  %v2873_v25 = vld [vmem:[%s2837_s18 + $0x20] sm:$0xff]  ;;  %v2876_v26 = vld [vmem:[%s2837_s18 + $0x30] sm:$0xff]  ;;  %v2879_v27 = vld [vmem:[%s2837_s18 + $0x48] sm:$0xff]  ;;  %636 = vst.msk [vmem:[#allocation2 + $0x98] sm:$0xff] %vm616_vm0, %v2737_v40  ;;  %2478 = vmatpush3.bf16.msra.mxu1 %v2680_v44 }
  0x13   : > { %2338 = vmatpush3.bf16.msra.mxu0 %v2668_v7  ;;  %545 = vmatprep.mubr.bf16.mxu0 %v378_v13  ;;  %v2882_v28 = vld [vmem:[%s2837_s18 + $0x58] sm:$0xff]  ;;  %v379_v29 = vpack.c.bf16 %v2876_v26, %v2873_v25  ;;  %v2889_v31 = vld [vmem:[%s2837_s18 + $0x40] sm:$0xff]  ;;  %v2892_v32 = vld [vmem:[%s2837_s18 + $0x50] sm:$0xff]  ;;  %637 = vst.msk [vmem:[#allocation2 + $0xa0] sm:$0xff] %vm616_vm0, %v2737_v40 }
  0x14   : > { %2339 = vmatprep.subr.bf16.mxu0 %v2669_v8  ;;  %v382_v30 = vpack.c.bf16 %v2882_v28, %v2879_v27  ;;  %v2895_v33 = vld [vmem:[%s2837_s18 + $0x68] sm:$0xff]  ;;  %v2898_v34 = vld [vmem:[%s2837_s18 + $0x78] sm:$0xff]  ;;  %v381_v35 = vpack.c.bf16 %v2892_v32, %v2889_v31  ;;  %v2905_v37 = vld [vmem:[%s2837_s18 + $0x60] sm:$0xff]  ;;  %638 = vst.msk [vmem:[#allocation2 + $0xa8] sm:$0xff] %vm616_vm0, %v2737_v40  ;;  %2479 = vmatprep.subr.bf16.mxu1 %v2682_v46 }
  0x15   : > { %v384_v36 = vpack.c.bf16 %v2898_v34, %v2895_v33  ;;  %v2908_v38 = vld [vmem:[%s2837_s18 + $0x70] sm:$0xff]  ;;  %639 = vst.msk [vmem:[#allocation2 + $0xb0] sm:$0xff] %vm616_vm0, %v2737_v40  ;;  %640 = vst.msk [vmem:[#allocation2 + $0xb8] sm:$0xff] %vm616_vm0, %v2737_v40  ;;  %v2974_v50 = vld [vmem:[%s3342_s4] sm:$0xff]  }
  0x16   : > { %v383_v39 = vpack.c.bf16 %v2908_v38, %v2905_v37  ;;  %641 = vst.msk [vmem:[#allocation2 + $0xc0] sm:$0xff] %vm616_vm0, %v2737_v40  ;;  %642 = vst.msk [vmem:[#allocation2 + $0xc8] sm:$0xff] %vm616_vm0, %v2737_v40  ;;  %2480 = vmatpush3.bf16.msra.mxu1 %v2682_v46  ;;  %v2981_v53 = vld [vmem:[%s3340_s2] ss:$0 sm:$0xff]  ;;  %v906_v11 = vld [vmem:[#allocation2 + $0x9] sm:$0xff] }
  0x17   : > { %2340 = vmatpush3.bf16.msra.mxu0 %v2670_v9  ;;  %643 = vst.msk [vmem:[#allocation2 + $0xd0] sm:$0xff] %vm616_vm0, %v2737_v40  ;;  %644 = vst.msk [vmem:[#allocation2 + $0xd8] sm:$0xff] %vm616_vm0, %v2737_v40  ;;  %2481 = vmatprep.subr.bf16.mxu1 %v2684_v48  ;;  %v2986_v56 = vld [vmem:[%s3341_s3] ss:$0 sm:$0xff] }
  0x18   : > { %2341 = vmatprep.subr.bf16.mxu0 %v2671_v10  ;;  %645 = vst.msk [vmem:[#allocation2 + $0xe0] sm:$0xff] %vm616_vm0, %v2737_v40  ;;  %646 = vst.msk [vmem:[#allocation2 + $0xe8] sm:$0xff] %vm616_vm0, %v2737_v40  ;;  %v683_v10 = vld [vmem:[#allocation2 + $0x8] sm:$0xff] }
  0x1a   : > { %2482 = vmatpush3.bf16.msra.mxu1 %v2684_v48 }
  0x1b   : > { %2342 = vmatpush3.bf16.msra.mxu0 %v2672_v14  ;;  %2491 = vmatprep.subr.bf16.mxu1 %v2969_v49 }
  0x1c   : > { %2343 = vmatprep.subr.bf16.mxu0 %v2673_v15 }
  0x1f   : > { %2344 = vmatpush3.bf16.msra.mxu0 %v2674_v16 }
  0x20   : > { %2345 = vmatprep.subr.bf16.mxu0 %v2675_v17 }
  0x23   : > { %2346 = vmatpush3.bf16.msra.mxu0 %v2676_v18 }
  0x24   : > { %2443 = vmatprep.subr.bf16.mxu0 %v2677_v41 }
  0x26   : > { %546 = vmatmul.mubr.bf16.vlgmr.msra.gmra.mrb[0].mxu0 %v377_v23 }
  0x27   : > { %553 = vmatprep.mubr.bf16.mxu0 %v380_v24  ;;  %2444 = vmatpush3.bf16.msra.mxu0 %v2677_v41 }
  0x28   : > { %2445 = vmatprep.subr.bf16.mxu0 %v2679_v43 }
  0x2b   : > { %2446 = vmatpush3.bf16.msra.mxu0 %v2679_v43 }
  0x2c   : > { %2447 = vmatprep.subr.bf16.mxu0 %v2681_v45 }
  0x2e   : > { %554 = vmatmul.mubr.bf16.gmra.mrb[4].mxu0 %v379_v29 }
  0x2f   : > { %561 = vmatprep.mubr.bf16.mxu0 %v382_v30  ;;  %2448 = vmatpush3.bf16.msra.mxu0 %v2681_v45 }
  0x30   : > { %2449 = vmatprep.subr.bf16.mxu0 %v2683_v47 }
  0x33   : > { %2450 = vmatpush3.bf16.msra.mxu0 %v2683_v47 }
  0x34   : > { %2459 = vmatprep.subr.bf16.mxu0 %v2974_v50 }
  0x36   : > { %562 = vmatmul.mubr.bf16.gmra.mrb[8].mxu0 %v381_v35 }
  0x37   : > { %569 = vmatprep.mubr.bf16.mxu0 %v384_v36 }
  0x3e   : > { %570 = vmatmul.mubr.bf16.gmra.mrb[12].mxu0 %v383_v39 }
  0xf9   : > { %v2347_v51 = vpop.f32.mrb[0].mxu0 }
  0xfa   : > { %v2348_v52 = vpop.f32.mrb[1].mxu0 }
  0xfb   : > { %v2349_v54 = vadd.f32 %v2348_v52, %v2347_v51  ;;  %v2350_v55 = vpop.f32.mrb[2].mxu0 }
  0xfc   : > { %v2351_v57 = vpop.f32.mrb[3].mxu0 }
  0xfd   : > { %v585_v58 = vmul.f32 %v2349_v54, %v2981_v53  ;;  %v2352_v59 = vadd.f32 %v2351_v57, %v2350_v55  ;;  %v2687_v57 = vld [vmem:[%s3342_s4 + $0x68] sm:$0xff]  }
  0xff   : > { %v600_v60 = vadd.f32 %v2986_v56, %v585_v58  ;;  %v586_v61 = vmul.f32 %v2352_v59, %v2981_v53  ;;  %v2688_v58 = vld [vmem:[%s3342_s4 + $0x8] sm:$0xff]  }
 0x101   : > { %v608_v62 = vmax.f32 %v600_v60, 0.0  ;;  %v601_v63 = vadd.f32 %v2986_v56, %v586_v61  ;;  %v2353_v0 = vpop.f32.mrb[4].mxu0 }
 0x102   : > { %v2354_v1 = vpop.f32.mrb[5].mxu0 }
 0x103   : > { %648 = vst.msk [vmem:[#allocation2 + $0x20] sm:$0xff] %vm616_vm0, %v608_v62  ;;  %v609_v2 = vmax.f32 %v601_v63, 0.0  ;;  %v2355_v3 = vadd.f32 %v2354_v1, %v2353_v0  ;;  %v2356_v4 = vpop.f32.mrb[6].mxu0  ;;  %v2689_v0 = vld [vmem:[%s3342_s4 + $0x70] sm:$0xff]  }
 0x104   : > { %v2357_v5 = vpop.f32.mrb[7].mxu0  ;;  %v2690_v1 = vld [vmem:[%s3342_s4 + $0x10] sm:$0xff]  }
 0x105   : > { %650 = vst.msk [vmem:[#allocation2 + $0x38] sm:$0xff] %vm616_vm0, %v609_v2  ;;  %v587_v6 = vmul.f32 %v2355_v3, %v2981_v53  ;;  %v2358_v7 = vadd.f32 %v2357_v5, %v2356_v4 }
 0x107   : > { %v602_v8 = vadd.f32 %v2986_v56, %v587_v6  ;;  %v588_v9 = vmul.f32 %v2358_v7, %v2981_v53  ;;  %v2691_v7 = vld [vmem:[%s3342_s4 + $0x78] sm:$0xff]  }
 0x109   : > { %v610_v12 = vmax.f32 %v602_v8, 0.0  ;;  %v603_v13 = vadd.f32 %v2986_v56, %v588_v9  ;;  %v2359_v14 = vpop.f32.mrb[8].mxu0  ;;  %v2692_v8 = vld [vmem:[%s3342_s4 + $0x18] sm:$0xff]   ;;  %v2693_v9 = vld [vmem:[%s3342_s4 + $0x80] sm:$0xff]  }
 0x10a   : > { %v2360_v15 = vpop.f32.mrb[9].mxu0  ;;  %v2998_v16 = vld [vmem:[#allocation2 + $0x20] sm:$0xff] }
 0x10b   : > { %v3000_v17 = vld [vmem:[#allocation2 + $0x21] sm:$0xff]  ;;  %652 = vst.msk [vmem:[#allocation2 + $0x50] sm:$0xff] %vm616_vm0, %v610_v12  ;;  %v611_v18 = vmax.f32 %v603_v13, 0.0  ;;  %v2361_v21 = vadd.f32 %v2360_v15, %v2359_v14  ;;  %v2362_v22 = vpop.f32.mrb[10].mxu0  ;;  %v691_v23 = vpack.c.bf16 %v2998_v16, %v683_v10 }
 0x10c   : > { %v914_v24 = vpack.c.bf16 %v3000_v17, %v906_v11  ;;  %v2363_v29 = vpop.f32.mrb[11].mxu0  ;;  %v3012_v43 = vld [vmem:[#allocation2 + $0x38] sm:$0xff]  ;;  %v663_v10 = vld [vmem:[#allocation2 + $0x7] sm:$0xff] }
 0x10d   : > { %654 = vst.msk [vmem:[#allocation2 + $0x68] sm:$0xff] %vm616_vm0, %v611_v18  ;;  %v589_v30 = vmul.f32 %v2361_v21, %v2981_v53  ;;  %v2364_v35 = vadd.f32 %v2363_v29, %v2362_v22  ;;  %2451 = vmatprep.mubr.msk.bf16.mxu0 %vm616_vm0, %v691_v23  ;;  %v3016_v46 = vld [vmem:[#allocation2 + $0x39] sm:$0xff] }
 0x10e   : > { %2483 = vmatprep.mubr.msk.bf16.mxu1 %vm616_vm0, %v914_v24  ;;  %v664_v12 = vld [vmem:[#allocation2 + $0x1f] sm:$0xff]  ;;  %v1037_v13 = vld [vmem:[#allocation2 + $0x37] sm:$0xff] }
 0x10f   : > { %v604_v36 = vadd.f32 %v2986_v56, %v589_v30  ;;  %v590_v39 = vmul.f32 %v2364_v35, %v2981_v53  ;;  %v671_v23 = vpack.c.bf16 %v664_v12, %v663_v10  ;;  %v1044_v24 = vpack.c.bf16 %v1037_v13, %v664_v12  ;;  %v2709_v12 = vld [vmem:[%s3342_s4 + $0x100] sm:$0xff]  }
 0x111   : > { %v612_v40 = vmax.f32 %v604_v36, 0.0  ;;  %v605_v41 = vadd.f32 %v2986_v56, %v590_v39  ;;  %v2365_v42 = vpop.f32.mrb[12].mxu0 }
 0x112   : > { %v2366_v44 = vpop.f32.mrb[13].mxu0  ;;  %v3014_v45 = vld [vmem:[#allocation2 + $0x50] sm:$0xff] }
 0x113   : > { %v3018_v47 = vld [vmem:[#allocation2 + $0x51] sm:$0xff]  ;;  %656 = vst.msk [vmem:[#allocation2 + $0x80] sm:$0xff] %vm616_vm0, %v612_v40  ;;  %v613_v48 = vmax.f32 %v605_v41, 0.0  ;;  %v2367_v51 = vadd.f32 %v2366_v44, %v2365_v42  ;;  %v2368_v52 = vpop.f32.mrb[14].mxu0  ;;  %v3023_v54 = vpack.c.bf16 %v3014_v45, %v3012_v43  ;;  %v2694_v41 = vld [vmem:[%s3342_s4 + $0x88] sm:$0xff]  }
 0x114   : > { %v3027_v55 = vpack.c.bf16 %v3018_v47, %v3016_v46  ;;  %v2369_v59 = vpop.f32.mrb[15].mxu0  ;;  %v3056_v4 = vld [vmem:[#allocation2 + $0x69] sm:$0xff] }
 0x115   : > { %658 = vst.msk [vmem:[#allocation2 + $0x98] sm:$0xff] %vm616_vm0, %v613_v48  ;;  %v591_v60 = vmul.f32 %v2367_v51, %v2981_v53  ;;  %v2370_v61 = vadd.f32 %v2369_v59, %v2368_v52  ;;  %2452 = vmatmul.mubr.msk.bf16.vlgmr.msra.gmra.mrb[16].mxu0 %vm616_vm0, %v3023_v54  ;;  %v666_v29 = vld [vmem:[#allocation2 + $0x4f] sm:$0xff]  ;;  %v1039_v30 = vld [vmem:[#allocation2 + $0x67] sm:$0xff]  ;;  %v2696_v59 = vld [vmem:[%s3342_s4 + $0x98] sm:$0xff]  }
 0x116   : > { %2484 = vmatmul.mubr.msk.bf16.vlgmr.msra.gmra.mrb[0].mxu1 %vm616_vm0, %v3027_v55  ;;  %2460 = vmatpush3.bf16.msra.mxu0 %v2974_v50  ;;  %v3099_v39 = vpack.c.bf16 %v666_v29, %v1037_v13  ;;  %v1045_v40 = vpack.c.bf16 %v1039_v30, %v666_v29  ;;  %v2695_v48 = vld [vmem:[%s3342_s4 + $0x90] sm:$0xff]   ;;  %v2710_v13 = vld [vmem:[%s3342_s4 + $0x108] sm:$0xff]  }
 0x117   : > { %2492 = vmatpush3.bf16.msra.mxu1 %v2969_v49  ;;  %v606_v62 = vadd.f32 %v2986_v56, %v591_v60  ;;  %v592_v63 = vmul.f32 %v2370_v61, %v2981_v53  ;;  %2461 = vmatprep.subr.bf16.mxu0 %v2688_v58  ;;  %v3052_v49 = vld [vmem:[#allocation2 + $0x68] sm:$0xff]  ;;  %v1174_v60 = vpack.c.bf16 %v3012_v43, %v2998_v16  ;;  %v2697_v61 = vld [vmem:[%s3342_s4 + $0xa0] sm:$0xff]  }
 0x118   : > { %2493 = vmatprep.subr.bf16.mxu1 %v2687_v57  ;;  %v2698_v16 = vld [vmem:[%s3342_s4 + $0xa8] sm:$0xff]  }
 0x119   : > { %v614_v2 = vmax.f32 %v606_v62, 0.0  ;;  %v607_v3 = vadd.f32 %v2986_v56, %v592_v63  ;;  %v1175_v62 = vpack.c.bf16 %v3052_v49, %v3014_v45  ;;  %v2699_v63 = vld [vmem:[%s3342_s4 + $0xb0] sm:$0xff]   ;;  %v2719_v29 = vld [vmem:[%s3345_s7 + $0x20] ss:$8 sps:$4 sm:$0xff]  }
 0x11a   : > { %v3054_v50 = vld [vmem:[#allocation2 + $0x80] sm:$0xff]  ;;  %2462 = vmatpush3.bf16.msra.mxu0 %v2688_v58 }
 0x11b   : > { %v3058_v53 = vld [vmem:[#allocation2 + $0x81] sm:$0xff]  ;;  %2494 = vmatpush3.bf16.msra.mxu1 %v2687_v57  ;;  %660 = vst.msk [vmem:[#allocation2 + $0xb0] sm:$0xff] %vm616_vm0, %v614_v2  ;;  %v615_v5 = vmax.f32 %v607_v3, 0.0  ;;  %v3063_v6 = vpack.c.bf16 %v3054_v50, %v3052_v49  ;;  %2463 = vmatprep.subr.bf16.mxu0 %v2690_v1  ;;  %v1304_v2 = vpack.c.bf16 %v3016_v46, %v3000_v17  ;;  %v2703_v46 = vld [vmem:[%s3342_s4 + $0xd0] sm:$0xff]  }
 0x11c   : > { %v3067_v56 = vpack.c.bf16 %v3058_v53, %v3056_v4  ;;  %2495 = vmatprep.subr.bf16.mxu1 %v2689_v0  ;;  %v689_v11 = vld [vmem:[#allocation2 + $0x98] sm:$0xff]  ;;  %v2701_v3 = vld [vmem:[%s3342_s4 + $0xc0] sm:$0xff]   ;;  %v1305_v49 = vpack.c.bf16 %v3056_v4, %v3018_v47 }
 0x11d   : > { %662 = vst.msk [vmem:[#allocation2 + $0xc8] sm:$0xff] %vm616_vm0, %v615_v5  ;;  %2455 = vmatprep.mubr.msk.bf16.mxu0 %vm616_vm0, %v3063_v6  ;;  %v3083_v15 = vld [vmem:[#allocation2 + $0x99] sm:$0xff]  ;;  %v1176_v43 = vpack.c.bf16 %v689_v11, %v3054_v50  ;;  %v2702_v50 = vld [vmem:[%s3342_s4 + $0xc8] sm:$0xff]  }
 0x11e   : > { %2487 = vmatprep.mubr.msk.bf16.mxu1 %vm616_vm0, %v3067_v56  ;;  %2464 = vmatpush3.bf16.msra.mxu0 %v2690_v1  ;;  %v668_v35 = vld [vmem:[#allocation2 + $0x7f] sm:$0xff]  ;;  %v1041_v36 = vld [vmem:[#allocation2 + $0x97] sm:$0xff]  ;;  %v1306_v17 = vpack.c.bf16 %v3083_v15, %v3058_v53 }
 0x11f   : > { %2496 = vmatpush3.bf16.msra.mxu1 %v2689_v0  ;;  %2465 = vmatprep.subr.bf16.mxu0 %v2692_v8  ;;  %v3104_v42 = vpack.c.bf16 %v668_v35, %v1039_v30  ;;  %v1046_v44 = vpack.c.bf16 %v1041_v36, %v668_v35  ;;  %v2700_v1 = vld [vmem:[%s3342_s4 + $0xb8] sm:$0xff]   ;;  %v2705_v53 = vld [vmem:[%s3342_s4 + $0xe0] sm:$0xff]  }
 0x120   : > { %2497 = vmatprep.subr.bf16.mxu1 %v2691_v7  ;;  %v2704_v4 = vld [vmem:[%s3342_s4 + $0xd8] sm:$0xff]  }
 0x121   : > { %v2724_v30 = vld [vmem:[%s3345_s7 + $0x34] ss:$8 sps:$4 sm:$0xff]   ;;  %v2722_v35 = vld [vmem:[%s3345_s7 + $0x30] ss:$8 sps:$4 sm:$0xff]  }
 0x122   : > { %v690_v14 = vld [vmem:[#allocation2 + $0xb0] sm:$0xff]  ;;  %2466 = vmatpush3.bf16.msra.mxu0 %v2692_v8 }
 0x123   : > { %v3085_v18 = vld [vmem:[#allocation2 + $0xb1] sm:$0xff]  ;;  %2498 = vmatpush3.bf16.msra.mxu1 %v2691_v7  ;;  %v3087_v21 = vpack.c.bf16 %v690_v14, %v689_v11  ;;  %v2706_v7 = vld [vmem:[%s3342_s4 + $0xe8] sm:$0xff]  }
 0x124   : > { %v3091_v22 = vpack.c.bf16 %v3085_v18, %v3083_v15  ;;  %2507 = vmatprep.subr.bf16.mxu1 %v2693_v9  ;;  %v670_v51 = vld [vmem:[#allocation2 + $0xaf] sm:$0xff]  ;;  %v3115_v52 = vld [vmem:[#allocation2 + $0xc7] sm:$0xff]  ;;  %v2708_v11 = vld [vmem:[%s3342_s4 + $0xf8] sm:$0xff]  }
 0x125   : > { %2456 = vmatmul.mubr.msk.bf16.gmra.mrb[20].mxu0 %vm616_vm0, %v3087_v21  ;;  %v674_v57 = vpack.c.bf16 %v670_v51, %v1041_v36  ;;  %v1047_v58 = vpack.c.bf16 %v3115_v52, %v670_v51  ;;  %v3140_v0 = vld [vmem:[#allocation2 + $0xc8] sm:$0xff]  ;;  %v2707_v8 = vld [vmem:[%s3342_s4 + $0xf0] sm:$0xff]   ;;  %v2738_v36 = vmov 0  }
 0x126   : > { %2488 = vmatmul.mubr.msk.bf16.gmra.mrb[4].mxu1 %vm616_vm0, %v3091_v22  ;;  %2467 = vmatprep.mubr.msk.bf16.mxu0 %vm616_vm0, %v671_v23  ;;  %v1177_v45 = vpack.c.bf16 %v3140_v0, %v690_v14  ;;  %v1303_v5 = vld [vmem:[#allocation2 + $0xc9] sm:$0xff]  ;;  %v1563_v14 = vld [vmem:[#allocation2 + $0xe0] sm:$0xff] }
 0x127   : > { %2499 = vmatprep.mubr.msk.bf16.mxu1 %vm616_vm0, %v1044_v24  ;;  %v1307_v47 = vpack.c.bf16 %v1303_v5, %v3085_v18  ;;  %v1567_v15 = vpack.c.bf16 %v1563_v14, %v3140_v0  ;;  %v2712_v18 = vld [vmem:[%s3342_s4 + $0x118] sm:$0xff]   ;;  %v2713_v23 = vld [vmem:[%s3345_s7] ss:$8 sps:$4 sm:$0xff]   ;;  %v2721_v24 = vld [vmem:[%s3345_s7 + $0x24] ss:$8 sps:$4 sm:$0xff]  }
 0x12d   : > { %2468 = vmatmul.mubr.msk.bf16.vlgmr.msra.gmra.mrb[16].mxu0 %vm616_vm0, %v3099_v39 }
 0x12e   : > { %2500 = vmatmul.mubr.msk.bf16.vlgmr.msra.gmra.mrb[0].mxu1 %vm616_vm0, %v1045_v40  ;;  %2471 = vmatprep.mubr.msk.bf16.mxu0 %vm616_vm0, %v3104_v42 }
 0x12f   : > { %2508 = vmatpush3.bf16.msra.mxu1 %v2693_v9  ;;  %2503 = vmatprep.mubr.msk.bf16.mxu1 %vm616_vm0, %v1046_v44  ;;  %v1433_v9 = vld [vmem:[#allocation2 + $0xdf] sm:$0xff] }
 0x130   : > { %2509 = vmatprep.subr.bf16.mxu1 %v2694_v41  ;;  %v1437_v10 = vpack.c.bf16 %v1433_v9, %v3115_v52 }
 0x133   : > { %2510 = vmatpush3.bf16.msra.mxu1 %v2694_v41 }
 0x134   : > { %2511 = vmatprep.subr.bf16.mxu1 %v2695_v48 }
 0x135   : > { %2472 = vmatmul.mubr.msk.bf16.gmra.mrb[20].mxu0 %vm616_vm0, %v674_v57 }
 0x136   : > { %2504 = vmatmul.mubr.msk.bf16.gmra.mrb[4].mxu1 %vm616_vm0, %v1047_v58  ;;  %1950 = vmatprep.mubr.bf16.mxu0 %v2738_v36  ;;  %v2313_v58 = vld [vmem:[%s3343_s5] ss:$0 sm:$0xff] }
 0x137   : > { %2512 = vmatpush3.bf16.msra.mxu1 %v2695_v48  ;;  %2515 = vmatprep.mubr.msk.bf16.mxu1 %vm616_vm0, %v1174_v60 }
 0x138   : > { %2513 = vmatprep.subr.bf16.mxu1 %v2696_v59 }
 0x13b   : > { %2514 = vmatpush3.bf16.msra.mxu1 %v2696_v59 }
 0x13c   : > { %2523 = vmatprep.subr.bf16.mxu1 %v2697_v61 }
 0x13e   : > { %2516 = vmatmul.mubr.msk.bf16.vlgmr.msra.gmra.mrb[0].mxu1 %vm616_vm0, %v1175_v62 }
 0x13f   : > { %2524 = vmatpush3.bf16.msra.mxu1 %v2697_v61  ;;  %2519 = vmatprep.mubr.msk.bf16.mxu1 %vm616_vm0, %v1176_v43  ;;  %v2314_v61 = vld [vmem:[%s3344_s6] ss:$0 sm:$0xff] }
 0x140   : > { %2525 = vmatprep.subr.bf16.mxu1 %v2698_v16 }
 0x143   : > { %2526 = vmatpush3.bf16.msra.mxu1 %v2698_v16 }
 0x144   : > { %2527 = vmatprep.subr.bf16.mxu1 %v2699_v63 }
 0x146   : > { %2520 = vmatmul.mubr.msk.bf16.gmra.mrb[4].mxu1 %vm616_vm0, %v1177_v45 }
 0x147   : > { %2528 = vmatpush3.bf16.msra.mxu1 %v2699_v63  ;;  %2531 = vmatprep.mubr.msk.bf16.mxu1 %vm616_vm0, %v1304_v2 }
 0x148   : > { %2529 = vmatprep.subr.bf16.mxu1 %v2700_v1 }
 0x14b   : > { %2530 = vmatpush3.bf16.msra.mxu1 %v2700_v1 }
 0x14c   : > { %2539 = vmatprep.subr.bf16.mxu1 %v2701_v3 }
 0x14e   : > { %2532 = vmatmul.mubr.msk.bf16.vlgmr.msra.gmra.mrb[0].mxu1 %vm616_vm0, %v1305_v49 }
 0x14f   : > { %2540 = vmatpush3.bf16.msra.mxu1 %v2701_v3  ;;  %2535 = vmatprep.mubr.msk.bf16.mxu1 %vm616_vm0, %v1306_v17 }
 0x150   : > { %2541 = vmatprep.subr.bf16.mxu1 %v2702_v50 }
 0x153   : > { %2542 = vmatpush3.bf16.msra.mxu1 %v2702_v50 }
 0x154   : > { %2543 = vmatprep.subr.bf16.mxu1 %v2703_v46 }
 0x156   : > { %2536 = vmatmul.mubr.msk.bf16.gmra.mrb[4].mxu1 %vm616_vm0, %v1307_v47 }
 0x157   : > { %2544 = vmatpush3.bf16.msra.mxu1 %v2703_v46  ;;  %2547 = vmatprep.mubr.msk.bf16.mxu1 %vm616_vm0, %v3099_v39 }
 0x158   : > { %2545 = vmatprep.subr.bf16.mxu1 %v2704_v4 }
 0x15b   : > { %2546 = vmatpush3.bf16.msra.mxu1 %v2704_v4 }
 0x15c   : > { %2555 = vmatprep.subr.bf16.mxu1 %v2705_v53 }
 0x15e   : > { %2548 = vmatmul.mubr.msk.bf16.vlgmr.msra.gmra.mrb[0].mxu1 %vm616_vm0, %v3104_v42 }
 0x15f   : > { %2556 = vmatpush3.bf16.msra.mxu1 %v2705_v53  ;;  %2551 = vmatprep.mubr.msk.bf16.mxu1 %vm616_vm0, %v674_v57 }
 0x160   : > { %2557 = vmatprep.subr.bf16.mxu1 %v2706_v7 }
 0x163   : > { %2558 = vmatpush3.bf16.msra.mxu1 %v2706_v7 }
 0x164   : > { %2559 = vmatprep.subr.bf16.mxu1 %v2707_v8 }
 0x166   : > { %2552 = vmatmul.mubr.msk.bf16.gmra.mrb[4].mxu1 %vm616_vm0, %v1437_v10 }
 0x167   : > { %2560 = vmatpush3.bf16.msra.mxu1 %v2707_v8  ;;  %2563 = vmatprep.mubr.msk.bf16.mxu1 %vm616_vm0, %v3023_v54  ;;  %v2711_v54 = vld [vmem:[%s3342_s4 + $0x110] sm:$0xff]  }
 0x168   : > { %2561 = vmatprep.subr.bf16.mxu1 %v2708_v11 }
 0x16b   : > { %2562 = vmatpush3.bf16.msra.mxu1 %v2708_v11 }
 0x16c   : > { %2571 = vmatprep.subr.bf16.mxu1 %v2709_v12 }
 0x16e   : > { %2564 = vmatmul.mubr.msk.bf16.vlgmr.msra.gmra.mrb[0].mxu1 %vm616_vm0, %v3063_v6  ;;  %v1693_v6 = vld [vmem:[#allocation2 + $0xe1] sm:$0xff] }
 0x16f   : > { %2572 = vmatpush3.bf16.msra.mxu1 %v2709_v12  ;;  %2567 = vmatprep.mubr.msk.bf16.mxu1 %vm616_vm0, %v3087_v21  ;;  %v1697_v21 = vpack.c.bf16 %v1693_v6, %v1303_v5 }
 0x170   : > { %2573 = vmatprep.subr.bf16.mxu1 %v2710_v13 }
 0x173   : > { %2574 = vmatpush3.bf16.msra.mxu1 %v2710_v13 }
 0x174   : > { %2575 = vmatprep.subr.bf16.mxu1 %v2711_v54 }
 0x176   : > { %2568 = vmatmul.mubr.msk.bf16.gmra.mrb[4].mxu1 %vm616_vm0, %v1567_v15 }
 0x177   : > { %2576 = vmatpush3.bf16.msra.mxu1 %v2711_v54  ;;  %2579 = vmatprep.mubr.msk.bf16.mxu1 %vm616_vm0, %v3027_v55  ;;  %v2715_v55 = vld [vmem:[%s3345_s7 + $0x4] ss:$8 sps:$4 sm:$0xff]  }
 0x178   : > { %2577 = vmatprep.subr.bf16.mxu1 %v2712_v18  ;;  %1918 = vmatprep.subr.bf16.mxu0 %v2715_v55 }
 0x179   : > { %1919 = vmatpush1.bf16.msra.mxu0 %v2713_v23 }
 0x17b   : > { %2578 = vmatpush3.bf16.msra.mxu1 %v2712_v18 }
 0x17e   : > { %2580 = vmatmul.mubr.msk.bf16.vlgmr.msra.gmra.mrb[0].mxu1 %vm616_vm0, %v3067_v56  ;;  %v2718_v56 = vld [vmem:[%s3345_s7 + $0x14] ss:$8 sps:$4 sm:$0xff]  }
 0x17f   : > { %2583 = vmatprep.mubr.msk.bf16.mxu1 %vm616_vm0, %v3091_v22  ;;  %v2716_v22 = vld [vmem:[%s3345_s7 + $0x10] ss:$8 sps:$4 sm:$0xff]   ;;  %1920 = vmatprep.subr.bf16.mxu0 %v2718_v56 }
 0x180   : > { %1921 = vmatpush1.bf16.msra.mxu0 %v2716_v22 }
 0x181   : > { %1922 = vmatprep.subr.bf16.mxu0 %v2721_v24 }
 0x184   : > { %1923 = vmatpush1.bf16.msra.mxu0 %v2719_v29 }
 0x185   : > { %1924 = vmatprep.subr.bf16.mxu0 %v2724_v30 }
 0x186   : > { %2584 = vmatmul.mubr.msk.bf16.gmra.mrb[4].mxu1 %vm616_vm0, %v1697_v21 }
 0x188   : > { %1925 = vmatpush1.bf16.msra.mxu0 %v2722_v35 }
 0x200   : > { %v2469_v39 = vpop.f32.mrb[16].mxu0 }
 0x201   : > { %v875_v40 = vpop.f32.mrb[17].mxu0 }
 0x202   : > { %v2470_v41 = vpop.f32.mrb[18].mxu0 }
 0x203   : > { %v878_v42 = vpop.f32.mrb[19].mxu0 }
 0x208   : > { %v2473_v44 = vpop.f32.mrb[20].mxu0 }
 0x209   : > { %v891_v48 = vpop.f32.mrb[21].mxu0 }
 0x20a   : > { %v2474_v51 = vpop.f32.mrb[22].mxu0 }
 0x20b   : > { %v894_v52 = vpop.f32.mrb[23].mxu0 }
 0x251   : > { %v2581_v57 = vpop.f32.mrb[0].mxu1 }
 0x252   : > { %v2587_v59 = vadd.f32 %v2581_v57, %v2469_v39  ;;  %v1777_v60 = vpop.f32.mrb[1].mxu1  ;;  %v2019_v57 = vld [vmem:[%s3347_s9] sm:$0x3] }
 0x253   : > { %v2588_v62 = vadd.f32 %v1777_v60, %v875_v40  ;;  %v2582_v16 = vpop.f32.mrb[2].mxu1 }
 0x254   : > { %v1825_v43 = vmul.f32 %v2587_v59, %v2313_v58  ;;  %v2589_v63 = vadd.f32 %v2582_v16, %v2470_v41  ;;  %v1780_v0 = vpop.f32.mrb[3].mxu1 }
 0x255   : > { %v1823_v45 = vmul.f32 %v2588_v62, %v2313_v58  ;;  %v2590_v1 = vadd.f32 %v1780_v0, %v878_v42  ;;  %v1993_v42 = vlaneseq }
 0x256   : > { %v1840_v2 = vadd.f32 %v2314_v61, %v1825_v43  ;;  %v1826_v3 = vmul.f32 %v2589_v63, %v2313_v58 }
 0x257   : > { %v1838_v49 = vadd.f32 %v2314_v61, %v1823_v45  ;;  %v1824_v50 = vmul.f32 %v2590_v1, %v2313_v58 }
 0x258   : > { %v1841_v17 = vadd.f32 %v2314_v61, %v1826_v3  ;;  %v1848_v47 = vmax.f32 %v1840_v2, 0.0 }
 0x259   : > { %v1839_v46 = vadd.f32 %v2314_v61, %v1824_v50  ;;  %v2585_v5 = vpop.f32.mrb[4].mxu1  ;;  %v1846_v8 = vmax.f32 %v1838_v49, 0.0 }
 0x25a   : > { %v1849_v4 = vmax.f32 %v1841_v17, 0.0  ;;  %v2591_v53 = vadd.f32 %v2585_v5, %v2473_v44  ;;  %v1793_v7 = vpop.f32.mrb[5].mxu1  ;;  %v1994_v44 = vshrl.u32 %v1993_v42, 7  ;;  %v2725_v17 = vld [vmem:[%s2837_s18 + $0x8] sm:$0xff] }
 0x25b   : > { %v1847_v9 = vmax.f32 %v1839_v46, 0.0  ;;  %v2592_v10 = vadd.f32 %v1793_v7, %v891_v48  ;;  %v2586_v11 = vpop.f32.mrb[6].mxu1 }
 0x25c   : > { %v1855_v12 = vpack.c.bf16 %v1849_v4, %v1848_v47  ;;  %v1829_v13 = vmul.f32 %v2591_v53, %v2313_v58  ;;  %v2593_v54 = vadd.f32 %v2586_v11, %v2474_v51  ;;  %v1796_v14 = vpop.f32.mrb[7].mxu1  ;;  %v1995_v48 = vsub.s32 0, %v1994_v44  ;;  %v1991_v51 = vld [vmem:[%s3346_s8] sm:$0x3] }
 0x25d   : > { %v1854_v15 = vpack.c.bf16 %v1847_v9, %v1846_v8  ;;  %v1827_v18 = vmul.f32 %v2592_v10, %v2313_v58  ;;  %v2594_v6 = vadd.f32 %v1796_v14, %v894_v52  ;;  %v1999_v52 = vsub.s32 1, %v1994_v44 }
 0x25e   : > { %v1844_v21 = vadd.f32 %v2314_v61, %v1829_v13  ;;  %v1830_v23 = vmul.f32 %v2593_v54, %v2313_v58 }
 0x25f   : > { %v1842_v55 = vadd.f32 %v2314_v61, %v1827_v18  ;;  %v1828_v56 = vmul.f32 %v2594_v6, %v2313_v58  ;;  %2323 = vmatmul.mubr.msk.bf16.vlgmr.msra.gmra.mrb[24].mxu0 %vm616_vm0, %v1854_v15  ;;  %v3256_v58 = vrot.slane %v1991_v51, %v1995_v48  ;;  %v3258_v59 = vrot.slane %v1991_v51, %v1999_v52 }
 0x260   : > { %v1845_v22 = vadd.f32 %v2314_v61, %v1830_v23  ;;  %1960 = vmatprep.mubr.bf16.mxu0 %v2738_v36  ;;  %v1852_v29 = vmax.f32 %v1844_v21, 0.0 }
 0x261   : > { %v1843_v24 = vadd.f32 %v2314_v61, %v1828_v56  ;;  %v1850_v35 = vmax.f32 %v1842_v55, 0.0  ;;  %v3262_v61 = vrot.slane %v2019_v57, %v1999_v52  ;;  %v2727_v55 = vld [vmem:[%s2837_s18 + $0x28] sm:$0xff] }
 0x262   : > { %v1853_v30 = vmax.f32 %v1845_v22, 0.0 }
 0x263   : > { %v1851_v39 = vmax.f32 %v1843_v24, 0.0 }
 0x264   : > { %v1857_v40 = vpack.c.bf16 %v1853_v30, %v1852_v29 }
 0x265   : > { %v1856_v41 = vpack.c.bf16 %v1851_v39, %v1850_v35  ;;  %v2728_v35 = vld [vmem:[%s2837_s18 + $0x38] sm:$0xff] }
 0x267   : > { %2324 = vmatmul.mubr.msk.bf16.gmra.mrb[28].mxu0 %vm616_vm0, %v1855_v12 }
 0x268   : > { %1970 = vmatprep.mubr.bf16.mxu0 %v2738_v36 }
 0x26f   : > { %2325 = vmatmul.mubr.msk.bf16.gmra.mrb[32].mxu0 %vm616_vm0, %v1856_v41 }
 0x270   : > { %1980 = vmatprep.mubr.bf16.mxu0 %v2738_v36  ;;  %v3260_v36 = vrot.slane %v2019_v57, %v1995_v48 }
 0x277   : > { %2326 = vmatmul.mubr.msk.bf16.gmra.mrb[36].mxu0 %vm616_vm0, %v1857_v40 }
 0x332   : > { %v1952_v60 = vpop.f32.mrb[24].mxu0 }
 0x333   : > { %v2003_v62 = vmul.f32 %v3256_v58, %v1952_v60  ;;  %v1954_v16 = vpop.f32.mrb[25].mxu0 }
 0x334   : > { %v2004_v43 = vmul.f32 %v3258_v59, %v1954_v16  ;;  %v1956_v63 = vpop.f32.mrb[26].mxu0 }
 0x335   : > { %v2031_v0 = vadd.f32 %v3260_v36, %v2003_v62  ;;  %v2005_v45 = vmul.f32 %v3256_v58, %v1956_v63  ;;  %v1958_v1 = vpop.f32.mrb[27].mxu0 }
 0x336   : > { %v2032_v2 = vadd.f32 %v3262_v61, %v2004_v43  ;;  %v2006_v3 = vmul.f32 %v3258_v59, %v1958_v1 }
 0x337   : > { %v2047_v49 = vadd.f32 %v2031_v0, %v2863_v19  ;;  %v2033_v50 = vadd.f32 %v3260_v36, %v2005_v45  ;;  %v2726_v19 = vld [vmem:[%s2837_s18 + $0x18] sm:$0xff] }
 0x338   : > { %v2048_v46 = vadd.f32 %v2725_v17, %v2032_v2  ;;  %v2034_v5 = vadd.f32 %v3262_v61, %v2006_v3 }
 0x339   : > { %v2063_v47 = vmax.f32 %v2047_v49, 0.0  ;;  %v2049_v4 = vadd.f32 %v2033_v50, %v2866_v20 }
 0x33a   : > { %v2064_v53 = vmax.f32 %v2048_v46, 0.0  ;;  %v2050_v7 = vadd.f32 %v2726_v19, %v2034_v5  ;;  %v1962_v8 = vpop.f32.mrb[28].mxu0 }
 0x33b   : > { %2079 = vst [vmem:[%s3277_s23] sm:$0xff] %v2063_v47  ;;  %v2065_v9 = vmax.f32 %v2049_v4, 0.0  ;;  %v2007_v10 = vmul.f32 %v3256_v58, %v1962_v8  ;;  %v1964_v11 = vpop.f32.mrb[29].mxu0 }
 0x33c   : > { %2080 = vst [vmem:[%s3277_s23 + $0x8] sm:$0xff] %v2064_v53  ;;  %v2066_v12 = vmax.f32 %v2050_v7, 0.0  ;;  %v2008_v13 = vmul.f32 %v3258_v59, %v1964_v11  ;;  %v1966_v54 = vpop.f32.mrb[30].mxu0 }
 0x33d   : > { %2081 = vst [vmem:[%s3277_s23 + $0x10] sm:$0xff] %v2065_v9  ;;  %v2035_v20 = vadd.f32 %v3260_v36, %v2007_v10  ;;  %v2009_v14 = vmul.f32 %v3256_v58, %v1966_v54  ;;  %v1968_v15 = vpop.f32.mrb[31].mxu0 }
 0x33e   : > { %2082 = vst [vmem:[%s3277_s23 + $0x18] sm:$0xff] %v2066_v12  ;;  %v2036_v18 = vadd.f32 %v3262_v61, %v2008_v13  ;;  %v2010_v6 = vmul.f32 %v3258_v59, %v1968_v15 }
 0x33f   : > { %v2051_v21 = vadd.f32 %v2035_v20, %v2873_v25  ;;  %v2037_v23 = vadd.f32 %v3260_v36, %v2009_v14 }
 0x340   : > { %v2052_v56 = vadd.f32 %v2727_v55, %v2036_v18  ;;  %v2038_v22 = vadd.f32 %v3262_v61, %v2010_v6 }
 0x341   : > { %v2067_v24 = vmax.f32 %v2051_v21, 0.0  ;;  %v2053_v29 = vadd.f32 %v2037_v23, %v2876_v26 }
 0x342   : > { %v2068_v30 = vmax.f32 %v2052_v56, 0.0  ;;  %v2054_v39 = vadd.f32 %v2728_v35, %v2038_v22  ;;  %v1972_v40 = vpop.f32.mrb[32].mxu0 }
 0x343   : > { %2083 = vst [vmem:[%s3277_s23 + $0x20] sm:$0xff] %v2067_v24  ;;  %v2069_v41 = vmax.f32 %v2053_v29, 0.0  ;;  %v2011_v42 = vmul.f32 %v3256_v58, %v1972_v40  ;;  %v1974_v25 = vpop.f32.mrb[33].mxu0 }
 0x344   : > { %2084 = vst [vmem:[%s3277_s23 + $0x28] sm:$0xff] %v2068_v30  ;;  %v2070_v44 = vmax.f32 %v2054_v39, 0.0  ;;  %v2012_v48 = vmul.f32 %v3258_v59, %v1974_v25  ;;  %v1976_v51 = vpop.f32.mrb[34].mxu0 }
 0x345   : > { %2085 = vst [vmem:[%s3277_s23 + $0x30] sm:$0xff] %v2069_v41  ;;  %v2039_v52 = vadd.f32 %v3260_v36, %v2011_v42  ;;  %v2013_v26 = vmul.f32 %v3256_v58, %v1976_v51  ;;  %v1978_v57 = vpop.f32.mrb[35].mxu0 }
 0x346   : > { %2086 = vst [vmem:[%s3277_s23 + $0x38] sm:$0xff] %v2070_v44  ;;  %v2040_v60 = vadd.f32 %v3262_v61, %v2012_v48  ;;  %v2014_v62 = vmul.f32 %v3258_v59, %v1978_v57 }
 0x347   : > { %v2055_v16 = vadd.f32 %v2039_v52, %v2889_v31  ;;  %v2041_v43 = vadd.f32 %v3260_v36, %v2013_v26 }
 0x348   : > { %v2056_v63 = vadd.f32 %v2040_v60, %v2879_v27  ;;  %v2042_v0 = vadd.f32 %v3262_v61, %v2014_v62 }
 0x349   : > { %v2071_v45 = vmax.f32 %v2055_v16, 0.0  ;;  %v2057_v1 = vadd.f32 %v2041_v43, %v2892_v32 }
 0x34a   : > { %v2072_v2 = vmax.f32 %v2056_v63, 0.0  ;;  %v2058_v3 = vadd.f32 %v2042_v0, %v2882_v28  ;;  %v1982_v49 = vpop.f32.mrb[36].mxu0 }
 0x34b   : > { %2087 = vst [vmem:[%s3277_s23 + $0x40] sm:$0xff] %v2071_v45  ;;  %v2073_v50 = vmax.f32 %v2057_v1, 0.0  ;;  %v2015_v17 = vmul.f32 %v3256_v58, %v1982_v49  ;;  %v1984_v31 = vpop.f32.mrb[37].mxu0 }
 0x34c   : > { %2088 = vst [vmem:[%s3277_s23 + $0x48] sm:$0xff] %v2072_v2  ;;  %v2074_v46 = vmax.f32 %v2058_v3, 0.0  ;;  %v2016_v5 = vmul.f32 %v3258_v59, %v1984_v31  ;;  %v1986_v27 = vpop.f32.mrb[38].mxu0 }
 0x34d   : > { %2089 = vst [vmem:[%s3277_s23 + $0x50] sm:$0xff] %v2073_v50  ;;  %v2043_v47 = vadd.f32 %v3260_v36, %v2015_v17  ;;  %v2017_v32 = vmul.f32 %v3256_v58, %v1986_v27  ;;  %v1988_v4 = vpop.f32.mrb[39].mxu0 }
 0x34e   : > { %2090 = vst [vmem:[%s3277_s23 + $0x58] sm:$0xff] %v2074_v46  ;;  %v2044_v28 = vadd.f32 %v3262_v61, %v2016_v5  ;;  %v2018_v53 = vmul.f32 %v3258_v59, %v1988_v4 }
 0x34f   : > { %v2059_v19 = vadd.f32 %v2043_v47, %v2905_v37  ;;  %v2045_v7 = vadd.f32 %v3260_v36, %v2017_v32 }
 0x350   : > { %v2060_v8 = vadd.f32 %v2044_v28, %v2895_v33  ;;  %v2046_v9 = vadd.f32 %v3262_v61, %v2018_v53 }
 0x351   : > { %v2075_v10 = vmax.f32 %v2059_v19, 0.0  ;;  %v2061_v11 = vadd.f32 %v2045_v7, %v2908_v38 }
 0x352   : > { %v2076_v58 = vmax.f32 %v2060_v8, 0.0  ;;  %v2062_v12 = vadd.f32 %v2046_v9, %v2898_v34 }
 0x353   : > { %2091 = vst [vmem:[%s3277_s23 + $0x60] sm:$0xff] %v2075_v10  ;;  %v2077_v13 = vmax.f32 %v2061_v11, 0.0 }
 0x354   : > { %2092 = vst [vmem:[%s3277_s23 + $0x68] sm:$0xff] %v2076_v58  ;;  %v2078_v54 = vmax.f32 %v2062_v12, 0.0 }
 0x355   : > { %2093 = vst [vmem:[%s3277_s23 + $0x70] sm:$0xff] %v2077_v13 }
 0x356   : > { %2094 = vst [vmem:[%s3277_s23 + $0x78] sm:$0xff] %v2078_v54 }
 0x357 PF: > { %s20_s13 = sadd.s32 1, %s2735_s13  }
 0x358   : > { %p17_p4 = scmp.ge.s32.totalorder %s20_s13, 4  }
 0x35a   :  { %19 = sbr.rel (!%p17_p4) target bundleno = 1 (0x1), region = 106 }

</bundles_post_ra>
